<compile_context>
chip_gen: v7x
topology: tpu7x:2x2x1
jax: 0.10.0
libtpu: 0.0.40
codegen_flags: <defaults>
</compile_context>

<pallas_src>
import math

import jax
import jax.numpy as jnp
from jax.experimental import pallas as pl

# ---- small synthetic BERT config ----
B, S, H = 2, 8, 32
NUM_HEADS, HEAD_DIM = 4, 8
INTERMEDIATE = 64
NUM_LAYERS = 2
VOCAB = 100
MAX_POS = 64
NUM_LABELS = 3
LN_EPS = 1e-12
BN_EPS = 1e-5

assert NUM_HEADS * HEAD_DIM == H

_ATTN_SCALE = 1.0 / math.sqrt(HEAD_DIM)
_INV_SQRT2 = 1.0 / math.sqrt(2.0)


# --------------------------- in-kernel helpers ------------------------------

def _layer_norm(x, g, b):
    mu = jnp.mean(x, axis=-1, keepdims=True)
    var = jnp.mean(jnp.square(x - mu), axis=-1, keepdims=True)
    return (x - mu) * jax.lax.rsqrt(var + LN_EPS) * g + b


def _erf(x):
    # Abramowitz & Stegun 7.1.26 polynomial (|err| <= 1.5e-7): keeps exact-erf
    # GELU semantics while using only exp/mul/add, which lower on all TPU gens.
    t = 1.0 / (1.0 + 0.3275911 * jnp.abs(x))
    poly = ((((1.061405429 * t - 1.453152027) * t + 1.421413741) * t
             - 0.284496736) * t + 0.254829592) * t
    e = 1.0 - poly * jnp.exp(-(x * x))
    return jnp.where(x >= 0.0, e, -e)


def _gelu(x):
    # exact-erf GELU (HuggingFace BERT default)
    return 0.5 * x * (1.0 + _erf(x * _INV_SQRT2))


# --------------------------- fused Pallas kernel ----------------------------

def _bert_kernel(
    # inputs
    ids_ref, mask_ref,
    word_emb_ref, pos_emb_ref, type_emb_ref,
    emb_ln_g_ref, emb_ln_b_ref,
    wqkv_ref, bqkv_ref, wo_ref, bo_ref,
    ln1_g_ref, ln1_b_ref,
    wi_ref, bi_ref, wf_ref, bf_ref,
    ln2_g_ref, ln2_b_ref,
    pool_w_ref, pool_b_ref,
    bn_g_ref, bn_b_ref, bn_rm_ref, bn_rv_ref,
    dense_w_ref, dense_b_ref,
    cls_w_ref, cls_b_ref,
    # output
    o_ref,
):
    # ---- embeddings (word gather as one-hot matmul, + pos + type), fused ----
    ids = ids_ref[...]                                             # (B*S, 1) i32
    vocab_iota = jax.lax.broadcasted_iota(jnp.int32, (B * S, VOCAB), 1)
    onehot = jnp.where(ids == vocab_iota, 1.0, 0.0)                # (B*S, VOCAB)
    we = jnp.dot(onehot, word_emb_ref[...],
                 preferred_element_type=jnp.float32)               # (B*S, H)
    # TODO(synk): token_type fixed to 0 (matches calling the module without
    # token_type_ids).
    x = (we.reshape(B, S, H)
         + pos_emb_ref[0:S, :][None, :, :]
         + type_emb_ref[0:1, :][None, :, :]).reshape(B * S, H)
    x = _layer_norm(x, emb_ln_g_ref[...], emb_ln_b_ref[...])

    # additive key-position bias, hoisted once outside the layer loop: (B,1,S)
    mask = mask_ref[...].astype(jnp.float32)                       # (B, S)
    bias3 = ((1.0 - mask) * -10000.0)[:, None, :]

    for l in range(NUM_LAYERS):
        # ---- fused QKV projection: one (B*S, H) @ (H, 3H) MXU pass ----
        qkv = jnp.dot(x, wqkv_ref[l],
                      preferred_element_type=jnp.float32) + bqkv_ref[l]
        q = qkv[:, 0 * H:1 * H] * _ATTN_SCALE   # fold 1/sqrt(d) into q once
        k = qkv[:, 1 * H:2 * H]
        v = qkv[:, 2 * H:3 * H]

        # ---- multi-head self-attention, batched over B with 3-D einsums ----
        ctx_heads = []
        for h in range(NUM_HEADS):
            c0 = h * HEAD_DIM
            qh = q[:, c0:c0 + HEAD_DIM].reshape(B, S, HEAD_DIM)
            kh = k[:, c0:c0 + HEAD_DIM].reshape(B, S, HEAD_DIM)
            vh = v[:, c0:c0 + HEAD_DIM].reshape(B, S, HEAD_DIM)
            s = jnp.einsum("bqd,bkd->bqk", qh, kh,
                           preferred_element_type=jnp.float32) + bias3
            s = s - jnp.max(s, axis=-1, keepdims=True)
            p = jnp.exp(s)
            p = p * pl.reciprocal(jnp.sum(p, axis=-1, keepdims=True),
                                  approx=True)
            ctx_heads.append(
                jnp.einsum("bqk,bkd->bqd", p, vh,
                           preferred_element_type=jnp.float32
                           ).reshape(B * S, HEAD_DIM))
        ctx = jnp.concatenate(ctx_heads, axis=-1)                  # (B*S, H)

        # ---- attention output proj + residual + LayerNorm ----
        attn_out = jnp.dot(ctx, wo_ref[l],
                           preferred_element_type=jnp.float32) + bo_ref[l]
        x = _layer_norm(x + attn_out, ln1_g_ref[l], ln1_b_ref[l])

        # ---- FFN (GELU) + residual + LayerNorm ----
        h1 = _gelu(jnp.dot(x, wi_ref[l],
                           preferred_element_type=jnp.float32) + bi_ref[l])
        ffn = jnp.dot(h1, wf_ref[l],
                      preferred_element_type=jnp.float32) + bf_ref[l]
        x = _layer_norm(x + ffn, ln2_g_ref[l], ln2_b_ref[l])

    # ---- classification head on the B [CLS] rows only ----
    cls = jnp.concatenate([x[b * S:b * S + 1, :] for b in range(B)], axis=0)
    pooled = jnp.tanh(
        jnp.dot(cls, pool_w_ref[...], preferred_element_type=jnp.float32)
        + pool_b_ref[...])
    # TODO(synk): dropout1/dropout2 are identity (eval mode); training-mode
    # dropout and batch-statistic BatchNorm1d are not implemented.
    xn = ((pooled - bn_rm_ref[...])
          * jax.lax.rsqrt(bn_rv_ref[...] + BN_EPS)
          * bn_g_ref[...] + bn_b_ref[...])
    hh = jnp.maximum(
        jnp.dot(xn, dense_w_ref[...], preferred_element_type=jnp.float32)
        + dense_b_ref[...], 0.0)
    o_ref[...] = jnp.dot(hh, cls_w_ref[...],
                         preferred_element_type=jnp.float32) + cls_b_ref[...]


# ------------------------------- parameters ---------------------------------

def init_params(key):
    def nrm(k, shape, scale=0.02):
        return scale * jax.random.normal(k, shape, dtype=jnp.float32)

    ks = iter(jax.random.split(key, 16))
    L, I = NUM_LAYERS, INTERMEDIATE
    return {
        "word_emb": nrm(next(ks), (VOCAB, H)),
        "pos_emb":  nrm(next(ks), (MAX_POS, H)),
        "type_emb": nrm(next(ks), (2, H)),
        "emb_ln_g": jnp.ones((1, H), jnp.float32),
        "emb_ln_b": jnp.zeros((1, H), jnp.float32),
        # encoder weights stacked over layers; Q|K|V fused along output dim
        "wqkv": nrm(next(ks), (L, H, 3 * H)),
        "bqkv": jnp.zeros((L, 1, 3 * H), jnp.float32),
        "wo":   nrm(next(ks), (L, H, H)),
        "bo":   jnp.zeros((L, 1, H), jnp.float32),
        "ln1_g": jnp.ones((L, 1, H), jnp.float32),
        "ln1_b": jnp.zeros((L, 1, H), jnp.float32),
        "wi":   nrm(next(ks), (L, H, I)),
        "bi":   jnp.zeros((L, 1, I), jnp.float32),
        "wf":   nrm(next(ks), (L, I, H)),
        "bf":   jnp.zeros((L, 1, H), jnp.float32),
        "ln2_g": jnp.ones((L, 1, H), jnp.float32),
        "ln2_b": jnp.zeros((L, 1, H), jnp.float32),
        # pooler
        "pool_w": nrm(next(ks), (H, H)),
        "pool_b": jnp.zeros((1, H), jnp.float32),
        # classification head (BatchNorm1d eval: running stats passed in)
        "bn_g": jnp.ones((1, H), jnp.float32),
        "bn_b": jnp.zeros((1, H), jnp.float32),
        "bn_rm": jnp.zeros((1, H), jnp.float32),
        "bn_rv": jnp.ones((1, H), jnp.float32),
        "dense_w": nrm(next(ks), (H, H)),
        "dense_b": jnp.zeros((1, H), jnp.float32),
        "cls_w": nrm(next(ks), (H, NUM_LABELS)),
        "cls_b": jnp.zeros((1, NUM_LABELS), jnp.float32),
    }


# ------------------------------ forward pass --------------------------------

@jax.jit
def bert_classifier_forward(params, input_ids, attention_mask):
    ids = input_ids.reshape(B * S, 1).astype(jnp.int32)
    mask = attention_mask.astype(jnp.int32)
    return pl.pallas_call(
        _bert_kernel,
        out_shape=jax.ShapeDtypeStruct((B, NUM_LABELS), jnp.float32),
    )(ids, mask,
      params["word_emb"], params["pos_emb"], params["type_emb"],
      params["emb_ln_g"], params["emb_ln_b"],
      params["wqkv"], params["bqkv"], params["wo"], params["bo"],
      params["ln1_g"], params["ln1_b"],
      params["wi"], params["bi"], params["wf"], params["bf"],
      params["ln2_g"], params["ln2_b"],
      params["pool_w"], params["pool_b"],
      params["bn_g"], params["bn_b"], params["bn_rm"], params["bn_rv"],
      params["dense_w"], params["dense_b"],
      params["cls_w"], params["cls_b"])


# ---------------------------------- main ------------------------------------

if __name__ == "__main__":
    key = jax.random.PRNGKey(0)
    k_ids, k_params = jax.random.split(key)

    input_ids = jax.random.randint(k_ids, (B, S), 0, VOCAB, dtype=jnp.int32)
    attention_mask = jnp.ones((B, S), dtype=jnp.int32)
    attention_mask = attention_mask.at[1, 6:].set(0)   # pad last 2 tokens of row 1

    params = init_params(k_params)

    logits = bert_classifier_forward(params, input_ids, attention_mask)
    jax.block_until_ready(logits)

    assert logits.shape == (B, NUM_LABELS)
    assert bool(jnp.all(jnp.isfinite(logits)))
    print("KERNEL_OK")
</pallas_src>

<mosaic_0001>
module attributes {stable_mosaic.version = 11 : i64} {
  func.func @_bert_kernel(%arg0: memref<16x1xi32, #tpu.memory_space<vmem>>, %arg1: memref<2x8xi32, #tpu.memory_space<vmem>>, %arg2: memref<100x32xf32, #tpu.memory_space<vmem>>, %arg3: memref<64x32xf32, #tpu.memory_space<vmem>>, %arg4: memref<2x32xf32, #tpu.memory_space<vmem>>, %arg5: memref<1x32xf32, #tpu.memory_space<vmem>>, %arg6: memref<1x32xf32, #tpu.memory_space<vmem>>, %arg7: memref<2x32x96xf32, #tpu.memory_space<vmem>>, %arg8: memref<2x1x96xf32, #tpu.memory_space<vmem>>, %arg9: memref<2x32x32xf32, #tpu.memory_space<vmem>>, %arg10: memref<2x1x32xf32, #tpu.memory_space<vmem>>, %arg11: memref<2x1x32xf32, #tpu.memory_space<vmem>>, %arg12: memref<2x1x32xf32, #tpu.memory_space<vmem>>, %arg13: memref<2x32x64xf32, #tpu.memory_space<vmem>>, %arg14: memref<2x1x64xf32, #tpu.memory_space<vmem>>, %arg15: memref<2x64x32xf32, #tpu.memory_space<vmem>>, %arg16: memref<2x1x32xf32, #tpu.memory_space<vmem>>, %arg17: memref<2x1x32xf32, #tpu.memory_space<vmem>>, %arg18: memref<2x1x32xf32, #tpu.memory_space<vmem>>, %arg19: memref<32x32xf32, #tpu.memory_space<vmem>>, %arg20: memref<1x32xf32, #tpu.memory_space<vmem>>, %arg21: memref<1x32xf32, #tpu.memory_space<vmem>>, %arg22: memref<1x32xf32, #tpu.memory_space<vmem>>, %arg23: memref<1x32xf32, #tpu.memory_space<vmem>>, %arg24: memref<1x32xf32, #tpu.memory_space<vmem>>, %arg25: memref<32x32xf32, #tpu.memory_space<vmem>>, %arg26: memref<1x32xf32, #tpu.memory_space<vmem>>, %arg27: memref<32x3xf32, #tpu.memory_space<vmem>>, %arg28: memref<1x3xf32, #tpu.memory_space<vmem>>, %arg29: memref<2x3xf32, #tpu.memory_space<vmem>>) attributes {dimension_semantics = [], scalar_prefetch = 0 : i64, scratch_operands = 0 : i64, tpu.core_type = #tpu.core_type<tc>} {
    %c0 = arith.constant 0 : index
    %c0_0 = arith.constant 0 : index
    %0 = vector.load %arg0[%c0, %c0_0] : memref<16x1xi32, #tpu.memory_space<vmem>>, vector<16x1xi32>
    %1 = tpu.iota {dimensions = array<i32: 1>} : vector<16x100xi32>
    %2 = vector.broadcast %0 : vector<16x1xi32> to vector<16x100xi32>
    %3 = arith.cmpi eq, %2, %1 : vector<16x100xi32>
    %cst = arith.constant 1.000000e+00 : f32
    %cst_1 = arith.constant 0.000000e+00 : f32
    %4 = vector.broadcast %cst : f32 to vector<16x100xf32>
    %5 = vector.broadcast %cst_1 : f32 to vector<16x100xf32>
    %6 = arith.select %3, %4, %5 : vector<16x100xi1>, vector<16x100xf32>
    %c0_2 = arith.constant 0 : index
    %c0_3 = arith.constant 0 : index
    %7 = vector.load %arg2[%c0_2, %c0_3] : memref<100x32xf32, #tpu.memory_space<vmem>>, vector<100x32xf32>
    %cst_4 = arith.constant dense<0.000000e+00> : vector<16x32xf32>
    %8 = tpu.matmul %6, %7, %cst_4 {dimension_numbers = #tpu.dot_dimension_numbers<[1], [0], [0], [1], [0, 0, 1, 1], [], []>} : vector<16x100xf32>, vector<100x32xf32>, vector<16x32xf32> -> vector<16x32xf32>
    %9 = vector.shape_cast %8 : vector<16x32xf32> to vector<2x8x32xf32>
    %c0_5 = arith.constant 0 : index
    %c0_6 = arith.constant 0 : index
    %10 = vector.load %arg3[%c0_5, %c0_6] : memref<64x32xf32, #tpu.memory_space<vmem>>, vector<8x32xf32>
    %11 = vector.shape_cast %10 : vector<8x32xf32> to vector<1x8x32xf32>
    %12 = vector.broadcast %11 : vector<1x8x32xf32> to vector<2x8x32xf32>
    %13 = arith.addf %9, %12 : vector<2x8x32xf32>
    %c0_7 = arith.constant 0 : index
    %c0_8 = arith.constant 0 : index
    %14 = vector.load %arg4[%c0_7, %c0_8] : memref<2x32xf32, #tpu.memory_space<vmem>>, vector<1x32xf32>
    %15 = vector.shape_cast %14 : vector<1x32xf32> to vector<1x1x32xf32>
    %16 = vector.broadcast %15 : vector<1x1x32xf32> to vector<2x8x32xf32>
    %17 = arith.addf %13, %16 : vector<2x8x32xf32>
    %18 = vector.shape_cast %17 : vector<2x8x32xf32> to vector<16x32xf32>
    %c0_9 = arith.constant 0 : index
    %c0_10 = arith.constant 0 : index
    %19 = vector.load %arg5[%c0_9, %c0_10] : memref<1x32xf32, #tpu.memory_space<vmem>>, vector<1x32xf32>
    %c0_11 = arith.constant 0 : index
    %c0_12 = arith.constant 0 : index
    %20 = vector.load %arg6[%c0_11, %c0_12] : memref<1x32xf32, #tpu.memory_space<vmem>>, vector<1x32xf32>
    %cst_13 = arith.constant dense<0.000000e+00> : vector<16xf32>
    %21 = vector.multi_reduction <add>, %18, %cst_13 [1] : vector<16x32xf32> to vector<16xf32>
    %22 = vector.shape_cast %21 : vector<16xf32> to vector<16x1xf32>
    %cst_14 = arith.constant 3.200000e+01 : f32
    %23 = vector.broadcast %cst_14 : f32 to vector<16x1xf32>
    %24 = arith.divf %22, %23 : vector<16x1xf32>
    %25 = vector.broadcast %24 : vector<16x1xf32> to vector<16x32xf32>
    %26 = arith.subf %18, %25 : vector<16x32xf32>
    %27 = arith.mulf %26, %26 : vector<16x32xf32>
    %cst_15 = arith.constant dense<0.000000e+00> : vector<16xf32>
    %28 = vector.multi_reduction <add>, %27, %cst_15 [1] : vector<16x32xf32> to vector<16xf32>
    %29 = vector.shape_cast %28 : vector<16xf32> to vector<16x1xf32>
    %cst_16 = arith.constant 3.200000e+01 : f32
    %30 = vector.broadcast %cst_16 : f32 to vector<16x1xf32>
    %31 = arith.divf %29, %30 : vector<16x1xf32>
    %32 = vector.broadcast %24 : vector<16x1xf32> to vector<16x32xf32>
    %33 = arith.subf %18, %32 : vector<16x32xf32>
    %cst_17 = arith.constant 9.99999996E-13 : f32
    %34 = vector.broadcast %cst_17 : f32 to vector<16x1xf32>
    %35 = arith.addf %31, %34 : vector<16x1xf32>
    %36 = math.rsqrt %35 : vector<16x1xf32>
    %37 = vector.broadcast %36 : vector<16x1xf32> to vector<16x32xf32>
    %38 = arith.mulf %33, %37 : vector<16x32xf32>
    %39 = vector.broadcast %19 : vector<1x32xf32> to vector<16x32xf32>
    %40 = arith.mulf %38, %39 : vector<16x32xf32>
    %41 = vector.broadcast %20 : vector<1x32xf32> to vector<16x32xf32>
    %42 = arith.addf %40, %41 : vector<16x32xf32>
    %c0_18 = arith.constant 0 : index
    %c0_19 = arith.constant 0 : index
    %43 = vector.load %arg1[%c0_18, %c0_19] : memref<2x8xi32, #tpu.memory_space<vmem>>, vector<2x8xi32>
    %44 = arith.sitofp %43 : vector<2x8xi32> to vector<2x8xf32>
    %cst_20 = arith.constant 1.000000e+00 : f32
    %45 = vector.broadcast %cst_20 : f32 to vector<2x8xf32>
    %46 = arith.subf %45, %44 : vector<2x8xf32>
    %cst_21 = arith.constant -1.000000e+04 : f32
    %47 = vector.broadcast %cst_21 : f32 to vector<2x8xf32>
    %48 = arith.mulf %46, %47 : vector<2x8xf32>
    %49 = vector.shape_cast %48 : vector<2x8xf32> to vector<2x1x8xf32>
    %c0_22 = arith.constant 0 : index
    %c0_23 = arith.constant 0 : index
    %c0_24 = arith.constant 0 : index
    %50 = vector.load %arg7[%c0_22, %c0_23, %c0_24] : memref<2x32x96xf32, #tpu.memory_space<vmem>>, vector<1x32x96xf32>
    %51 = vector.shape_cast %50 : vector<1x32x96xf32> to vector<32x96xf32>
    %cst_25 = arith.constant dense<0.000000e+00> : vector<16x96xf32>
    %52 = tpu.matmul %42, %51, %cst_25 {dimension_numbers = #tpu.dot_dimension_numbers<[1], [0], [0], [1], [0, 0, 1, 1], [], []>} : vector<16x32xf32>, vector<32x96xf32>, vector<16x96xf32> -> vector<16x96xf32>
    %c0_26 = arith.constant 0 : index
    %c0_27 = arith.constant 0 : index
    %c0_28 = arith.constant 0 : index
    %53 = vector.load %arg8[%c0_26, %c0_27, %c0_28] : memref<2x1x96xf32, #tpu.memory_space<vmem>>, vector<1x1x96xf32>
    %54 = vector.shape_cast %53 : vector<1x1x96xf32> to vector<1x96xf32>
    %55 = vector.broadcast %54 : vector<1x96xf32> to vector<16x96xf32>
    %56 = arith.addf %52, %55 : vector<16x96xf32>
    %57 = vector.extract_strided_slice %56 {offsets = [0, 0], sizes = [16, 32], strides = [1, 1]} : vector<16x96xf32> to vector<16x32xf32>
    %cst_29 = arith.constant 0.353553385 : f32
    %58 = vector.broadcast %cst_29 : f32 to vector<16x32xf32>
    %59 = arith.mulf %57, %58 : vector<16x32xf32>
    %60 = vector.extract_strided_slice %56 {offsets = [0, 32], sizes = [16, 32], strides = [1, 1]} : vector<16x96xf32> to vector<16x32xf32>
    %61 = vector.extract_strided_slice %56 {offsets = [0, 64], sizes = [16, 32], strides = [1, 1]} : vector<16x96xf32> to vector<16x32xf32>
    %62 = vector.extract_strided_slice %59 {offsets = [0, 0], sizes = [16, 8], strides = [1, 1]} : vector<16x32xf32> to vector<16x8xf32>
    %63 = vector.shape_cast %62 : vector<16x8xf32> to vector<2x8x8xf32>
    %64 = vector.extract_strided_slice %60 {offsets = [0, 0], sizes = [16, 8], strides = [1, 1]} : vector<16x32xf32> to vector<16x8xf32>
    %65 = vector.shape_cast %64 : vector<16x8xf32> to vector<2x8x8xf32>
    %66 = vector.extract_strided_slice %61 {offsets = [0, 0], sizes = [16, 8], strides = [1, 1]} : vector<16x32xf32> to vector<16x8xf32>
    %67 = vector.shape_cast %66 : vector<16x8xf32> to vector<2x8x8xf32>
    "tpu.trace_start"() <{level = 10 : i32, message = "bqd,bkd->bqk"}> : () -> ()
    %cst_30 = arith.constant dense<0.000000e+00> : vector<2x8x8xf32>
    %68 = tpu.matmul %63, %65, %cst_30 {dimension_numbers = #tpu.dot_dimension_numbers<[2], [2], [1], [1], [0, 0, 0, 1, 1, 1], [0], [0]>} : vector<2x8x8xf32>, vector<2x8x8xf32>, vector<2x8x8xf32> -> vector<2x8x8xf32>
    "tpu.trace_stop"() : () -> ()
    %69 = vector.broadcast %49 : vector<2x1x8xf32> to vector<2x8x8xf32>
    %70 = arith.addf %68, %69 : vector<2x8x8xf32>
    %cst_31 = arith.constant dense<0xFF800000> : vector<2x8xf32>
    %71 = vector.multi_reduction <maximumf>, %70, %cst_31 [2] : vector<2x8x8xf32> to vector<2x8xf32>
    %72 = vector.shape_cast %71 : vector<2x8xf32> to vector<2x8x1xf32>
    %73 = vector.broadcast %72 : vector<2x8x1xf32> to vector<2x8x8xf32>
    %74 = arith.subf %70, %73 : vector<2x8x8xf32>
    %75 = math.exp %74 : vector<2x8x8xf32>
    %cst_32 = arith.constant dense<0.000000e+00> : vector<2x8xf32>
    %76 = vector.multi_reduction <add>, %75, %cst_32 [2] : vector<2x8x8xf32> to vector<2x8xf32>
    %77 = vector.shape_cast %76 : vector<2x8xf32> to vector<2x8x1xf32>
    %78 = tpu.reciprocal %77 {approx = true} : vector<2x8x1xf32> -> vector<2x8x1xf32>
    %79 = vector.broadcast %78 : vector<2x8x1xf32> to vector<2x8x8xf32>
    %80 = arith.mulf %75, %79 : vector<2x8x8xf32>
    "tpu.trace_start"() <{level = 10 : i32, message = "bqk,bkd->bqd"}> : () -> ()
    %cst_33 = arith.constant dense<0.000000e+00> : vector<2x8x8xf32>
    %81 = tpu.matmul %80, %67, %cst_33 {dimension_numbers = #tpu.dot_dimension_numbers<[2], [1], [1], [2], [0, 0, 0, 1, 1, 2], [0], [0]>} : vector<2x8x8xf32>, vector<2x8x8xf32>, vector<2x8x8xf32> -> vector<2x8x8xf32>
    "tpu.trace_stop"() : () -> ()
    %82 = vector.shape_cast %81 : vector<2x8x8xf32> to vector<16x8xf32>
    %83 = vector.extract_strided_slice %59 {offsets = [0, 8], sizes = [16, 8], strides = [1, 1]} : vector<16x32xf32> to vector<16x8xf32>
    %84 = vector.shape_cast %83 : vector<16x8xf32> to vector<2x8x8xf32>
    %85 = vector.extract_strided_slice %60 {offsets = [0, 8], sizes = [16, 8], strides = [1, 1]} : vector<16x32xf32> to vector<16x8xf32>
    %86 = vector.shape_cast %85 : vector<16x8xf32> to vector<2x8x8xf32>
    %87 = vector.extract_strided_slice %61 {offsets = [0, 8], sizes = [16, 8], strides = [1, 1]} : vector<16x32xf32> to vector<16x8xf32>
    %88 = vector.shape_cast %87 : vector<16x8xf32> to vector<2x8x8xf32>
    "tpu.trace_start"() <{level = 10 : i32, message = "bqd,bkd->bqk"}> : () -> ()
    %cst_34 = arith.constant dense<0.000000e+00> : vector<2x8x8xf32>
    %89 = tpu.matmul %84, %86, %cst_34 {dimension_numbers = #tpu.dot_dimension_numbers<[2], [2], [1], [1], [0, 0, 0, 1, 1, 1], [0], [0]>} : vector<2x8x8xf32>, vector<2x8x8xf32>, vector<2x8x8xf32> -> vector<2x8x8xf32>
    "tpu.trace_stop"() : () -> ()
    %90 = vector.broadcast %49 : vector<2x1x8xf32> to vector<2x8x8xf32>
    %91 = arith.addf %89, %90 : vector<2x8x8xf32>
    %cst_35 = arith.constant dense<0xFF800000> : vector<2x8xf32>
    %92 = vector.multi_reduction <maximumf>, %91, %cst_35 [2] : vector<2x8x8xf32> to vector<2x8xf32>
    %93 = vector.shape_cast %92 : vector<2x8xf32> to vector<2x8x1xf32>
    %94 = vector.broadcast %93 : vector<2x8x1xf32> to vector<2x8x8xf32>
    %95 = arith.subf %91, %94 : vector<2x8x8xf32>
    %96 = math.exp %95 : vector<2x8x8xf32>
    %cst_36 = arith.constant dense<0.000000e+00> : vector<2x8xf32>
    %97 = vector.multi_reduction <add>, %96, %cst_36 [2] : vector<2x8x8xf32> to vector<2x8xf32>
    %98 = vector.shape_cast %97 : vector<2x8xf32> to vector<2x8x1xf32>
    %99 = tpu.reciprocal %98 {approx = true} : vector<2x8x1xf32> -> vector<2x8x1xf32>
    %100 = vector.broadcast %99 : vector<2x8x1xf32> to vector<2x8x8xf32>
    %101 = arith.mulf %96, %100 : vector<2x8x8xf32>
    "tpu.trace_start"() <{level = 10 : i32, message = "bqk,bkd->bqd"}> : () -> ()
    %cst_37 = arith.constant dense<0.000000e+00> : vector<2x8x8xf32>
    %102 = tpu.matmul %101, %88, %cst_37 {dimension_numbers = #tpu.dot_dimension_numbers<[2], [1], [1], [2], [0, 0, 0, 1, 1, 2], [0], [0]>} : vector<2x8x8xf32>, vector<2x8x8xf32>, vector<2x8x8xf32> -> vector<2x8x8xf32>
    "tpu.trace_stop"() : () -> ()
    %103 = vector.shape_cast %102 : vector<2x8x8xf32> to vector<16x8xf32>
    %104 = vector.extract_strided_slice %59 {offsets = [0, 16], sizes = [16, 8], strides = [1, 1]} : vector<16x32xf32> to vector<16x8xf32>
    %105 = vector.shape_cast %104 : vector<16x8xf32> to vector<2x8x8xf32>
    %106 = vector.extract_strided_slice %60 {offsets = [0, 16], sizes = [16, 8], strides = [1, 1]} : vector<16x32xf32> to vector<16x8xf32>
    %107 = vector.shape_cast %106 : vector<16x8xf32> to vector<2x8x8xf32>
    %108 = vector.extract_strided_slice %61 {offsets = [0, 16], sizes = [16, 8], strides = [1, 1]} : vector<16x32xf32> to vector<16x8xf32>
    %109 = vector.shape_cast %108 : vector<16x8xf32> to vector<2x8x8xf32>
    "tpu.trace_start"() <{level = 10 : i32, message = "bqd,bkd->bqk"}> : () -> ()
    %cst_38 = arith.constant dense<0.000000e+00> : vector<2x8x8xf32>
    %110 = tpu.matmul %105, %107, %cst_38 {dimension_numbers = #tpu.dot_dimension_numbers<[2], [2], [1], [1], [0, 0, 0, 1, 1, 1], [0], [0]>} : vector<2x8x8xf32>, vector<2x8x8xf32>, vector<2x8x8xf32> -> vector<2x8x8xf32>
    "tpu.trace_stop"() : () -> ()
    %111 = vector.broadcast %49 : vector<2x1x8xf32> to vector<2x8x8xf32>
    %112 = arith.addf %110, %111 : vector<2x8x8xf32>
    %cst_39 = arith.constant dense<0xFF800000> : vector<2x8xf32>
    %113 = vector.multi_reduction <maximumf>, %112, %cst_39 [2] : vector<2x8x8xf32> to vector<2x8xf32>
    %114 = vector.shape_cast %113 : vector<2x8xf32> to vector<2x8x1xf32>
    %115 = vector.broadcast %114 : vector<2x8x1xf32> to vector<2x8x8xf32>
    %116 = arith.subf %112, %115 : vector<2x8x8xf32>
    %117 = math.exp %116 : vector<2x8x8xf32>
    %cst_40 = arith.constant dense<0.000000e+00> : vector<2x8xf32>
    %118 = vector.multi_reduction <add>, %117, %cst_40 [2] : vector<2x8x8xf32> to vector<2x8xf32>
    %119 = vector.shape_cast %118 : vector<2x8xf32> to vector<2x8x1xf32>
    %120 = tpu.reciprocal %119 {approx = true} : vector<2x8x1xf32> -> vector<2x8x1xf32>
    %121 = vector.broadcast %120 : vector<2x8x1xf32> to vector<2x8x8xf32>
    %122 = arith.mulf %117, %121 : vector<2x8x8xf32>
    "tpu.trace_start"() <{level = 10 : i32, message = "bqk,bkd->bqd"}> : () -> ()
    %cst_41 = arith.constant dense<0.000000e+00> : vector<2x8x8xf32>
    %123 = tpu.matmul %122, %109, %cst_41 {dimension_numbers = #tpu.dot_dimension_numbers<[2], [1], [1], [2], [0, 0, 0, 1, 1, 2], [0], [0]>} : vector<2x8x8xf32>, vector<2x8x8xf32>, vector<2x8x8xf32> -> vector<2x8x8xf32>
    "tpu.trace_stop"() : () -> ()
    %124 = vector.shape_cast %123 : vector<2x8x8xf32> to vector<16x8xf32>
    %125 = vector.extract_strided_slice %59 {offsets = [0, 24], sizes = [16, 8], strides = [1, 1]} : vector<16x32xf32> to vector<16x8xf32>
    %126 = vector.shape_cast %125 : vector<16x8xf32> to vector<2x8x8xf32>
    %127 = vector.extract_strided_slice %60 {offsets = [0, 24], sizes = [16, 8], strides = [1, 1]} : vector<16x32xf32> to vector<16x8xf32>
    %128 = vector.shape_cast %127 : vector<16x8xf32> to vector<2x8x8xf32>
    %129 = vector.extract_strided_slice %61 {offsets = [0, 24], sizes = [16, 8], strides = [1, 1]} : vector<16x32xf32> to vector<16x8xf32>
    %130 = vector.shape_cast %129 : vector<16x8xf32> to vector<2x8x8xf32>
    "tpu.trace_start"() <{level = 10 : i32, message = "bqd,bkd->bqk"}> : () -> ()
    %cst_42 = arith.constant dense<0.000000e+00> : vector<2x8x8xf32>
    %131 = tpu.matmul %126, %128, %cst_42 {dimension_numbers = #tpu.dot_dimension_numbers<[2], [2], [1], [1], [0, 0, 0, 1, 1, 1], [0], [0]>} : vector<2x8x8xf32>, vector<2x8x8xf32>, vector<2x8x8xf32> -> vector<2x8x8xf32>
    "tpu.trace_stop"() : () -> ()
    %132 = vector.broadcast %49 : vector<2x1x8xf32> to vector<2x8x8xf32>
    %133 = arith.addf %131, %132 : vector<2x8x8xf32>
    %cst_43 = arith.constant dense<0xFF800000> : vector<2x8xf32>
    %134 = vector.multi_reduction <maximumf>, %133, %cst_43 [2] : vector<2x8x8xf32> to vector<2x8xf32>
    %135 = vector.shape_cast %134 : vector<2x8xf32> to vector<2x8x1xf32>
    %136 = vector.broadcast %135 : vector<2x8x1xf32> to vector<2x8x8xf32>
    %137 = arith.subf %133, %136 : vector<2x8x8xf32>
    %138 = math.exp %137 : vector<2x8x8xf32>
    %cst_44 = arith.constant dense<0.000000e+00> : vector<2x8xf32>
    %139 = vector.multi_reduction <add>, %138, %cst_44 [2] : vector<2x8x8xf32> to vector<2x8xf32>
    %140 = vector.shape_cast %139 : vector<2x8xf32> to vector<2x8x1xf32>
    %141 = tpu.reciprocal %140 {approx = true} : vector<2x8x1xf32> -> vector<2x8x1xf32>
    %142 = vector.broadcast %141 : vector<2x8x1xf32> to vector<2x8x8xf32>
    %143 = arith.mulf %138, %142 : vector<2x8x8xf32>
    "tpu.trace_start"() <{level = 10 : i32, message = "bqk,bkd->bqd"}> : () -> ()
    %cst_45 = arith.constant dense<0.000000e+00> : vector<2x8x8xf32>
    %144 = tpu.matmul %143, %130, %cst_45 {dimension_numbers = #tpu.dot_dimension_numbers<[2], [1], [1], [2], [0, 0, 0, 1, 1, 2], [0], [0]>} : vector<2x8x8xf32>, vector<2x8x8xf32>, vector<2x8x8xf32> -> vector<2x8x8xf32>
    "tpu.trace_stop"() : () -> ()
    %145 = vector.shape_cast %144 : vector<2x8x8xf32> to vector<16x8xf32>
    %146 = tpu.concatenate %82, %103, %124, %145 in 1 : vector<16x8xf32>, vector<16x8xf32>, vector<16x8xf32>, vector<16x8xf32> -> vector<16x32xf32>
    %c0_46 = arith.constant 0 : index
    %c0_47 = arith.constant 0 : index
    %c0_48 = arith.constant 0 : index
    %147 = vector.load %arg9[%c0_46, %c0_47, %c0_48] : memref<2x32x32xf32, #tpu.memory_space<vmem>>, vector<1x32x32xf32>
    %148 = vector.shape_cast %147 : vector<1x32x32xf32> to vector<32x32xf32>
    %cst_49 = arith.constant dense<0.000000e+00> : vector<16x32xf32>
    %149 = tpu.matmul %146, %148, %cst_49 {dimension_numbers = #tpu.dot_dimension_numbers<[1], [0], [0], [1], [0, 0, 1, 1], [], []>} : vector<16x32xf32>, vector<32x32xf32>, vector<16x32xf32> -> vector<16x32xf32>
    %c0_50 = arith.constant 0 : index
    %c0_51 = arith.constant 0 : index
    %c0_52 = arith.constant 0 : index
    %150 = vector.load %arg10[%c0_50, %c0_51, %c0_52] : memref<2x1x32xf32, #tpu.memory_space<vmem>>, vector<1x1x32xf32>
    %151 = vector.shape_cast %150 : vector<1x1x32xf32> to vector<1x32xf32>
    %152 = vector.broadcast %151 : vector<1x32xf32> to vector<16x32xf32>
    %153 = arith.addf %149, %152 : vector<16x32xf32>
    %154 = arith.addf %42, %153 : vector<16x32xf32>
    %c0_53 = arith.constant 0 : index
    %c0_54 = arith.constant 0 : index
    %c0_55 = arith.constant 0 : index
    %155 = vector.load %arg11[%c0_53, %c0_54, %c0_55] : memref<2x1x32xf32, #tpu.memory_space<vmem>>, vector<1x1x32xf32>
    %156 = vector.shape_cast %155 : vector<1x1x32xf32> to vector<1x32xf32>
    %c0_56 = arith.constant 0 : index
    %c0_57 = arith.constant 0 : index
    %c0_58 = arith.constant 0 : index
    %157 = vector.load %arg12[%c0_56, %c0_57, %c0_58] : memref<2x1x32xf32, #tpu.memory_space<vmem>>, vector<1x1x32xf32>
    %158 = vector.shape_cast %157 : vector<1x1x32xf32> to vector<1x32xf32>
    %cst_59 = arith.constant dense<0.000000e+00> : vector<16xf32>
    %159 = vector.multi_reduction <add>, %154, %cst_59 [1] : vector<16x32xf32> to vector<16xf32>
    %160 = vector.shape_cast %159 : vector<16xf32> to vector<16x1xf32>
    %cst_60 = arith.constant 3.200000e+01 : f32
    %161 = vector.broadcast %cst_60 : f32 to vector<16x1xf32>
    %162 = arith.divf %160, %161 : vector<16x1xf32>
    %163 = vector.broadcast %162 : vector<16x1xf32> to vector<16x32xf32>
    %164 = arith.subf %154, %163 : vector<16x32xf32>
    %165 = arith.mulf %164, %164 : vector<16x32xf32>
    %cst_61 = arith.constant dense<0.000000e+00> : vector<16xf32>
    %166 = vector.multi_reduction <add>, %165, %cst_61 [1] : vector<16x32xf32> to vector<16xf32>
    %167 = vector.shape_cast %166 : vector<16xf32> to vector<16x1xf32>
    %cst_62 = arith.constant 3.200000e+01 : f32
    %168 = vector.broadcast %cst_62 : f32 to vector<16x1xf32>
    %169 = arith.divf %167, %168 : vector<16x1xf32>
    %170 = vector.broadcast %162 : vector<16x1xf32> to vector<16x32xf32>
    %171 = arith.subf %154, %170 : vector<16x32xf32>
    %cst_63 = arith.constant 9.99999996E-13 : f32
    %172 = vector.broadcast %cst_63 : f32 to vector<16x1xf32>
    %173 = arith.addf %169, %172 : vector<16x1xf32>
    %174 = math.rsqrt %173 : vector<16x1xf32>
    %175 = vector.broadcast %174 : vector<16x1xf32> to vector<16x32xf32>
    %176 = arith.mulf %171, %175 : vector<16x32xf32>
    %177 = vector.broadcast %156 : vector<1x32xf32> to vector<16x32xf32>
    %178 = arith.mulf %176, %177 : vector<16x32xf32>
    %179 = vector.broadcast %158 : vector<1x32xf32> to vector<16x32xf32>
    %180 = arith.addf %178, %179 : vector<16x32xf32>
    %c0_64 = arith.constant 0 : index
    %c0_65 = arith.constant 0 : index
    %c0_66 = arith.constant 0 : index
    %181 = vector.load %arg13[%c0_64, %c0_65, %c0_66] : memref<2x32x64xf32, #tpu.memory_space<vmem>>, vector<1x32x64xf32>
    %182 = vector.shape_cast %181 : vector<1x32x64xf32> to vector<32x64xf32>
    %cst_67 = arith.constant dense<0.000000e+00> : vector<16x64xf32>
    %183 = tpu.matmul %180, %182, %cst_67 {dimension_numbers = #tpu.dot_dimension_numbers<[1], [0], [0], [1], [0, 0, 1, 1], [], []>} : vector<16x32xf32>, vector<32x64xf32>, vector<16x64xf32> -> vector<16x64xf32>
    %c0_68 = arith.constant 0 : index
    %c0_69 = arith.constant 0 : index
    %c0_70 = arith.constant 0 : index
    %184 = vector.load %arg14[%c0_68, %c0_69, %c0_70] : memref<2x1x64xf32, #tpu.memory_space<vmem>>, vector<1x1x64xf32>
    %185 = vector.shape_cast %184 : vector<1x1x64xf32> to vector<1x64xf32>
    %186 = vector.broadcast %185 : vector<1x64xf32> to vector<16x64xf32>
    %187 = arith.addf %183, %186 : vector<16x64xf32>
    %cst_71 = arith.constant 5.000000e-01 : f32
    %188 = vector.broadcast %cst_71 : f32 to vector<16x64xf32>
    %189 = arith.mulf %188, %187 : vector<16x64xf32>
    %cst_72 = arith.constant 0.707106769 : f32
    %190 = vector.broadcast %cst_72 : f32 to vector<16x64xf32>
    %191 = arith.mulf %187, %190 : vector<16x64xf32>
    %192 = math.absf %191 : vector<16x64xf32>
    %cst_73 = arith.constant 0.327591091 : f32
    %193 = vector.broadcast %cst_73 : f32 to vector<16x64xf32>
    %194 = arith.mulf %193, %192 : vector<16x64xf32>
    %cst_74 = arith.constant 1.000000e+00 : f32
    %195 = vector.broadcast %cst_74 : f32 to vector<16x64xf32>
    %196 = arith.addf %195, %194 : vector<16x64xf32>
    %cst_75 = arith.constant 1.000000e+00 : f32
    %197 = vector.broadcast %cst_75 : f32 to vector<16x64xf32>
    %198 = arith.divf %197, %196 : vector<16x64xf32>
    %cst_76 = arith.constant 1.06140542 : f32
    %199 = vector.broadcast %cst_76 : f32 to vector<16x64xf32>
    %200 = arith.mulf %199, %198 : vector<16x64xf32>
    %cst_77 = arith.constant 1.45315206 : f32
    %201 = vector.broadcast %cst_77 : f32 to vector<16x64xf32>
    %202 = arith.subf %200, %201 : vector<16x64xf32>
    %203 = arith.mulf %202, %198 : vector<16x64xf32>
    %cst_78 = arith.constant 1.42141378 : f32
    %204 = vector.broadcast %cst_78 : f32 to vector<16x64xf32>
    %205 = arith.addf %203, %204 : vector<16x64xf32>
    %206 = arith.mulf %205, %198 : vector<16x64xf32>
    %cst_79 = arith.constant 0.284496725 : f32
    %207 = vector.broadcast %cst_79 : f32 to vector<16x64xf32>
    %208 = arith.subf %206, %207 : vector<16x64xf32>
    %209 = arith.mulf %208, %198 : vector<16x64xf32>
    %cst_80 = arith.constant 0.254829586 : f32
    %210 = vector.broadcast %cst_80 : f32 to vector<16x64xf32>
    %211 = arith.addf %209, %210 : vector<16x64xf32>
    %212 = arith.mulf %211, %198 : vector<16x64xf32>
    %213 = arith.mulf %191, %191 : vector<16x64xf32>
    %cst_81 = arith.constant 0.000000e+00 : f32
    %214 = vector.broadcast %cst_81 : f32 to vector<16x64xf32>
    %215 = arith.subf %214, %213 : vector<16x64xf32>
    %216 = math.exp %215 : vector<16x64xf32>
    %217 = arith.mulf %212, %216 : vector<16x64xf32>
    %cst_82 = arith.constant 1.000000e+00 : f32
    %218 = vector.broadcast %cst_82 : f32 to vector<16x64xf32>
    %219 = arith.subf %218, %217 : vector<16x64xf32>
    %cst_83 = arith.constant 0.000000e+00 : f32
    %220 = vector.broadcast %cst_83 : f32 to vector<16x64xf32>
    %221 = arith.cmpf oge, %191, %220 : vector<16x64xf32>
    %cst_84 = arith.constant 0.000000e+00 : f32
    %222 = vector.broadcast %cst_84 : f32 to vector<16x64xf32>
    %223 = arith.subf %222, %219 : vector<16x64xf32>
    %224 = arith.select %221, %219, %223 : vector<16x64xi1>, vector<16x64xf32>
    %cst_85 = arith.constant 1.000000e+00 : f32
    %225 = vector.broadcast %cst_85 : f32 to vector<16x64xf32>
    %226 = arith.addf %225, %224 : vector<16x64xf32>
    %227 = arith.mulf %189, %226 : vector<16x64xf32>
    %c0_86 = arith.constant 0 : index
    %c0_87 = arith.constant 0 : index
    %c0_88 = arith.constant 0 : index
    %228 = vector.load %arg15[%c0_86, %c0_87, %c0_88] : memref<2x64x32xf32, #tpu.memory_space<vmem>>, vector<1x64x32xf32>
    %229 = vector.shape_cast %228 : vector<1x64x32xf32> to vector<64x32xf32>
    %cst_89 = arith.constant dense<0.000000e+00> : vector<16x32xf32>
    %230 = tpu.matmul %227, %229, %cst_89 {dimension_numbers = #tpu.dot_dimension_numbers<[1], [0], [0], [1], [0, 0, 1, 1], [], []>} : vector<16x64xf32>, vector<64x32xf32>, vector<16x32xf32> -> vector<16x32xf32>
    %c0_90 = arith.constant 0 : index
    %c0_91 = arith.constant 0 : index
    %c0_92 = arith.constant 0 : index
    %231 = vector.load %arg16[%c0_90, %c0_91, %c0_92] : memref<2x1x32xf32, #tpu.memory_space<vmem>>, vector<1x1x32xf32>
    %232 = vector.shape_cast %231 : vector<1x1x32xf32> to vector<1x32xf32>
    %233 = vector.broadcast %232 : vector<1x32xf32> to vector<16x32xf32>
    %234 = arith.addf %230, %233 : vector<16x32xf32>
    %235 = arith.addf %180, %234 : vector<16x32xf32>
    %c0_93 = arith.constant 0 : index
    %c0_94 = arith.constant 0 : index
    %c0_95 = arith.constant 0 : index
    %236 = vector.load %arg17[%c0_93, %c0_94, %c0_95] : memref<2x1x32xf32, #tpu.memory_space<vmem>>, vector<1x1x32xf32>
    %237 = vector.shape_cast %236 : vector<1x1x32xf32> to vector<1x32xf32>
    %c0_96 = arith.constant 0 : index
    %c0_97 = arith.constant 0 : index
    %c0_98 = arith.constant 0 : index
    %238 = vector.load %arg18[%c0_96, %c0_97, %c0_98] : memref<2x1x32xf32, #tpu.memory_space<vmem>>, vector<1x1x32xf32>
    %239 = vector.shape_cast %238 : vector<1x1x32xf32> to vector<1x32xf32>
    %cst_99 = arith.constant dense<0.000000e+00> : vector<16xf32>
    %240 = vector.multi_reduction <add>, %235, %cst_99 [1] : vector<16x32xf32> to vector<16xf32>
    %241 = vector.shape_cast %240 : vector<16xf32> to vector<16x1xf32>
    %cst_100 = arith.constant 3.200000e+01 : f32
    %242 = vector.broadcast %cst_100 : f32 to vector<16x1xf32>
    %243 = arith.divf %241, %242 : vector<16x1xf32>
    %244 = vector.broadcast %243 : vector<16x1xf32> to vector<16x32xf32>
    %245 = arith.subf %235, %244 : vector<16x32xf32>
    %246 = arith.mulf %245, %245 : vector<16x32xf32>
    %cst_101 = arith.constant dense<0.000000e+00> : vector<16xf32>
    %247 = vector.multi_reduction <add>, %246, %cst_101 [1] : vector<16x32xf32> to vector<16xf32>
    %248 = vector.shape_cast %247 : vector<16xf32> to vector<16x1xf32>
    %cst_102 = arith.constant 3.200000e+01 : f32
    %249 = vector.broadcast %cst_102 : f32 to vector<16x1xf32>
    %250 = arith.divf %248, %249 : vector<16x1xf32>
    %251 = vector.broadcast %243 : vector<16x1xf32> to vector<16x32xf32>
    %252 = arith.subf %235, %251 : vector<16x32xf32>
    %cst_103 = arith.constant 9.99999996E-13 : f32
    %253 = vector.broadcast %cst_103 : f32 to vector<16x1xf32>
    %254 = arith.addf %250, %253 : vector<16x1xf32>
    %255 = math.rsqrt %254 : vector<16x1xf32>
    %256 = vector.broadcast %255 : vector<16x1xf32> to vector<16x32xf32>
    %257 = arith.mulf %252, %256 : vector<16x32xf32>
    %258 = vector.broadcast %237 : vector<1x32xf32> to vector<16x32xf32>
    %259 = arith.mulf %257, %258 : vector<16x32xf32>
    %260 = vector.broadcast %239 : vector<1x32xf32> to vector<16x32xf32>
    %261 = arith.addf %259, %260 : vector<16x32xf32>
    %c1 = arith.constant 1 : index
    %c0_104 = arith.constant 0 : index
    %c0_105 = arith.constant 0 : index
    %262 = vector.load %arg7[%c1, %c0_104, %c0_105] : memref<2x32x96xf32, #tpu.memory_space<vmem>>, vector<1x32x96xf32>
    %263 = vector.shape_cast %262 : vector<1x32x96xf32> to vector<32x96xf32>
    %cst_106 = arith.constant dense<0.000000e+00> : vector<16x96xf32>
    %264 = tpu.matmul %261, %263, %cst_106 {dimension_numbers = #tpu.dot_dimension_numbers<[1], [0], [0], [1], [0, 0, 1, 1], [], []>} : vector<16x32xf32>, vector<32x96xf32>, vector<16x96xf32> -> vector<16x96xf32>
    %c1_107 = arith.constant 1 : index
    %c0_108 = arith.constant 0 : index
    %c0_109 = arith.constant 0 : index
    %265 = vector.load %arg8[%c1_107, %c0_108, %c0_109] : memref<2x1x96xf32, #tpu.memory_space<vmem>>, vector<1x1x96xf32>
    %266 = vector.shape_cast %265 : vector<1x1x96xf32> to vector<1x96xf32>
    %267 = vector.broadcast %266 : vector<1x96xf32> to vector<16x96xf32>
    %268 = arith.addf %264, %267 : vector<16x96xf32>
    %269 = vector.extract_strided_slice %268 {offsets = [0, 0], sizes = [16, 32], strides = [1, 1]} : vector<16x96xf32> to vector<16x32xf32>
    %cst_110 = arith.constant 0.353553385 : f32
    %270 = vector.broadcast %cst_110 : f32 to vector<16x32xf32>
    %271 = arith.mulf %269, %270 : vector<16x32xf32>
    %272 = vector.extract_strided_slice %268 {offsets = [0, 32], sizes = [16, 32], strides = [1, 1]} : vector<16x96xf32> to vector<16x32xf32>
    %273 = vector.extract_strided_slice %268 {offsets = [0, 64], sizes = [16, 32], strides = [1, 1]} : vector<16x96xf32> to vector<16x32xf32>
    %274 = vector.extract_strided_slice %271 {offsets = [0, 0], sizes = [16, 8], strides = [1, 1]} : vector<16x32xf32> to vector<16x8xf32>
    %275 = vector.shape_cast %274 : vector<16x8xf32> to vector<2x8x8xf32>
    %276 = vector.extract_strided_slice %272 {offsets = [0, 0], sizes = [16, 8], strides = [1, 1]} : vector<16x32xf32> to vector<16x8xf32>
    %277 = vector.shape_cast %276 : vector<16x8xf32> to vector<2x8x8xf32>
    %278 = vector.extract_strided_slice %273 {offsets = [0, 0], sizes = [16, 8], strides = [1, 1]} : vector<16x32xf32> to vector<16x8xf32>
    %279 = vector.shape_cast %278 : vector<16x8xf32> to vector<2x8x8xf32>
    "tpu.trace_start"() <{level = 10 : i32, message = "bqd,bkd->bqk"}> : () -> ()
    %cst_111 = arith.constant dense<0.000000e+00> : vector<2x8x8xf32>
    %280 = tpu.matmul %275, %277, %cst_111 {dimension_numbers = #tpu.dot_dimension_numbers<[2], [2], [1], [1], [0, 0, 0, 1, 1, 1], [0], [0]>} : vector<2x8x8xf32>, vector<2x8x8xf32>, vector<2x8x8xf32> -> vector<2x8x8xf32>
    "tpu.trace_stop"() : () -> ()
    %281 = vector.broadcast %49 : vector<2x1x8xf32> to vector<2x8x8xf32>
    %282 = arith.addf %280, %281 : vector<2x8x8xf32>
    %cst_112 = arith.constant dense<0xFF800000> : vector<2x8xf32>
    %283 = vector.multi_reduction <maximumf>, %282, %cst_112 [2] : vector<2x8x8xf32> to vector<2x8xf32>
    %284 = vector.shape_cast %283 : vector<2x8xf32> to vector<2x8x1xf32>
    %285 = vector.broadcast %284 : vector<2x8x1xf32> to vector<2x8x8xf32>
    %286 = arith.subf %282, %285 : vector<2x8x8xf32>
    %287 = math.exp %286 : vector<2x8x8xf32>
    %cst_113 = arith.constant dense<0.000000e+00> : vector<2x8xf32>
    %288 = vector.multi_reduction <add>, %287, %cst_113 [2] : vector<2x8x8xf32> to vector<2x8xf32>
    %289 = vector.shape_cast %288 : vector<2x8xf32> to vector<2x8x1xf32>
    %290 = tpu.reciprocal %289 {approx = true} : vector<2x8x1xf32> -> vector<2x8x1xf32>
    %291 = vector.broadcast %290 : vector<2x8x1xf32> to vector<2x8x8xf32>
    %292 = arith.mulf %287, %291 : vector<2x8x8xf32>
    "tpu.trace_start"() <{level = 10 : i32, message = "bqk,bkd->bqd"}> : () -> ()
    %cst_114 = arith.constant dense<0.000000e+00> : vector<2x8x8xf32>
    %293 = tpu.matmul %292, %279, %cst_114 {dimension_numbers = #tpu.dot_dimension_numbers<[2], [1], [1], [2], [0, 0, 0, 1, 1, 2], [0], [0]>} : vector<2x8x8xf32>, vector<2x8x8xf32>, vector<2x8x8xf32> -> vector<2x8x8xf32>
    "tpu.trace_stop"() : () -> ()
    %294 = vector.shape_cast %293 : vector<2x8x8xf32> to vector<16x8xf32>
    %295 = vector.extract_strided_slice %271 {offsets = [0, 8], sizes = [16, 8], strides = [1, 1]} : vector<16x32xf32> to vector<16x8xf32>
    %296 = vector.shape_cast %295 : vector<16x8xf32> to vector<2x8x8xf32>
    %297 = vector.extract_strided_slice %272 {offsets = [0, 8], sizes = [16, 8], strides = [1, 1]} : vector<16x32xf32> to vector<16x8xf32>
    %298 = vector.shape_cast %297 : vector<16x8xf32> to vector<2x8x8xf32>
    %299 = vector.extract_strided_slice %273 {offsets = [0, 8], sizes = [16, 8], strides = [1, 1]} : vector<16x32xf32> to vector<16x8xf32>
    %300 = vector.shape_cast %299 : vector<16x8xf32> to vector<2x8x8xf32>
    "tpu.trace_start"() <{level = 10 : i32, message = "bqd,bkd->bqk"}> : () -> ()
    %cst_115 = arith.constant dense<0.000000e+00> : vector<2x8x8xf32>
    %301 = tpu.matmul %296, %298, %cst_115 {dimension_numbers = #tpu.dot_dimension_numbers<[2], [2], [1], [1], [0, 0, 0, 1, 1, 1], [0], [0]>} : vector<2x8x8xf32>, vector<2x8x8xf32>, vector<2x8x8xf32> -> vector<2x8x8xf32>
    "tpu.trace_stop"() : () -> ()
    %302 = vector.broadcast %49 : vector<2x1x8xf32> to vector<2x8x8xf32>
    %303 = arith.addf %301, %302 : vector<2x8x8xf32>
    %cst_116 = arith.constant dense<0xFF800000> : vector<2x8xf32>
    %304 = vector.multi_reduction <maximumf>, %303, %cst_116 [2] : vector<2x8x8xf32> to vector<2x8xf32>
    %305 = vector.shape_cast %304 : vector<2x8xf32> to vector<2x8x1xf32>
    %306 = vector.broadcast %305 : vector<2x8x1xf32> to vector<2x8x8xf32>
    %307 = arith.subf %303, %306 : vector<2x8x8xf32>
    %308 = math.exp %307 : vector<2x8x8xf32>
    %cst_117 = arith.constant dense<0.000000e+00> : vector<2x8xf32>
    %309 = vector.multi_reduction <add>, %308, %cst_117 [2] : vector<2x8x8xf32> to vector<2x8xf32>
    %310 = vector.shape_cast %309 : vector<2x8xf32> to vector<2x8x1xf32>
    %311 = tpu.reciprocal %310 {approx = true} : vector<2x8x1xf32> -> vector<2x8x1xf32>
    %312 = vector.broadcast %311 : vector<2x8x1xf32> to vector<2x8x8xf32>
    %313 = arith.mulf %308, %312 : vector<2x8x8xf32>
    "tpu.trace_start"() <{level = 10 : i32, message = "bqk,bkd->bqd"}> : () -> ()
    %cst_118 = arith.constant dense<0.000000e+00> : vector<2x8x8xf32>
    %314 = tpu.matmul %313, %300, %cst_118 {dimension_numbers = #tpu.dot_dimension_numbers<[2], [1], [1], [2], [0, 0, 0, 1, 1, 2], [0], [0]>} : vector<2x8x8xf32>, vector<2x8x8xf32>, vector<2x8x8xf32> -> vector<2x8x8xf32>
    "tpu.trace_stop"() : () -> ()
    %315 = vector.shape_cast %314 : vector<2x8x8xf32> to vector<16x8xf32>
    %316 = vector.extract_strided_slice %271 {offsets = [0, 16], sizes = [16, 8], strides = [1, 1]} : vector<16x32xf32> to vector<16x8xf32>
    %317 = vector.shape_cast %316 : vector<16x8xf32> to vector<2x8x8xf32>
    %318 = vector.extract_strided_slice %272 {offsets = [0, 16], sizes = [16, 8], strides = [1, 1]} : vector<16x32xf32> to vector<16x8xf32>
    %319 = vector.shape_cast %318 : vector<16x8xf32> to vector<2x8x8xf32>
    %320 = vector.extract_strided_slice %273 {offsets = [0, 16], sizes = [16, 8], strides = [1, 1]} : vector<16x32xf32> to vector<16x8xf32>
    %321 = vector.shape_cast %320 : vector<16x8xf32> to vector<2x8x8xf32>
    "tpu.trace_start"() <{level = 10 : i32, message = "bqd,bkd->bqk"}> : () -> ()
    %cst_119 = arith.constant dense<0.000000e+00> : vector<2x8x8xf32>
    %322 = tpu.matmul %317, %319, %cst_119 {dimension_numbers = #tpu.dot_dimension_numbers<[2], [2], [1], [1], [0, 0, 0, 1, 1, 1], [0], [0]>} : vector<2x8x8xf32>, vector<2x8x8xf32>, vector<2x8x8xf32> -> vector<2x8x8xf32>
    "tpu.trace_stop"() : () -> ()
    %323 = vector.broadcast %49 : vector<2x1x8xf32> to vector<2x8x8xf32>
    %324 = arith.addf %322, %323 : vector<2x8x8xf32>
    %cst_120 = arith.constant dense<0xFF800000> : vector<2x8xf32>
    %325 = vector.multi_reduction <maximumf>, %324, %cst_120 [2] : vector<2x8x8xf32> to vector<2x8xf32>
    %326 = vector.shape_cast %325 : vector<2x8xf32> to vector<2x8x1xf32>
    %327 = vector.broadcast %326 : vector<2x8x1xf32> to vector<2x8x8xf32>
    %328 = arith.subf %324, %327 : vector<2x8x8xf32>
    %329 = math.exp %328 : vector<2x8x8xf32>
    %cst_121 = arith.constant dense<0.000000e+00> : vector<2x8xf32>
    %330 = vector.multi_reduction <add>, %329, %cst_121 [2] : vector<2x8x8xf32> to vector<2x8xf32>
    %331 = vector.shape_cast %330 : vector<2x8xf32> to vector<2x8x1xf32>
    %332 = tpu.reciprocal %331 {approx = true} : vector<2x8x1xf32> -> vector<2x8x1xf32>
    %333 = vector.broadcast %332 : vector<2x8x1xf32> to vector<2x8x8xf32>
    %334 = arith.mulf %329, %333 : vector<2x8x8xf32>
    "tpu.trace_start"() <{level = 10 : i32, message = "bqk,bkd->bqd"}> : () -> ()
    %cst_122 = arith.constant dense<0.000000e+00> : vector<2x8x8xf32>
    %335 = tpu.matmul %334, %321, %cst_122 {dimension_numbers = #tpu.dot_dimension_numbers<[2], [1], [1], [2], [0, 0, 0, 1, 1, 2], [0], [0]>} : vector<2x8x8xf32>, vector<2x8x8xf32>, vector<2x8x8xf32> -> vector<2x8x8xf32>
    "tpu.trace_stop"() : () -> ()
    %336 = vector.shape_cast %335 : vector<2x8x8xf32> to vector<16x8xf32>
    %337 = vector.extract_strided_slice %271 {offsets = [0, 24], sizes = [16, 8], strides = [1, 1]} : vector<16x32xf32> to vector<16x8xf32>
    %338 = vector.shape_cast %337 : vector<16x8xf32> to vector<2x8x8xf32>
    %339 = vector.extract_strided_slice %272 {offsets = [0, 24], sizes = [16, 8], strides = [1, 1]} : vector<16x32xf32> to vector<16x8xf32>
    %340 = vector.shape_cast %339 : vector<16x8xf32> to vector<2x8x8xf32>
    %341 = vector.extract_strided_slice %273 {offsets = [0, 24], sizes = [16, 8], strides = [1, 1]} : vector<16x32xf32> to vector<16x8xf32>
    %342 = vector.shape_cast %341 : vector<16x8xf32> to vector<2x8x8xf32>
    "tpu.trace_start"() <{level = 10 : i32, message = "bqd,bkd->bqk"}> : () -> ()
    %cst_123 = arith.constant dense<0.000000e+00> : vector<2x8x8xf32>
    %343 = tpu.matmul %338, %340, %cst_123 {dimension_numbers = #tpu.dot_dimension_numbers<[2], [2], [1], [1], [0, 0, 0, 1, 1, 1], [0], [0]>} : vector<2x8x8xf32>, vector<2x8x8xf32>, vector<2x8x8xf32> -> vector<2x8x8xf32>
    "tpu.trace_stop"() : () -> ()
    %344 = vector.broadcast %49 : vector<2x1x8xf32> to vector<2x8x8xf32>
    %345 = arith.addf %343, %344 : vector<2x8x8xf32>
    %cst_124 = arith.constant dense<0xFF800000> : vector<2x8xf32>
    %346 = vector.multi_reduction <maximumf>, %345, %cst_124 [2] : vector<2x8x8xf32> to vector<2x8xf32>
    %347 = vector.shape_cast %346 : vector<2x8xf32> to vector<2x8x1xf32>
    %348 = vector.broadcast %347 : vector<2x8x1xf32> to vector<2x8x8xf32>
    %349 = arith.subf %345, %348 : vector<2x8x8xf32>
    %350 = math.exp %349 : vector<2x8x8xf32>
    %cst_125 = arith.constant dense<0.000000e+00> : vector<2x8xf32>
    %351 = vector.multi_reduction <add>, %350, %cst_125 [2] : vector<2x8x8xf32> to vector<2x8xf32>
    %352 = vector.shape_cast %351 : vector<2x8xf32> to vector<2x8x1xf32>
    %353 = tpu.reciprocal %352 {approx = true} : vector<2x8x1xf32> -> vector<2x8x1xf32>
    %354 = vector.broadcast %353 : vector<2x8x1xf32> to vector<2x8x8xf32>
    %355 = arith.mulf %350, %354 : vector<2x8x8xf32>
    "tpu.trace_start"() <{level = 10 : i32, message = "bqk,bkd->bqd"}> : () -> ()
    %cst_126 = arith.constant dense<0.000000e+00> : vector<2x8x8xf32>
    %356 = tpu.matmul %355, %342, %cst_126 {dimension_numbers = #tpu.dot_dimension_numbers<[2], [1], [1], [2], [0, 0, 0, 1, 1, 2], [0], [0]>} : vector<2x8x8xf32>, vector<2x8x8xf32>, vector<2x8x8xf32> -> vector<2x8x8xf32>
    "tpu.trace_stop"() : () -> ()
    %357 = vector.shape_cast %356 : vector<2x8x8xf32> to vector<16x8xf32>
    %358 = tpu.concatenate %294, %315, %336, %357 in 1 : vector<16x8xf32>, vector<16x8xf32>, vector<16x8xf32>, vector<16x8xf32> -> vector<16x32xf32>
    %c1_127 = arith.constant 1 : index
    %c0_128 = arith.constant 0 : index
    %c0_129 = arith.constant 0 : index
    %359 = vector.load %arg9[%c1_127, %c0_128, %c0_129] : memref<2x32x32xf32, #tpu.memory_space<vmem>>, vector<1x32x32xf32>
    %360 = vector.shape_cast %359 : vector<1x32x32xf32> to vector<32x32xf32>
    %cst_130 = arith.constant dense<0.000000e+00> : vector<16x32xf32>
    %361 = tpu.matmul %358, %360, %cst_130 {dimension_numbers = #tpu.dot_dimension_numbers<[1], [0], [0], [1], [0, 0, 1, 1], [], []>} : vector<16x32xf32>, vector<32x32xf32>, vector<16x32xf32> -> vector<16x32xf32>
    %c1_131 = arith.constant 1 : index
    %c0_132 = arith.constant 0 : index
    %c0_133 = arith.constant 0 : index
    %362 = vector.load %arg10[%c1_131, %c0_132, %c0_133] : memref<2x1x32xf32, #tpu.memory_space<vmem>>, vector<1x1x32xf32>
    %363 = vector.shape_cast %362 : vector<1x1x32xf32> to vector<1x32xf32>
    %364 = vector.broadcast %363 : vector<1x32xf32> to vector<16x32xf32>
    %365 = arith.addf %361, %364 : vector<16x32xf32>
    %366 = arith.addf %261, %365 : vector<16x32xf32>
    %c1_134 = arith.constant 1 : index
    %c0_135 = arith.constant 0 : index
    %c0_136 = arith.constant 0 : index
    %367 = vector.load %arg11[%c1_134, %c0_135, %c0_136] : memref<2x1x32xf32, #tpu.memory_space<vmem>>, vector<1x1x32xf32>
    %368 = vector.shape_cast %367 : vector<1x1x32xf32> to vector<1x32xf32>
    %c1_137 = arith.constant 1 : index
    %c0_138 = arith.constant 0 : index
    %c0_139 = arith.constant 0 : index
    %369 = vector.load %arg12[%c1_137, %c0_138, %c0_139] : memref<2x1x32xf32, #tpu.memory_space<vmem>>, vector<1x1x32xf32>
    %370 = vector.shape_cast %369 : vector<1x1x32xf32> to vector<1x32xf32>
    %cst_140 = arith.constant dense<0.000000e+00> : vector<16xf32>
    %371 = vector.multi_reduction <add>, %366, %cst_140 [1] : vector<16x32xf32> to vector<16xf32>
    %372 = vector.shape_cast %371 : vector<16xf32> to vector<16x1xf32>
    %cst_141 = arith.constant 3.200000e+01 : f32
    %373 = vector.broadcast %cst_141 : f32 to vector<16x1xf32>
    %374 = arith.divf %372, %373 : vector<16x1xf32>
    %375 = vector.broadcast %374 : vector<16x1xf32> to vector<16x32xf32>
    %376 = arith.subf %366, %375 : vector<16x32xf32>
    %377 = arith.mulf %376, %376 : vector<16x32xf32>
    %cst_142 = arith.constant dense<0.000000e+00> : vector<16xf32>
    %378 = vector.multi_reduction <add>, %377, %cst_142 [1] : vector<16x32xf32> to vector<16xf32>
    %379 = vector.shape_cast %378 : vector<16xf32> to vector<16x1xf32>
    %cst_143 = arith.constant 3.200000e+01 : f32
    %380 = vector.broadcast %cst_143 : f32 to vector<16x1xf32>
    %381 = arith.divf %379, %380 : vector<16x1xf32>
    %382 = vector.broadcast %374 : vector<16x1xf32> to vector<16x32xf32>
    %383 = arith.subf %366, %382 : vector<16x32xf32>
    %cst_144 = arith.constant 9.99999996E-13 : f32
    %384 = vector.broadcast %cst_144 : f32 to vector<16x1xf32>
    %385 = arith.addf %381, %384 : vector<16x1xf32>
    %386 = math.rsqrt %385 : vector<16x1xf32>
    %387 = vector.broadcast %386 : vector<16x1xf32> to vector<16x32xf32>
    %388 = arith.mulf %383, %387 : vector<16x32xf32>
    %389 = vector.broadcast %368 : vector<1x32xf32> to vector<16x32xf32>
    %390 = arith.mulf %388, %389 : vector<16x32xf32>
    %391 = vector.broadcast %370 : vector<1x32xf32> to vector<16x32xf32>
    %392 = arith.addf %390, %391 : vector<16x32xf32>
    %c1_145 = arith.constant 1 : index
    %c0_146 = arith.constant 0 : index
    %c0_147 = arith.constant 0 : index
    %393 = vector.load %arg13[%c1_145, %c0_146, %c0_147] : memref<2x32x64xf32, #tpu.memory_space<vmem>>, vector<1x32x64xf32>
    %394 = vector.shape_cast %393 : vector<1x32x64xf32> to vector<32x64xf32>
    %cst_148 = arith.constant dense<0.000000e+00> : vector<16x64xf32>
    %395 = tpu.matmul %392, %394, %cst_148 {dimension_numbers = #tpu.dot_dimension_numbers<[1], [0], [0], [1], [0, 0, 1, 1], [], []>} : vector<16x32xf32>, vector<32x64xf32>, vector<16x64xf32> -> vector<16x64xf32>
    %c1_149 = arith.constant 1 : index
    %c0_150 = arith.constant 0 : index
    %c0_151 = arith.constant 0 : index
    %396 = vector.load %arg14[%c1_149, %c0_150, %c0_151] : memref<2x1x64xf32, #tpu.memory_space<vmem>>, vector<1x1x64xf32>
    %397 = vector.shape_cast %396 : vector<1x1x64xf32> to vector<1x64xf32>
    %398 = vector.broadcast %397 : vector<1x64xf32> to vector<16x64xf32>
    %399 = arith.addf %395, %398 : vector<16x64xf32>
    %cst_152 = arith.constant 5.000000e-01 : f32
    %400 = vector.broadcast %cst_152 : f32 to vector<16x64xf32>
    %401 = arith.mulf %400, %399 : vector<16x64xf32>
    %cst_153 = arith.constant 0.707106769 : f32
    %402 = vector.broadcast %cst_153 : f32 to vector<16x64xf32>
    %403 = arith.mulf %399, %402 : vector<16x64xf32>
    %404 = math.absf %403 : vector<16x64xf32>
    %cst_154 = arith.constant 0.327591091 : f32
    %405 = vector.broadcast %cst_154 : f32 to vector<16x64xf32>
    %406 = arith.mulf %405, %404 : vector<16x64xf32>
    %cst_155 = arith.constant 1.000000e+00 : f32
    %407 = vector.broadcast %cst_155 : f32 to vector<16x64xf32>
    %408 = arith.addf %407, %406 : vector<16x64xf32>
    %cst_156 = arith.constant 1.000000e+00 : f32
    %409 = vector.broadcast %cst_156 : f32 to vector<16x64xf32>
    %410 = arith.divf %409, %408 : vector<16x64xf32>
    %cst_157 = arith.constant 1.06140542 : f32
    %411 = vector.broadcast %cst_157 : f32 to vector<16x64xf32>
    %412 = arith.mulf %411, %410 : vector<16x64xf32>
    %cst_158 = arith.constant 1.45315206 : f32
    %413 = vector.broadcast %cst_158 : f32 to vector<16x64xf32>
    %414 = arith.subf %412, %413 : vector<16x64xf32>
    %415 = arith.mulf %414, %410 : vector<16x64xf32>
    %cst_159 = arith.constant 1.42141378 : f32
    %416 = vector.broadcast %cst_159 : f32 to vector<16x64xf32>
    %417 = arith.addf %415, %416 : vector<16x64xf32>
    %418 = arith.mulf %417, %410 : vector<16x64xf32>
    %cst_160 = arith.constant 0.284496725 : f32
    %419 = vector.broadcast %cst_160 : f32 to vector<16x64xf32>
    %420 = arith.subf %418, %419 : vector<16x64xf32>
    %421 = arith.mulf %420, %410 : vector<16x64xf32>
    %cst_161 = arith.constant 0.254829586 : f32
    %422 = vector.broadcast %cst_161 : f32 to vector<16x64xf32>
    %423 = arith.addf %421, %422 : vector<16x64xf32>
    %424 = arith.mulf %423, %410 : vector<16x64xf32>
    %425 = arith.mulf %403, %403 : vector<16x64xf32>
    %cst_162 = arith.constant 0.000000e+00 : f32
    %426 = vector.broadcast %cst_162 : f32 to vector<16x64xf32>
    %427 = arith.subf %426, %425 : vector<16x64xf32>
    %428 = math.exp %427 : vector<16x64xf32>
    %429 = arith.mulf %424, %428 : vector<16x64xf32>
    %cst_163 = arith.constant 1.000000e+00 : f32
    %430 = vector.broadcast %cst_163 : f32 to vector<16x64xf32>
    %431 = arith.subf %430, %429 : vector<16x64xf32>
    %cst_164 = arith.constant 0.000000e+00 : f32
    %432 = vector.broadcast %cst_164 : f32 to vector<16x64xf32>
    %433 = arith.cmpf oge, %403, %432 : vector<16x64xf32>
    %cst_165 = arith.constant 0.000000e+00 : f32
    %434 = vector.broadcast %cst_165 : f32 to vector<16x64xf32>
    %435 = arith.subf %434, %431 : vector<16x64xf32>
    %436 = arith.select %433, %431, %435 : vector<16x64xi1>, vector<16x64xf32>
    %cst_166 = arith.constant 1.000000e+00 : f32
    %437 = vector.broadcast %cst_166 : f32 to vector<16x64xf32>
    %438 = arith.addf %437, %436 : vector<16x64xf32>
    %439 = arith.mulf %401, %438 : vector<16x64xf32>
    %c1_167 = arith.constant 1 : index
    %c0_168 = arith.constant 0 : index
    %c0_169 = arith.constant 0 : index
    %440 = vector.load %arg15[%c1_167, %c0_168, %c0_169] : memref<2x64x32xf32, #tpu.memory_space<vmem>>, vector<1x64x32xf32>
    %441 = vector.shape_cast %440 : vector<1x64x32xf32> to vector<64x32xf32>
    %cst_170 = arith.constant dense<0.000000e+00> : vector<16x32xf32>
    %442 = tpu.matmul %439, %441, %cst_170 {dimension_numbers = #tpu.dot_dimension_numbers<[1], [0], [0], [1], [0, 0, 1, 1], [], []>} : vector<16x64xf32>, vector<64x32xf32>, vector<16x32xf32> -> vector<16x32xf32>
    %c1_171 = arith.constant 1 : index
    %c0_172 = arith.constant 0 : index
    %c0_173 = arith.constant 0 : index
    %443 = vector.load %arg16[%c1_171, %c0_172, %c0_173] : memref<2x1x32xf32, #tpu.memory_space<vmem>>, vector<1x1x32xf32>
    %444 = vector.shape_cast %443 : vector<1x1x32xf32> to vector<1x32xf32>
    %445 = vector.broadcast %444 : vector<1x32xf32> to vector<16x32xf32>
    %446 = arith.addf %442, %445 : vector<16x32xf32>
    %447 = arith.addf %392, %446 : vector<16x32xf32>
    %c1_174 = arith.constant 1 : index
    %c0_175 = arith.constant 0 : index
    %c0_176 = arith.constant 0 : index
    %448 = vector.load %arg17[%c1_174, %c0_175, %c0_176] : memref<2x1x32xf32, #tpu.memory_space<vmem>>, vector<1x1x32xf32>
    %449 = vector.shape_cast %448 : vector<1x1x32xf32> to vector<1x32xf32>
    %c1_177 = arith.constant 1 : index
    %c0_178 = arith.constant 0 : index
    %c0_179 = arith.constant 0 : index
    %450 = vector.load %arg18[%c1_177, %c0_178, %c0_179] : memref<2x1x32xf32, #tpu.memory_space<vmem>>, vector<1x1x32xf32>
    %451 = vector.shape_cast %450 : vector<1x1x32xf32> to vector<1x32xf32>
    %cst_180 = arith.constant dense<0.000000e+00> : vector<16xf32>
    %452 = vector.multi_reduction <add>, %447, %cst_180 [1] : vector<16x32xf32> to vector<16xf32>
    %453 = vector.shape_cast %452 : vector<16xf32> to vector<16x1xf32>
    %cst_181 = arith.constant 3.200000e+01 : f32
    %454 = vector.broadcast %cst_181 : f32 to vector<16x1xf32>
    %455 = arith.divf %453, %454 : vector<16x1xf32>
    %456 = vector.broadcast %455 : vector<16x1xf32> to vector<16x32xf32>
    %457 = arith.subf %447, %456 : vector<16x32xf32>
    %458 = arith.mulf %457, %457 : vector<16x32xf32>
    %cst_182 = arith.constant dense<0.000000e+00> : vector<16xf32>
    %459 = vector.multi_reduction <add>, %458, %cst_182 [1] : vector<16x32xf32> to vector<16xf32>
    %460 = vector.shape_cast %459 : vector<16xf32> to vector<16x1xf32>
    %cst_183 = arith.constant 3.200000e+01 : f32
    %461 = vector.broadcast %cst_183 : f32 to vector<16x1xf32>
    %462 = arith.divf %460, %461 : vector<16x1xf32>
    %463 = vector.broadcast %455 : vector<16x1xf32> to vector<16x32xf32>
    %464 = arith.subf %447, %463 : vector<16x32xf32>
    %cst_184 = arith.constant 9.99999996E-13 : f32
    %465 = vector.broadcast %cst_184 : f32 to vector<16x1xf32>
    %466 = arith.addf %462, %465 : vector<16x1xf32>
    %467 = math.rsqrt %466 : vector<16x1xf32>
    %468 = vector.broadcast %467 : vector<16x1xf32> to vector<16x32xf32>
    %469 = arith.mulf %464, %468 : vector<16x32xf32>
    %470 = vector.broadcast %449 : vector<1x32xf32> to vector<16x32xf32>
    %471 = arith.mulf %469, %470 : vector<16x32xf32>
    %472 = vector.broadcast %451 : vector<1x32xf32> to vector<16x32xf32>
    %473 = arith.addf %471, %472 : vector<16x32xf32>
    %474 = vector.extract_strided_slice %473 {offsets = [0, 0], sizes = [1, 32], strides = [1, 1]} : vector<16x32xf32> to vector<1x32xf32>
    %475 = vector.extract_strided_slice %473 {offsets = [8, 0], sizes = [1, 32], strides = [1, 1]} : vector<16x32xf32> to vector<1x32xf32>
    %476 = tpu.concatenate %474, %475 in 0 : vector<1x32xf32>, vector<1x32xf32> -> vector<2x32xf32>
    %c0_185 = arith.constant 0 : index
    %c0_186 = arith.constant 0 : index
    %477 = vector.load %arg19[%c0_185, %c0_186] : memref<32x32xf32, #tpu.memory_space<vmem>>, vector<32x32xf32>
    %cst_187 = arith.constant dense<0.000000e+00> : vector<2x32xf32>
    %478 = tpu.matmul %476, %477, %cst_187 {dimension_numbers = #tpu.dot_dimension_numbers<[1], [0], [0], [1], [0, 0, 1, 1], [], []>} : vector<2x32xf32>, vector<32x32xf32>, vector<2x32xf32> -> vector<2x32xf32>
    %c0_188 = arith.constant 0 : index
    %c0_189 = arith.constant 0 : index
    %479 = vector.load %arg20[%c0_188, %c0_189] : memref<1x32xf32, #tpu.memory_space<vmem>>, vector<1x32xf32>
    %480 = vector.broadcast %479 : vector<1x32xf32> to vector<2x32xf32>
    %481 = arith.addf %478, %480 : vector<2x32xf32>
    %482 = math.tanh %481 : vector<2x32xf32>
    %c0_190 = arith.constant 0 : index
    %c0_191 = arith.constant 0 : index
    %483 = vector.load %arg23[%c0_190, %c0_191] : memref<1x32xf32, #tpu.memory_space<vmem>>, vector<1x32xf32>
    %484 = vector.broadcast %483 : vector<1x32xf32> to vector<2x32xf32>
    %485 = arith.subf %482, %484 : vector<2x32xf32>
    %c0_192 = arith.constant 0 : index
    %c0_193 = arith.constant 0 : index
    %486 = vector.load %arg24[%c0_192, %c0_193] : memref<1x32xf32, #tpu.memory_space<vmem>>, vector<1x32xf32>
    %cst_194 = arith.constant 9.99999974E-6 : f32
    %487 = vector.broadcast %cst_194 : f32 to vector<1x32xf32>
    %488 = arith.addf %486, %487 : vector<1x32xf32>
    %489 = math.rsqrt %488 : vector<1x32xf32>
    %490 = vector.broadcast %489 : vector<1x32xf32> to vector<2x32xf32>
    %491 = arith.mulf %485, %490 : vector<2x32xf32>
    %c0_195 = arith.constant 0 : index
    %c0_196 = arith.constant 0 : index
    %492 = vector.load %arg21[%c0_195, %c0_196] : memref<1x32xf32, #tpu.memory_space<vmem>>, vector<1x32xf32>
    %493 = vector.broadcast %492 : vector<1x32xf32> to vector<2x32xf32>
    %494 = arith.mulf %491, %493 : vector<2x32xf32>
    %c0_197 = arith.constant 0 : index
    %c0_198 = arith.constant 0 : index
    %495 = vector.load %arg22[%c0_197, %c0_198] : memref<1x32xf32, #tpu.memory_space<vmem>>, vector<1x32xf32>
    %496 = vector.broadcast %495 : vector<1x32xf32> to vector<2x32xf32>
    %497 = arith.addf %494, %496 : vector<2x32xf32>
    %c0_199 = arith.constant 0 : index
    %c0_200 = arith.constant 0 : index
    %498 = vector.load %arg25[%c0_199, %c0_200] : memref<32x32xf32, #tpu.memory_space<vmem>>, vector<32x32xf32>
    %cst_201 = arith.constant dense<0.000000e+00> : vector<2x32xf32>
    %499 = tpu.matmul %497, %498, %cst_201 {dimension_numbers = #tpu.dot_dimension_numbers<[1], [0], [0], [1], [0, 0, 1, 1], [], []>} : vector<2x32xf32>, vector<32x32xf32>, vector<2x32xf32> -> vector<2x32xf32>
    %c0_202 = arith.constant 0 : index
    %c0_203 = arith.constant 0 : index
    %500 = vector.load %arg26[%c0_202, %c0_203] : memref<1x32xf32, #tpu.memory_space<vmem>>, vector<1x32xf32>
    %501 = vector.broadcast %500 : vector<1x32xf32> to vector<2x32xf32>
    %502 = arith.addf %499, %501 : vector<2x32xf32>
    %cst_204 = arith.constant 0.000000e+00 : f32
    %503 = vector.broadcast %cst_204 : f32 to vector<2x32xf32>
    %504 = arith.maximumf %502, %503 : vector<2x32xf32>
    %c0_205 = arith.constant 0 : index
    %c0_206 = arith.constant 0 : index
    %505 = vector.load %arg27[%c0_205, %c0_206] : memref<32x3xf32, #tpu.memory_space<vmem>>, vector<32x3xf32>
    %cst_207 = arith.constant dense<0.000000e+00> : vector<2x3xf32>
    %506 = tpu.matmul %504, %505, %cst_207 {dimension_numbers = #tpu.dot_dimension_numbers<[1], [0], [0], [1], [0, 0, 1, 1], [], []>} : vector<2x32xf32>, vector<32x3xf32>, vector<2x3xf32> -> vector<2x3xf32>
    %c0_208 = arith.constant 0 : index
    %c0_209 = arith.constant 0 : index
    %507 = vector.load %arg28[%c0_208, %c0_209] : memref<1x3xf32, #tpu.memory_space<vmem>>, vector<1x3xf32>
    %508 = vector.broadcast %507 : vector<1x3xf32> to vector<2x3xf32>
    %509 = arith.addf %506, %508 : vector<2x3xf32>
    %c0_210 = arith.constant 0 : index
    %c0_211 = arith.constant 0 : index
    %510 = vector.load %arg29[%c0_210, %c0_211] : memref<2x3xf32, #tpu.memory_space<vmem>>, vector<2x3xf32>
    tpu.vector_store %arg29[%c0_210, %c0_211], %509 {strides = array<i32>} : memref<2x3xf32, #tpu.memory_space<vmem>>, vector<2x3xf32>,
    return
  }
}

</mosaic_0001>

<bundles_post_ra>
// kernel: bert_classifier_forward.1
= control target key start
LH: loop header
LB: loop body
LE: loop exit
PB: predicated region body
PF: predicated region fallthrough
CT: control target
= control target key end

     0   :  { %s5330_s6 = smov 1   ;;  %s5331_s10 = smov 2   ;;  %s6075_s0 = inlined_call_operand.smem [shape: u32[30], index: -1, kind: input, shape index: {}] }
   0x1   :  { %s5387_s5 = sld [smem:[%s6075_s0]]   ;;  %s5332_s14 = smov 3  }
   0x2   :  { %s5392_s9 = sld [smem:[%s6075_s0 + %s5330_s6]]   ;;  %s5333_s18 = smov 4  }
   0x3   :  { %s5397_s13 = sld [smem:[%s6075_s0 + %s5331_s10]]   ;;  %s5334_s22 = smov 5  }
   0x4   :  { %s5402_s17 = sld [smem:[%s6075_s0 + %s5332_s14]]   ;;  %s5335_s26 = smov 6  }
   0x5   :  { %s5407_s21 = sld [smem:[%s6075_s0 + %s5333_s18]]   ;;  %s5336_s30 = smov 7  }
   0x6   :  { %s5412_s25 = sld [smem:[%s6075_s0 + %s5334_s22]]   ;;  %s5337_s4 = smov 8  }
   0x7   :  { %s5417_s29 = sld [smem:[%s6075_s0 + %s5335_s26]]   ;;  %s5338_s10 = smov 9  }
   0x8   :  { %s5422_s3 = sld [smem:[%s6075_s0 + %s5336_s30]]   ;;  %s5339_s15 = smov 10  }
   0x9   :  { %s5427_s8 = sld [smem:[%s6075_s0 + %s5337_s4]]   ;;  %s5340_s20 = smov 11  }
   0xa   :  { %s5432_s14 = sld [smem:[%s6075_s0 + %s5338_s10]]   ;;  %s5341_s26 = smov 12  }
   0xb   :  { %s5437_s19 = sld [smem:[%s6075_s0 + %s5339_s15]]   ;;  %s5342_s1 = smov 13  }
   0xc   :  { %s5442_s24 = sld [smem:[%s6075_s0 + %s5340_s20]]   ;;  %s5343_s7 = smov 14  }
   0xd   :  { %s5447_s30 = sld [smem:[%s6075_s0 + %s5341_s26]]   ;;  %s5344_s15 = smov 15  }
   0xe   :  { %s5452_s6 = sld [smem:[%s6075_s0 + %s5342_s1]]   ;;  %s5345_s22 = smov 16  }
   0xf   :  { %s5457_s12 = sld [smem:[%s6075_s0 + %s5343_s7]]   ;;  %s5346_s28 = smov 17  }
  0x10   :  { %s5462_s20 = sld [smem:[%s6075_s0 + %s5344_s15]]   ;;  %s5347_s7 = smov 18  }
  0x11   :  { %s5467_s27 = sld [smem:[%s6075_s0 + %s5345_s22]]   ;;  %s5348_s15 = smov 19  }
  0x12   :  { %s5472_s4 = sld [smem:[%s6075_s0 + %s5346_s28]]   ;;  %s5349_s22 = smov 20  }
  0x13   :  { %s5350_s28 = smov 21  }
  0x15   :  { %6083 = sst [smem:[#allocation5_spill]] %s5457_s12 }
  0x16   :  { %6084 = sst [smem:[#allocation6_spill]] %s5462_s20 }
  0x17   :  { %6085 = sst [smem:[#allocation7_spill]] %s5467_s27 }
  0x18   :  { %6086 = sst [smem:[#allocation8_spill]] %s5472_s4 }
  0x19   :  { %s5477_s12 = sld [smem:[%s6075_s0 + %s5347_s7]]   ;;  %s5351_s7 = smov 22  }
  0x1a   :  { %s5482_s20 = sld [smem:[%s6075_s0 + %s5348_s15]]   ;;  %s5352_s15 = smov 23  }
  0x1b   :  { %s5487_s27 = sld [smem:[%s6075_s0 + %s5349_s22]]   ;;  %s5353_s22 = smov 24  }
  0x1c   :  { %s5492_s4 = sld [smem:[%s6075_s0 + %s5350_s28]]   ;;  %s5354_s28 = smov 25  }
  0x1f   :  { %6087 = sst [smem:[#allocation9_spill]] %s5477_s12 }
  0x20   :  { %6088 = sst [smem:[#allocation10_spill]] %s5482_s20 }
  0x21   :  { %6089 = sst [smem:[#allocation11_spill]] %s5487_s27 }
  0x22   :  { %6090 = sst [smem:[#allocation12_spill]] %s5492_s4 }
  0x23   :  { %s5497_s12 = sld [smem:[%s6075_s0 + %s5351_s7]]   ;;  %s5355_s7 = smov 26  }
  0x24   :  { %s5502_s20 = sld [smem:[%s6075_s0 + %s5352_s15]]   ;;  %s5356_s15 = smov 27  }
  0x25   :  { %s5507_s27 = sld [smem:[%s6075_s0 + %s5353_s22]]   ;;  %s5357_s22 = smov 28  }
  0x26   :  { %s5512_s4 = sld [smem:[%s6075_s0 + %s5354_s28]]   ;;  %s5358_s28 = smov 29  }
  0x29   :  { %6091 = sst [smem:[#allocation13_spill]] %s5497_s12 }
  0x2a   :  { %6092 = sst [smem:[#allocation14_spill]] %s5502_s20 }
  0x2b   :  { %6093 = sst [smem:[#allocation15_spill]] %s5507_s27 }
  0x2c   :  { %6094 = sst [smem:[#allocation16_spill]] %s5512_s4 }
  0x2d   :  { %s5517_s12 = sld [smem:[%s6075_s0 + %s5355_s7]]  }
  0x2e   :  { %s5522_s20 = sld [smem:[%s6075_s0 + %s5356_s15]]  }
  0x2f   :  { %s5527_s27 = sld [smem:[%s6075_s0 + %s5357_s22]]  }
  0x30   :  { %s5532_s4 = sld [smem:[%s6075_s0 + %s5358_s28]]  }
  0x31   :  { %v123_v0 = vld [vmem:[%s5387_s5] sm:$0xff]  ;;  %v5359_v2 = vmov 0   ;;  %v138_v3 = vld [vmem:[%s5397_s13 + $0x8] sm:$0xff]  ;;  %v139_v4 = vld [vmem:[%s5397_s13 + $0x10] sm:$0xff] }
  0x32   :  { %v137_v1 = vld [vmem:[%s5397_s13] sm:$0xff]  ;;  %5201 = vset.pattern.permute.xlu0 %v5359_v2  ;;  %v140_v5 = vld [vmem:[%s5397_s13 + $0x18] sm:$0xff]  ;;  %v124_v8 = vld [vmem:[%s5387_s5 + $0x8] sm:$0xff] }
  0x33   :  { %128 = vperm.xlu0 %5201, %v123_v0   ;;  %v5030_v6 = vpack.c.bf16 %v138_v3, %v137_v1  ;;  %v5034_v7 = vpack.c.bf16 %v140_v5, %v139_v4  ;;  %v141_v9 = vld [vmem:[%s5397_s13 + $0x20] sm:$0xff]  ;;  %v142_v10 = vld [vmem:[%s5397_s13 + $0x28] sm:$0xff] }
  0x34   :  { %v5038_v11 = vpack.c.bf16 %v142_v10, %v141_v9 }
  0x35   :  { %5031 = vmatprep.subr.bf16.mxu0 %v5030_v6 }
  0x36   :  { %5033 = vmatpush3.bf16.msra.mxu0 %v5030_v6 }
  0x37   :  { %131 = vperm.xlu0 %5201, %v124_v8   ;;  %5035 = vmatprep.subr.bf16.mxu0 %v5034_v7 }
  0x38   :  { %64 = vsyncpa [#allocation3], 0  ;;  %v143_v12 = vld [vmem:[%s5397_s13 + $0x30] sm:$0xff]  ;;  %v144_v13 = vld [vmem:[%s5397_s13 + $0x38] sm:$0xff]  ;;  %vm157_vm0 = vcmask 1043456   ;;  %v5360_v22 = vmov 0.0   ;;  %v125_v23 = vlaneseq }
  0x39   :  { %v5042_v14 = vpack.c.bf16 %v144_v13, %v143_v12  ;;  %v145_v15 = vld [vmem:[%s5397_s13 + $0x40] sm:$0xff]  ;;  %v146_v16 = vld [vmem:[%s5397_s13 + $0x48] sm:$0xff]  ;;  %v147_v18 = vld [vmem:[%s5397_s13 + $0x50] sm:$0xff]  ;;  %vm150_vm1 = vcmask 818176   ;;  %vm248_vm4 = vcmask 261120   ;;  %vm5361_vm5 = vmmov 0  }
  0x3a   :  { %5037 = vmatpush3.bf16.msra.mxu0 %v5034_v7  ;;  %v5046_v17 = vpack.c.bf16 %v146_v16, %v145_v15  ;;  %v148_v19 = vld [vmem:[%s5397_s13 + $0x58] sm:$0xff]  ;;  %v149_v21 = vld [vmem:[%s5397_s13 + $0x60] sm:$0xf]  ;;  %v126_v24 = vand.u32 127, %v125_v23  ;;  %v320_v50 = vld [vmem:[%s5422_s3 + $0x8] sm:$0xff]  ;;  %s5362_s0 = smov 96  }
  0x3b   :  { %5039 = vmatprep.subr.bf16.mxu0 %v5038_v11  ;;  %v5050_v20 = vpack.c.bf16 %v148_v19, %v147_v18  ;;  %v236_v29 = vld [vmem:[%s5402_s17] sm:$0xff]  ;;  %v321_v51 = vld [vmem:[%s5422_s3 + $0x10] sm:$0xff]  ;;  %v322_v53 = vld [vmem:[%s5422_s3 + $0x18] sm:$0xff]  ;;  %vm426_vm6 = vcmask 64512   ;;  %v5363_v18 = vmov 1966171168  }
  0x3c   :  { %v4426_v32 = vld [vmem:[%s5407_s21] ss:$0 sm:$0xff]  ;;  %v5058_v54 = vpack.c.bf16 %v322_v53, %v321_v51  ;;  %v298_v19 = vunpack.c.l.s4 %v5363_v18  ;;  %s5364_s5 = smov 64   ;;  %s5366_s13 = smov 120   ;;  %vm1770_vm7 = vcmask 130048   ;;  %vm1773_vm8 = vcmask 195584  }
  0x3d   :  { %v319_v49 = vld [vmem:[%s5422_s3] sm:$0xff]  ;;  %s5367_s17 = smov 56   ;;  %s5368_s21 = smov 80   ;;  %vm2075_vm11 = vcmask 523264   ;;  %vm4088_vm14 = vcmask 1040384   ;;  %vm4378_vm15 = vcmask 17408  }
  0x3e   :  { %5041 = vmatpush3.bf16.msra.mxu0 %v5038_v11  ;;  %v5054_v52 = vpack.c.bf16 %v320_v50, %v319_v49  ;;  %v4427_v62 = vld [vmem:[%s5412_s25] ss:$0 sm:$0xff]  ;;  %s5369_s25 = smov 112   ;;  %s5371_s7 = smov 72  }
  0x3f   :  { %5043 = vmatprep.subr.bf16.mxu0 %v5042_v14  ;;  %v4428_v0 = vld [vmem:[%s5417_s29] ss:$0 sm:$0xff]  ;;  %s5370_s29 = smov 48   ;;  %s5372_s10 = smov 104  }
  0x40   :  { %5055 = vmatprep.subr.bf16.mxu1 %v5054_v52  ;;  %v4429_v7 = vld [vmem:[%s5427_s8] ss:$0 sm:$0xff]  ;;  %s5373_s11 = smov 40   ;;  %s5374_s15 = smov 8  }
  0x41   :  { %5057 = vmatpush3.bf16.msra.mxu1 %v5054_v52  ;;  %v292_v16 = vld [vmem:[%s5392_s9] sm:$0x3]  ;;  %s5365_s9 = smov 88   ;;  %s5375_s16 = smov 16  }
  0x42   :  { %5045 = vmatpush3.bf16.msra.mxu0 %v5042_v14  ;;  %5059 = vmatprep.subr.bf16.mxu1 %v5058_v54  ;;  %s5376_s18 = smov 24   ;;  %s6095_s22 = sld [smem:[#allocation6_spill]] }
  0x43   :  { %5047 = vmatprep.subr.bf16.mxu0 %v5046_v17  ;;  %s6096_s23 = sld [smem:[#allocation5_spill]]  ;;  %s6097_s26 = sld [smem:[#allocation7_spill]] }
  0x44   :  { %s6098_s28 = sld [smem:[#allocation8_spill]]  ;;  %s6099_s1 = sld [smem:[#allocation9_spill]] }
  0x45   :  { %5061 = vmatpush3.bf16.msra.mxu1 %v5058_v54  ;;  %s5378_s2 = smov [#allocation2]  }
  0x46   :  { %5049 = vmatpush3.bf16.msra.mxu0 %v5046_v17  ;;  %4749 = vmatprep.subr.mxu1 %v5360_v22  ;;  %v293_v17 = vcvt.s32.f32 %v292_v16 }
  0x47   :  { %5051 = vmatprep.subr.bf16.mxu0 %v5050_v20 }
  0x4a   :  { %5053 = vmatpush3.bf16.msra.mxu0 %v5050_v20  ;;  %v294_v20 = vsub.f32 1.0, %v293_v17 }
  0x4b   :  { %4728 = vmatprep.subr.msk.mxu0 %vm157_vm0, %v149_v21 }
  0x4e   :  { %4729 = vmatpush3.msk.msra.mxu0 %vm157_vm0, %v149_v21  ;;  %v299_v21 = vunpack.c.0.s8 %v298_v19 }
  0x4f   :  { %4744 = vmatprep.subr.mxu0 %v5360_v22 }
  0xb2   :  { %v129_v25 = vpop.permute.xlu0 %128 }
  0xb3   :  { %vm133_vm2 = vcmp.eq.s32.totalorder %v129_v25, %v126_v24  ;;  %v295_v25 = vmul.f32 -10000.0, %v294_v20 }
  0xb4   :  { %v135_v26 = vsel %vm133_vm2, 1.0, %v5360_v22 }
  0xb5   :  { %4730 = vmatprep.mubr.msk.f32.mxu0 %vm150_vm1, %v135_v26 }
  0xb6   :  { %v132_v27 = vpop.permute.xlu0 %131 }
  0xb7   :  { %vm134_vm3 = vcmp.eq.s32.totalorder %v132_v27, %v126_v24  ;;  %v301_v24 = vshrl.u32 %v125_v23, 7 }
  0xb8   :  { %v136_v28 = vsel %vm134_vm3, 1.0, %v5360_v22 }
  0xb9   :  { %4731 = vmatmul.mubr.msk.f32.vlgmr.msra.gmra.mrb[0].mxu0 %vm150_vm1, %v136_v28  ;;  %v302_v26 = vsub.s32 %v299_v21, %v301_v24 }
  0xba   :  { %4746 = vmatprep.mubr.msk.f32.mxu0 %vm5361_vm5, %v5360_v22 }
  0xbb   :  { %v303_v27 = vrot.slane %v295_v25, %v302_v26 }
  0xbd   :  { %v304_v28 = vcombine.high %v303_v27, %v303_v27 }
 0x18c   :  { %v4732_v30 = vpop.f32.mrb[0].mxu0 }
 0x18d   :  { %v227_v31 = vpop.f32.mrb[1].mxu0  ;;  %v238_v33 = vadd.f32 %v4732_v30, %v236_v29  ;;  %v5607_v30 = vsub.s32 0, %v301_v24 }
 0x18e   :  { %v237_v34 = vadd.f32 %v236_v29, %v227_v31  ;;  %v311_v29 = vrot.slane %v303_v27, %v302_v26  ;;  %v318_v31 = vrot.slane %v304_v28, %v302_v26 }
 0x18f   :  { %v245_v37 = vadd.f32 %v4426_v32, %v238_v33 }
 0x190   :  { %v244_v35 = vadd.f32 %v4426_v32, %v237_v34  ;;  %v5610_v32 = vrot.slane %v311_v29, %v5607_v30  ;;  %v5613_v34 = vrot.slane %v318_v31, %v5607_v30 }
 0x191   :  { %v252_v38 = vsel %vm248_vm4, %v245_v37, 0.0 }
 0x192   :  { %v249_v36 = vsel %vm248_vm4, %v244_v35, 0.0 }
 0x193   :  { %250 = vadd.xlane.f32.xlu1 %v249_v36 }
 0x197   :  { %253 = vadd.xlane.f32.xlu1 %v252_v38 }
 0x220   :  { %v251_v39 = vpop.xlane.xlu1 %250 }
 0x221   :  { %v256_v40 = vmul.f32 0.03125, %v251_v39 }
 0x223   :  { %v258_v41 = vsub.f32 %v244_v35, %v256_v40 }
 0x224   :  { %v254_v42 = vpop.xlane.xlu1 %253 }
 0x225   :  { %v257_v43 = vmul.f32 0.03125, %v254_v42  ;;  %v260_v44 = vmul.f32 %v258_v41, %v258_v41 }
 0x227   :  { %v259_v45 = vsub.f32 %v245_v37, %v257_v43  ;;  %v262_v46 = vsel %vm248_vm4, %v260_v44, 0.0 }
 0x228   :  { %263 = vadd.xlane.f32.xlu0 %v262_v46 }
 0x229   :  { %v261_v47 = vmul.f32 %v259_v45, %v259_v45 }
 0x22b   :  { %v265_v48 = vsel %vm248_vm4, %v261_v47, 0.0 }
 0x22c   :  { %266 = vadd.xlane.f32.xlu1 %v265_v48 }
 0x2b5   :  { %v264_v55 = vpop.xlane.xlu0 %263 }
 0x2b6   :  { %v268_v56 = vmul.f32 0.03125, %v264_v55 }
 0x2b8   :  { %v270_v57 = vadd.f32 1e-12, %v268_v56 }
 0x2b9   :  { %v267_v58 = vpop.xlane.xlu1 %266 }
 0x2ba   :  { %5202 = vrsqrt.f32 %v270_v57  ;;  %v269_v59 = vmul.f32 0.03125, %v267_v58 }
 0x2bc   :  { %v271_v60 = vadd.f32 1e-12, %v269_v59 }
 0x2be   :  { %5204 = vrsqrt.f32 %v271_v60 }
 0x2c4   :  { %v5203_v61 = vpop.eup %5202 }
 0x2c5   :  { %v274_v63 = vmul.f32 %v5203_v61, %v258_v41 }
 0x2c7   :  { %v282_v1 = vmul.f32 %v4427_v62, %v274_v63 }
 0x2c8   :  { %v5205_v2 = vpop.eup %5204 }
 0x2c9   :  { %v275_v3 = vmul.f32 %v5205_v2, %v259_v45  ;;  %v5566_v4 = vadd.f32 %v4428_v0, %v282_v1 }
 0x2cb   :  { %v283_v5 = vmul.f32 %v4427_v62, %v275_v3  ;;  %4741 = vmatprep.mubr.msk.f32.mxu1 %vm248_vm4, %v5566_v4 }
 0x2cd   :  { %v5570_v6 = vadd.f32 %v4428_v0, %v283_v5 }
 0x2cf   :  { %4742 = vmatmul.mubr.msk.f32.vlgmr.msra.gmra.mrb[0].mxu1 %vm248_vm4, %v5570_v6 }
 0x2d0   :  { %4751 = vmatprep.mubr.msk.f32.mxu1 %vm5361_vm5, %v5360_v22 }
 0x3a2   :  { %v4743_v8 = vpop.f32.mrb[0].mxu1 }
 0x3a3   :  { %v402_v9 = vpop.f32.mrb[1].mxu1  ;;  %v5583_v11 = vadd.f32 %v4743_v8, %v4429_v7 }
 0x3a4   :  { %v5579_v10 = vadd.f32 %v4429_v7, %v402_v9 }
 0x3a5   :  { %v5598_v15 = vmul.f32 0.35355338, %v5583_v11 }
 0x3a6   :  { %424 = vrot.lane.b32.xlu1 %v5579_v10, %s5362_s0  ;;  %v5589_v13 = vmul.f32 0.35355338, %v5579_v10 }
 0x3aa   :  { %503 = vrot.lane.b32.xlu1 %v5583_v11, %s5362_s0 }
 0x418   :  { %v425_v12 = vpop.permute.xlu1 %424 }
 0x419   :  { %4745 = vmatpush3.xpose.msk.msra.mxu0 %vm426_vm6, %v425_v12 }
 0x41a   :  { %4769 = vmatprep.subr.mxu0 %v5360_v22 }
 0x41c   :  { %v504_v14 = vpop.permute.xlu1 %503  ;;  %4747 = vmatmul.mubr.msk.f32.vlgmr.msra.gmra.mrb[2].mxu0 %vm426_vm6, %v5589_v13 }
 0x41d   :  { %4750 = vmatpush3.xpose.msk.msra.mxu1 %vm426_vm6, %v504_v14  ;;  %4771 = vmatprep.mubr.msk.f32.mxu0 %vm5361_vm5, %v5360_v22 }
 0x41e   :  { %4754 = vmatprep.subr.mxu1 %v5360_v22 }
 0x420   :  { %4752 = vmatmul.mubr.msk.f32.vlgmr.msra.gmra.mrb[2].mxu1 %vm426_vm6, %v5598_v15 }
 0x421   :  { %4756 = vmatprep.mubr.msk.f32.mxu1 %vm5361_vm5, %v5360_v22 }
 0x4ef   :  { %v498_v33 = vpop.f32.mrb[2].mxu0 }
 0x4f0   :  { %v499_v35 = vadd.f32 %v498_v33, %v5610_v32  ;;  %v4748_v36 = vpop.f32.mrb[3].mxu0 }
 0x4f2   :  { %v580_v23 = vsel %vm426_vm6, %v499_v35, -inf }
 0x4f3   :  { %v576_v37 = vpop.f32.mrb[2].mxu1  ;;  %581 = vmax.xlane.f32.xlu1 %v580_v23 }
 0x4f4   :  { %v577_v38 = vadd.f32 %v576_v37, %v5613_v34  ;;  %v4753_v39 = vpop.f32.mrb[3].mxu1 }
 0x4f6   :  { %v583_v40 = vsel %vm426_vm6, %v577_v38, -inf }
 0x4f7   :  { %584 = vmax.xlane.f32.xlu0 %v583_v40 }
 0x504   :  { %678 = vrot.lane.b32.xlu1 %v5583_v11, %s5364_s5 }
 0x50d   :  { %602 = vrot.lane.b32.xlu0 %v5579_v10, %s5364_s5 }
 0x511   :  { %756 = vrot.lane.b32.xlu0 %v5579_v10, %s5365_s9 }
 0x580   :  { %v582_v41 = vpop.xlane.xlu1 %581 }
 0x581   :  { %v586_v42 = vsub.f32 %v499_v35, %v582_v41 }
 0x583   :  { %v588_v45 = vmul.f32 1.442695, %v586_v42 }
 0x584   :  { %v585_v43 = vpop.xlane.xlu0 %584  ;;  %v679_v61 = vpop.permute.xlu1 %678 }
 0x585   :  { %v587_v44 = vsub.f32 %v577_v38, %v585_v43 }
 0x587   :  { %v590_v46 = vmul.f32 1.442695, %v587_v44 }
 0x588   :  { %v603_v47 = vpop.permute.xlu0 %602 }
 0x589   :  { %5206 = vpow2.f32 %v590_v46  ;;  %4755 = vmatpush3.msra.mxu1 %v603_v47 }
 0x58a   :  { %4759 = vmatprep.subr.mxu1 %v5360_v22  ;;  %5208 = vpow2.f32 %v588_v45 }
 0x58c   :  { %v757_v52 = vpop.permute.xlu0 %756 }
 0x593   :  { %v5207_v48 = vpop.eup %5206 }
 0x594   :  { %v595_v49 = vsel %vm426_vm6, %v5207_v48, 0.0  ;;  %v5209_v50 = vpop.eup %5208 }
 0x595   :  { %596 = vadd.xlane.f32.xlu0 %v595_v49  ;;  %v592_v51 = vsel %vm426_vm6, %v5209_v50, 0.0 }
 0x599   :  { %593 = vadd.xlane.f32.xlu0 %v592_v51 }
 0x5af   :  { %834 = vrot.lane.b32.xlu0 %v5583_v11, %s5365_s9 }
 0x5b3   :  { %754 = vrot.lane.b32.xlu0 %v5589_v13, %s5366_s13 }
 0x5b7   :  { %832 = vrot.lane.b32.xlu0 %v5598_v15, %s5366_s13 }
 0x622   :  { %v597_v53 = vpop.xlane.xlu0 %596 }
 0x626   :  { %v594_v54 = vpop.xlane.xlu0 %593 }
 0x627   :  { %5210 = vrcp.f32 %v594_v54 }
 0x628   :  { %5212 = vrcp.f32 %v597_v53 }
 0x62a   :  { %v835_v55 = vpop.permute.xlu0 %834 }
 0x62b   :  { %4770 = vmatpush3.xpose.msk.msra.mxu0 %vm426_vm6, %v835_v55 }
 0x62c   :  { %4779 = vmatprep.subr.mxu0 %v5360_v22 }
 0x62e   :  { %v755_v56 = vpop.permute.xlu0 %754 }
 0x631   :  { %v5211_v57 = vpop.eup %5210 }
 0x632   :  { %v833_v58 = vpop.permute.xlu0 %832  ;;  %v600_v59 = vmul.f32 %v5211_v57, %v5209_v50  ;;  %v5213_v60 = vpop.eup %5212 }
 0x633   :  { %4772 = vmatmul.mubr.msk.f32.vlgmr.msra.gmra.mrb[4].mxu0 %vm426_vm6, %v833_v58  ;;  %v601_v62 = vmul.f32 %v5213_v60, %v5207_v48 }
 0x634   :  { %4757 = vmatmul.mubr.msk.f32.vlgmr.msra.gmra.mrb[4].mxu1 %vm426_vm6, %v600_v59  ;;  %4781 = vmatprep.mubr.msk.f32.mxu0 %vm5361_vm5, %v5360_v22 }
 0x635   :  { %4760 = vmatpush3.msra.mxu1 %v679_v61  ;;  %4761 = vmatprep.mubr.msk.f32.mxu1 %vm5361_vm5, %v5360_v22 }
 0x636   :  { %4764 = vmatprep.subr.mxu1 %v5360_v22 }
 0x638   :  { %4762 = vmatmul.mubr.msk.f32.vlgmr.msra.gmra.mrb[6].mxu1 %vm426_vm6, %v601_v62 }
 0x639   :  { %4766 = vmatprep.mubr.msk.f32.mxu1 %vm5361_vm5, %v5360_v22 }
 0x63c   :  { %4765 = vmatpush3.xpose.msk.msra.mxu1 %vm426_vm6, %v757_v52 }
 0x63d   :  { %4774 = vmatprep.subr.mxu1 %v5360_v22 }
 0x63f   :  { %4767 = vmatmul.mubr.msk.f32.vlgmr.msra.gmra.mrb[8].mxu1 %vm426_vm6, %v755_v56 }
 0x640   :  { %4776 = vmatprep.mubr.msk.f32.mxu1 %vm5361_vm5, %v5360_v22 }
 0x706   :  { %v906_v63 = vpop.f32.mrb[4].mxu0 }
 0x707   :  { %v907_v0 = vadd.f32 %v906_v63, %v5613_v34  ;;  %v5652_v1 = vpop.f32.mrb[4].mxu1  ;;  %v4773_v2 = vpop.f32.mrb[5].mxu0 }
 0x708   :  { %v4758_v3 = vpop.f32.mrb[5].mxu1 }
 0x709   :  { %v913_v5 = vsel %vm426_vm6, %v907_v0, -inf }
 0x70a   :  { %914 = vmax.xlane.f32.xlu0 %v913_v5 }
 0x70b   :  { %v5655_v7 = vpop.f32.mrb[6].mxu1 }
 0x70c   :  { %v4763_v8 = vpop.f32.mrb[7].mxu1 }
 0x712   :  { %v828_v9 = vpop.f32.mrb[8].mxu1 }
 0x713   :  { %v829_v12 = vadd.f32 %v828_v9, %v5610_v32  ;;  %v4768_v14 = vpop.f32.mrb[9].mxu1 }
 0x715   :  { %v910_v16 = vsel %vm426_vm6, %v829_v12, -inf }
 0x716   :  { %911 = vmax.xlane.f32.xlu1 %v910_v16 }
 0x720   :  { %932 = vrot.lane.b32.xlu0 %v5579_v10, %s5367_s17 }
 0x797   :  { %v915_v17 = vpop.xlane.xlu0 %914 }
 0x798   :  { %v917_v18 = vsub.f32 %v907_v0, %v915_v17 }
 0x79a   :  { %v920_v19 = vmul.f32 1.442695, %v917_v18 }
 0x79b   :  { %v933_v20 = vpop.permute.xlu0 %932 }
 0x79c   :  { %5214 = vpow2.f32 %v920_v19  ;;  %4775 = vmatpush3.msra.mxu1 %v933_v20 }
 0x79d   :  { %4784 = vmatprep.subr.mxu1 %v5360_v22 }
 0x7a3   :  { %v912_v21 = vpop.xlane.xlu1 %911 }
 0x7a4   :  { %v916_v24 = vsub.f32 %v829_v12, %v912_v21 }
 0x7a6   :  { %v5215_v25 = vpop.eup %5214  ;;  %v918_v26 = vmul.f32 1.442695, %v916_v24 }
 0x7a7   :  { %v925_v27 = vsel %vm426_vm6, %v5215_v25, 0.0 }
 0x7a8   :  { %5216 = vpow2.f32 %v918_v26  ;;  %926 = vadd.xlane.f32.xlu1 %v925_v27 }
 0x7b2   :  { %v5217_v28 = vpop.eup %5216 }
 0x7b3   :  { %v922_v29 = vsel %vm426_vm6, %v5217_v28, 0.0 }
 0x7b4   :  { %923 = vadd.xlane.f32.xlu0 %v922_v29 }
 0x7b9   :  { %1008 = vrot.lane.b32.xlu1 %v5583_v11, %s5367_s17 }
 0x7bd   :  { %1086 = vrot.lane.b32.xlu1 %v5579_v10, %s5368_s21 }
 0x7c1   :  { %1084 = vrot.lane.b32.xlu1 %v5589_v13, %s5369_s25 }
 0x7ca   :  { %1164 = vrot.lane.b32.xlu0 %v5583_v11, %s5368_s21 }
 0x7ce   :  { %1162 = vrot.lane.b32.xlu0 %v5598_v15, %s5369_s25 }
 0x835   :  { %v927_v31 = vpop.xlane.xlu1 %926 }
 0x836   :  { %5218 = vrcp.f32 %v927_v31 }
 0x839   :  { %v1009_v33 = vpop.permute.xlu1 %1008 }
 0x83a   :  { %4780 = vmatpush3.msra.mxu0 %v1009_v33 }
 0x83b   :  { %4789 = vmatprep.subr.mxu0 %v5360_v22 }
 0x83d   :  { %v1087_v40 = vpop.permute.xlu1 %1086 }
 0x840   :  { %v5219_v35 = vpop.eup %5218 }
 0x841   :  { %v931_v36 = vmul.f32 %v5219_v35, %v5215_v25  ;;  %v924_v23 = vpop.xlane.xlu0 %923  ;;  %v1085_v42 = vpop.permute.xlu1 %1084 }
 0x842   :  { %5220 = vrcp.f32 %v924_v23 }
 0x843   :  { %4782 = vmatmul.mubr.msk.f32.vlgmr.msra.gmra.mrb[6].mxu0 %vm426_vm6, %v931_v36 }
 0x844   :  { %4791 = vmatprep.mubr.msk.f32.mxu0 %vm5361_vm5, %v5360_v22 }
 0x845   :  { %v1165_v37 = vpop.permute.xlu0 %1164 }
 0x846   :  { %4790 = vmatpush3.xpose.msk.msra.mxu0 %vm426_vm6, %v1165_v37 }
 0x847   :  { %4799 = vmatprep.subr.mxu0 %v5360_v22 }
 0x849   :  { %v1163_v38 = vpop.permute.xlu0 %1162 }
 0x84a   :  { %4792 = vmatmul.mubr.msk.f32.vlgmr.msra.gmra.mrb[8].mxu0 %vm426_vm6, %v1163_v38 }
 0x84b   :  { %4801 = vmatprep.mubr.msk.f32.mxu0 %vm5361_vm5, %v5360_v22 }
 0x84c   :  { %v5221_v39 = vpop.eup %5220 }
 0x84d   :  { %v930_v41 = vmul.f32 %v5221_v39, %v5217_v28 }
 0x84f   :  { %4777 = vmatmul.mubr.msk.f32.vlgmr.msra.gmra.mrb[10].mxu1 %vm426_vm6, %v930_v41 }
 0x850   :  { %4785 = vmatpush3.xpose.msk.msra.mxu1 %vm426_vm6, %v1087_v40  ;;  %4786 = vmatprep.mubr.msk.f32.mxu1 %vm5361_vm5, %v5360_v22 }
 0x851   :  { %4794 = vmatprep.subr.mxu1 %v5360_v22 }
 0x853   :  { %4787 = vmatmul.mubr.msk.f32.vlgmr.msra.gmra.mrb[12].mxu1 %vm426_vm6, %v1085_v42 }
 0x854   :  { %4796 = vmatprep.mubr.msk.f32.mxu1 %vm5361_vm5, %v5360_v22 }
 0x916   :  { %v5691_v43 = vpop.f32.mrb[6].mxu0 }
 0x917   :  { %v4783_v44 = vpop.f32.mrb[7].mxu0 }
 0x91d   :  { %v1236_v45 = vpop.f32.mrb[8].mxu0 }
 0x91e   :  { %v1237_v46 = vadd.f32 %v1236_v45, %v5613_v34  ;;  %v4793_v47 = vpop.f32.mrb[9].mxu0 }
 0x920   :  { %v1243_v48 = vsel %vm426_vm6, %v1237_v46, -inf }
 0x921   :  { %1244 = vmax.xlane.f32.xlu0 %v1243_v48 }
 0x922   :  { %v5695_v49 = vpop.f32.mrb[10].mxu1 }
 0x923   :  { %v4778_v50 = vpop.f32.mrb[11].mxu1 }
 0x926   :  { %v1158_v51 = vpop.f32.mrb[12].mxu1 }
 0x927   :  { %v1159_v52 = vadd.f32 %v1158_v51, %v5610_v32  ;;  %v4788_v53 = vpop.f32.mrb[13].mxu1  ;;  %v1776_v51 = vld [vmem:[%s5432_s14] sm:$0xff] }
 0x928   :  { %v1778_v53 = vld [vmem:[%s5432_s14 + $0x10] sm:$0xff] }
 0x929   :  { %v1240_v54 = vsel %vm426_vm6, %v1159_v52, -inf }
 0x92a   :  { %1241 = vmax.xlane.f32.xlu1 %v1240_v54 }
 0x937   :  { %1262 = vrot.lane.b32.xlu0 %v5579_v10, %s5370_s29 }
 0x9ae   :  { %v1245_v55 = vpop.xlane.xlu0 %1244 }
 0x9af   :  { %v1247_v56 = vsub.f32 %v1237_v46, %v1245_v55  ;;  %v1779_v55 = vld [vmem:[%s5432_s14 + $0x18] sm:$0xff] }
 0x9b1   :  { %v1250_v57 = vmul.f32 1.442695, %v1247_v56  ;;  %v5066_v56 = vpack.c.bf16 %v1779_v55, %v1778_v53  ;;  %v2061_v55 = vld [vmem:[%s6095_s22 + $0x8] sm:$0xff] }
 0x9b2   :  { %v1263_v58 = vpop.permute.xlu0 %1262 }
 0x9b3   :  { %5222 = vpow2.f32 %v1250_v57  ;;  %4795 = vmatpush3.msra.mxu1 %v1263_v58 }
 0x9b4   :  { %4804 = vmatprep.subr.mxu1 %v5360_v22 }
 0x9b7   :  { %v1242_v59 = vpop.xlane.xlu1 %1241 }
 0x9b8   :  { %v1246_v60 = vsub.f32 %v1159_v52, %v1242_v59  ;;  %v1777_v52 = vld [vmem:[%s5432_s14 + $0x8] sm:$0xff] }
 0x9b9   :  { %v5062_v54 = vpack.c.bf16 %v1777_v52, %v1776_v51 }
 0x9ba   :  { %v1248_v61 = vmul.f32 1.442695, %v1246_v60 }
 0x9bc   :  { %5224 = vpow2.f32 %v1248_v61 }
 0x9bd   :  { %v5223_v62 = vpop.eup %5222 }
 0x9be   :  { %v1255_v63 = vsel %vm426_vm6, %v5223_v62, 0.0 }
 0x9bf   :  { %1256 = vadd.xlane.f32.xlu1 %v1255_v63 }
 0x9c6   :  { %v5225_v0 = vpop.eup %5224 }
 0x9c7   :  { %v1252_v2 = vsel %vm426_vm6, %v5225_v0, 0.0 }
 0x9c8   :  { %1253 = vadd.xlane.f32.xlu0 %v1252_v2 }
 0x9d0   :  { %1338 = vrot.lane.b32.xlu1 %v5583_v11, %s5370_s29 }
 0x9d4   :  { %1416 = vrot.lane.b32.xlu1 %v5579_v10, %s5371_s7 }
 0x9d8   :  { %1414 = vrot.lane.b32.xlu1 %v5589_v13, %s5372_s10 }
 0x9de   :  { %1494 = vrot.lane.b32.xlu0 %v5583_v11, %s5371_s7 }
 0x9e2   :  { %1492 = vrot.lane.b32.xlu0 %v5598_v15, %s5372_s10 }
 0xa4c   :  { %v1257_v3 = vpop.xlane.xlu1 %1256 }
 0xa4d   :  { %5226 = vrcp.f32 %v1257_v3 }
 0xa50   :  { %v1339_v5 = vpop.permute.xlu1 %1338 }
 0xa51   :  { %4800 = vmatpush3.msra.mxu0 %v1339_v5 }
 0xa52   :  { %4809 = vmatprep.subr.mxu0 %v5360_v22 }
 0xa54   :  { %v1417_v16 = vpop.permute.xlu1 %1416 }
 0xa55   :  { %v1254_v8 = vpop.xlane.xlu0 %1253 }
 0xa56   :  { %5228 = vrcp.f32 %v1254_v8 }
 0xa57   :  { %v5227_v9 = vpop.eup %5226 }
 0xa58   :  { %v1261_v12 = vmul.f32 %v5227_v9, %v5223_v62  ;;  %v1415_v18 = vpop.permute.xlu1 %1414 }
 0xa59   :  { %v1495_v14 = vpop.permute.xlu0 %1494 }
 0xa5a   :  { %4802 = vmatmul.mubr.msk.f32.vlgmr.msra.gmra.mrb[10].mxu0 %vm426_vm6, %v1261_v12 }
 0xa5b   :  { %4810 = vmatpush3.xpose.msk.msra.mxu0 %vm426_vm6, %v1495_v14  ;;  %4811 = vmatprep.mubr.msk.f32.mxu0 %vm5361_vm5, %v5360_v22 }
 0xa5c   :  { %4819 = vmatprep.subr.mxu0 %v5360_v22 }
 0xa5d   :  { %v1493_v13 = vpop.permute.xlu0 %1492 }
 0xa5e   :  { %4812 = vmatmul.mubr.msk.f32.vlgmr.msra.gmra.mrb[12].mxu0 %vm426_vm6, %v1493_v13 }
 0xa5f   :  { %4821 = vmatprep.mubr.msk.f32.mxu0 %vm5361_vm5, %v5360_v22 }
 0xa60   :  { %v5229_v15 = vpop.eup %5228 }
 0xa61   :  { %v1260_v17 = vmul.f32 %v5229_v15, %v5225_v0  ;;  %v4456_v15 = vld [vmem:[%s5437_s19] ss:$0 sm:$0xff] }
 0xa63   :  { %4797 = vmatmul.mubr.msk.f32.vlgmr.msra.gmra.mrb[14].mxu1 %vm426_vm6, %v1260_v17 }
 0xa64   :  { %4805 = vmatpush3.xpose.msk.msra.mxu1 %vm426_vm6, %v1417_v16  ;;  %4806 = vmatprep.mubr.msk.f32.mxu1 %vm5361_vm5, %v5360_v22 }
 0xa65   :  { %4814 = vmatprep.subr.mxu1 %v5360_v22 }
 0xa67   :  { %4807 = vmatmul.mubr.msk.f32.vlgmr.msra.gmra.mrb[16].mxu1 %vm426_vm6, %v1415_v18 }
 0xa68   :  { %4816 = vmatprep.mubr.msk.f32.mxu1 %vm5361_vm5, %v5360_v22 }
 0xb2d   :  { %v1410_v19 = vpop.f32.mrb[10].mxu0 }
 0xb2e   :  { %v4803_v20 = vpop.f32.mrb[11].mxu0 }
 0xb31   :  { %v1566_v21 = vpop.f32.mrb[12].mxu0 }
 0xb32   :  { %v1567_v24 = vadd.f32 %v1566_v21, %v5613_v34  ;;  %v4813_v25 = vpop.f32.mrb[13].mxu0 }
 0xb34   :  { %v1573_v26 = vsel %vm426_vm6, %v1567_v24, -inf }
 0xb35   :  { %1574 = vmax.xlane.f32.xlu0 %v1573_v26 }
 0xb36   :  { %v1334_v27 = vpop.f32.mrb[14].mxu1 }
 0xb37   :  { %v4798_v28 = vpop.f32.mrb[15].mxu1 }
 0xb3a   :  { %v1488_v29 = vpop.f32.mrb[16].mxu1 }
 0xb3b   :  { %v1489_v31 = vadd.f32 %v1488_v29, %v5610_v32  ;;  %v4808_v33 = vpop.f32.mrb[17].mxu1 }
 0xb3d   :  { %v1570_v35 = vsel %vm426_vm6, %v1489_v31, -inf }
 0xb3e   :  { %1571 = vmax.xlane.f32.xlu1 %v1570_v35  ;;  %v1914_v35 = vld [vmem:[%s5452_s6] sm:$0xff] }
 0xbc2   :  { %v1575_v36 = vpop.xlane.xlu0 %1574 }
 0xbc3   :  { %v1577_v23 = vsub.f32 %v1567_v24, %v1575_v36  ;;  %v1915_v36 = vld [vmem:[%s5452_s6 + $0x8] sm:$0xff] }
 0xbc5   :  { %v1580_v37 = vmul.f32 1.442695, %v1577_v23  ;;  %v5070_v23 = vpack.c.bf16 %v1915_v36, %v1914_v35 }
 0xbc7   :  { %5230 = vpow2.f32 %v1580_v37  ;;  %v1916_v37 = vld [vmem:[%s5452_s6 + $0x10] sm:$0xff] }
 0xbcb   :  { %v1572_v38 = vpop.xlane.xlu1 %1571 }
 0xbcc   :  { %v1576_v39 = vsub.f32 %v1489_v31, %v1572_v38  ;;  %v1917_v38 = vld [vmem:[%s5452_s6 + $0x18] sm:$0xff] }
 0xbce   :  { %v1578_v40 = vmul.f32 1.442695, %v1576_v39  ;;  %v5074_v39 = vpack.c.bf16 %v1917_v38, %v1916_v37 }
 0xbd0   :  { %5232 = vpow2.f32 %v1578_v40 }
 0xbd1   :  { %v5231_v41 = vpop.eup %5230 }
 0xbd2   :  { %v1585_v42 = vsel %vm426_vm6, %v5231_v41, 0.0 }
 0xbd3   :  { %1586 = vadd.xlane.f32.xlu1 %v1585_v42 }
 0xbda   :  { %v5233_v44 = vpop.eup %5232 }
 0xbdb   :  { %v1582_v45 = vsel %vm426_vm6, %v5233_v44, 0.0 }
 0xbdc   :  { %1583 = vadd.xlane.f32.xlu0 %v1582_v45 }
 0xbe4   :  { %1668 = vrot.lane.b32.xlu1 %v5583_v11, %s5373_s11 }
 0xbe8   :  { %1746 = vrot.lane.b32.xlu1 %v5695_v49, %s5374_s15 }
 0xbec   :  { %1754 = vrot.lane.b32.xlu1 %v1334_v27, %s5375_s16 }
 0xbf2   :  { %1592 = vrot.lane.b32.xlu0 %v5579_v10, %s5373_s11 }
 0xbf6   :  { %1748 = vrot.lane.b32.xlu0 %v5691_v43, %s5374_s15 }
 0xbfa   :  { %1756 = vrot.lane.b32.xlu0 %v1410_v19, %s5375_s16 }
 0xc60   :  { %v1587_v46 = vpop.xlane.xlu1 %1586 }
 0xc61   :  { %5234 = vrcp.f32 %v1587_v46 }
 0xc64   :  { %v1669_v11 = vpop.permute.xlu1 %1668 }
 0xc65   :  { %4820 = vmatpush3.msra.mxu0 %v1669_v11 }
 0xc66   :  { %5071 = vmatprep.subr.bf16.mxu0 %v5070_v23 }
 0xc68   :  { %v1747_v62 = vpop.permute.xlu1 %1746 }
 0xc69   :  { %v1584_v47 = vpop.xlane.xlu0 %1583  ;;  %v1768_v2 = vsel %vm426_vm6, %v5652_v1, %v1747_v62 }
 0xc6a   :  { %5236 = vrcp.f32 %v1584_v47  ;;  %v4459_v47 = vld [vmem:[%s5442_s24] ss:$0 sm:$0xff] }
 0xc6b   :  { %v5235_v48 = vpop.eup %5234 }
 0xc6c   :  { %v1591_v49 = vmul.f32 %v5235_v48, %v5231_v41  ;;  %v1755_v0 = vpop.permute.xlu1 %1754 }
 0xc6d   :  { %v1593_v50 = vpop.permute.xlu0 %1592  ;;  %v1771_v5 = vsel %vm1770_vm7, %v1768_v2, %v1755_v0  ;;  %v2067_v0 = vld [vmem:[%s6095_s22 + $0x38] sm:$0xff] }
 0xc6e   :  { %4815 = vmatpush3.msra.mxu1 %v1593_v50  ;;  %4822 = vmatmul.mubr.msk.f32.vlgmr.msra.gmra.mrb[14].mxu0 %vm426_vm6, %v1591_v49 }
 0xc6f   :  { %5063 = vmatprep.subr.bf16.mxu1 %v5062_v54  ;;  %5073 = vmatpush3.bf16.msra.mxu0 %v5070_v23 }
 0xc70   :  { %5075 = vmatprep.subr.bf16.mxu0 %v5074_v39 }
 0xc71   :  { %v1749_v61 = vpop.permute.xlu0 %1748 }
 0xc72   :  { %v1769_v8 = vsel %vm426_vm6, %v5655_v7, %v1749_v61  ;;  %v2065_v61 = vld [vmem:[%s6095_s22 + $0x28] sm:$0xff] }
 0xc73   :  { %5077 = vmatpush3.bf16.msra.mxu0 %v5074_v39 }
 0xc74   :  { %v5237_v10 = vpop.eup %5236 }
 0xc75   :  { %v1590_v43 = vmul.f32 %v5237_v10, %v5233_v44  ;;  %v1757_v63 = vpop.permute.xlu0 %1756  ;;  %v4460_v10 = vld [vmem:[%s5447_s30] ss:$0 sm:$0xff] }
 0xc76   :  { %v1772_v12 = vsel %vm1770_vm7, %v1769_v8, %v1757_v63  ;;  %v2066_v63 = vld [vmem:[%s6095_s22 + $0x30] sm:$0xff] }
 0xc77   :  { %4817 = vmatmul.mubr.msk.f32.vlgmr.msra.gmra.mrb[18].mxu1 %vm426_vm6, %v1590_v43  ;;  %v5090_v2 = vpack.c.bf16 %v2067_v0, %v2066_v63  ;;  %v4468_v63 = vld [vmem:[%s6097_s26] ss:$0 sm:$0xff] }
 0xc78   :  { %5065 = vmatpush3.bf16.msra.mxu1 %v5062_v54  ;;  %v2060_v54 = vld [vmem:[%s6095_s22] sm:$0xff] }
 0xc79   :  { %5067 = vmatprep.subr.bf16.mxu1 %v5066_v56 }
 0xc7c   :  { %5069 = vmatpush3.bf16.msra.mxu1 %v5066_v56  ;;  %v5078_v56 = vpack.c.bf16 %v2061_v55, %v2060_v54 }
 0xc7e   :  { %5079 = vmatprep.subr.bf16.mxu1 %v5078_v56 }
 0xd41   :  { %v1740_v57 = vpop.f32.mrb[14].mxu0 }
 0xd42   :  { %1764 = vrot.lane.b32.xlu0 %v1740_v57, %s5376_s18  ;;  %v4823_v58 = vpop.f32.mrb[15].mxu0  ;;  %v2062_v57 = vld [vmem:[%s6095_s22 + $0x10] sm:$0xff] }
 0xd43   :  { %v2063_v58 = vld [vmem:[%s6095_s22 + $0x18] sm:$0xff] }
 0xd4a   :  { %v1664_v59 = vpop.f32.mrb[18].mxu1 }
 0xd4b   :  { %1762 = vrot.lane.b32.xlu1 %v1664_v59, %s5376_s18  ;;  %v4818_v60 = vpop.f32.mrb[19].mxu1  ;;  %v5082_v59 = vpack.c.bf16 %v2063_v58, %v2062_v57 }
 0xd4c   :  { %v2064_v60 = vld [vmem:[%s6095_s22 + $0x20] sm:$0xff] }
 0xd4d   :  { %v5086_v62 = vpack.c.bf16 %v2065_v61, %v2064_v60 }
 0xdb4   :  { %v1765_v3 = vpop.permute.xlu0 %1764 }
 0xdb5   :  { %v1775_v13 = vsel %vm1773_vm8, %v1772_v12, %v1765_v3  ;;  %v4461_v3 = vld [vmem:[%s6096_s23] ss:$0 sm:$0xff] }
 0xdbd   :  { %v1763_v9 = vpop.permute.xlu1 %1762 }
 0xdbe   :  { %v1774_v14 = vsel %vm1773_vm8, %v1771_v5, %v1763_v9 }
 0xdbf   :  { %4832 = vmatprep.mubr.msk.f32.mxu1 %vm248_vm4, %v1774_v14 }
 0xdc0   :  { %4833 = vmatmul.mubr.msk.f32.vlgmr.msra.gmra.mrb[20].mxu1 %vm248_vm4, %v1775_v13 }
 0xdc1   :  { %5081 = vmatpush3.bf16.msra.mxu1 %v5078_v56 }
 0xdc2   :  { %5083 = vmatprep.subr.bf16.mxu1 %v5082_v59 }
 0xdc5   :  { %5085 = vmatpush3.bf16.msra.mxu1 %v5082_v59 }
 0xdc6   :  { %5087 = vmatprep.subr.bf16.mxu1 %v5086_v62 }
 0xdc9   :  { %5089 = vmatpush3.bf16.msra.mxu1 %v5086_v62 }
 0xdca   :  { %5091 = vmatprep.subr.bf16.mxu1 %v5090_v2 }
 0xdcd   :  { %5093 = vmatpush3.bf16.msra.mxu1 %v5090_v2 }
 0xdce   :  { %4886 = vmatprep.subr.mxu1 %v5360_v22 }
 0xe93   :  { %v4834_v1 = vpop.f32.mrb[20].mxu1 }
 0xe94   :  { %v1865_v16 = vadd.f32 %v4834_v1, %v4456_v15  ;;  %v1859_v17 = vpop.f32.mrb[21].mxu1 }
 0xe95   :  { %v1860_v18 = vadd.f32 %v4456_v15, %v1859_v17 }
 0xe96   :  { %v1869_v19 = vadd.f32 %v1865_v16, %v5570_v6 }
 0xe97   :  { %v1868_v7 = vadd.f32 %v1860_v18, %v5566_v4 }
 0xe98   :  { %v1875_v20 = vsel %vm248_vm4, %v1869_v19, 0.0 }
 0xe99   :  { %1876 = vadd.xlane.f32.xlu0 %v1875_v20  ;;  %v1872_v21 = vsel %vm248_vm4, %v1868_v7, 0.0 }
 0xe9a   :  { %1873 = vadd.xlane.f32.xlu1 %v1872_v21 }
 0xf26   :  { %v1877_v24 = vpop.xlane.xlu0 %1876 }
 0xf27   :  { %v1879_v25 = vmul.f32 0.03125, %v1877_v24  ;;  %v1874_v26 = vpop.xlane.xlu1 %1873 }
 0xf28   :  { %v1878_v27 = vmul.f32 0.03125, %v1874_v26 }
 0xf29   :  { %v1881_v28 = vsub.f32 %v1869_v19, %v1879_v25 }
 0xf2a   :  { %v1880_v29 = vsub.f32 %v1868_v7, %v1878_v27 }
 0xf2b   :  { %v1883_v31 = vmul.f32 %v1881_v28, %v1881_v28 }
 0xf2c   :  { %v1882_v6 = vmul.f32 %v1880_v29, %v1880_v29 }
 0xf2d   :  { %v1887_v4 = vsel %vm248_vm4, %v1883_v31, 0.0 }
 0xf2e   :  { %1888 = vadd.xlane.f32.xlu1 %v1887_v4  ;;  %v1884_v33 = vsel %vm248_vm4, %v1882_v6, 0.0 }
 0xf2f   :  { %1885 = vadd.xlane.f32.xlu0 %v1884_v33 }
 0xfbb   :  { %v1889_v40 = vpop.xlane.xlu1 %1888 }
 0xfbc   :  { %v1891_v41 = vmul.f32 0.03125, %v1889_v40  ;;  %v1886_v42 = vpop.xlane.xlu0 %1885 }
 0xfbd   :  { %v1890_v44 = vmul.f32 0.03125, %v1886_v42 }
 0xfbe   :  { %v1893_v45 = vadd.f32 1e-12, %v1891_v41 }
 0xfbf   :  { %v1892_v46 = vadd.f32 1e-12, %v1890_v44 }
 0xfc0   :  { %5238 = vrsqrt.f32 %v1893_v45 }
 0xfc1   :  { %5240 = vrsqrt.f32 %v1892_v46 }
 0xfca   :  { %v5239_v11 = vpop.eup %5238 }
 0xfcb   :  { %v5241_v48 = vpop.eup %5240  ;;  %v1897_v49 = vmul.f32 %v5239_v11, %v1881_v28 }
 0xfcc   :  { %v1896_v50 = vmul.f32 %v5241_v48, %v1880_v29 }
 0xfcd   :  { %v1905_v43 = vmul.f32 %v4459_v47, %v1897_v49 }
 0xfce   :  { %v1904_v51 = vmul.f32 %v4459_v47, %v1896_v50 }
 0xfcf   :  { %v5780_v53 = vadd.f32 %v4460_v10, %v1905_v43 }
 0xfd0   :  { %v5778_v52 = vadd.f32 %v4460_v10, %v1904_v51 }
 0xfd2   :  { %4843 = vmatprep.mubr.msk.f32.mxu0 %vm248_vm4, %v5778_v52 }
 0xfd3   :  { %4844 = vmatmul.mubr.msk.f32.vlgmr.msra.gmra.mrb[16].mxu0 %vm248_vm4, %v5780_v53 }
0x10a6   :  { %v4845_v5 = vpop.f32.mrb[16].mxu0 }
0x10a7   :  { %v2003_v8 = vadd.f32 %v4845_v5, %v4461_v3  ;;  %v1997_v9 = vpop.f32.mrb[17].mxu0 }
0x10a8   :  { %v1998_v12 = vadd.f32 %v4461_v3, %v1997_v9 }
0x10a9   :  { %v2009_v14 = vmul.f32 0.70710677, %v2003_v8  ;;  %v2007_v60 = vmul.f32 0.5, %v2003_v8 }
0x10aa   :  { %v2008_v13 = vmul.f32 0.70710677, %v1998_v12  ;;  %v2006_v58 = vmul.f32 0.5, %v1998_v12 }
0x10ab   :  { %v2011_v15 = vand.u32 2147483647, %v2009_v14  ;;  %v2039_v7 = vmul.f32 %v2009_v14, %v2009_v14  ;;  %vm2051_vm9 = vcmp.ge.f32.partialorder %v2009_v14, 0.0 }
0x10ac   :  { %v2010_v1 = vand.u32 2147483647, %v2008_v13  ;;  %v2038_v20 = vmul.f32 %v2008_v13, %v2008_v13  ;;  %vm2050_vm10 = vcmp.ge.f32.partialorder %v2008_v13, 0.0 }
0x10ad   :  { %v2013_v16 = vmul.f32 0.3275911, %v2011_v15  ;;  %v2041_v24 = vsub.f32 0.0, %v2039_v7 }
0x10ae   :  { %v2012_v17 = vmul.f32 0.3275911, %v2010_v1  ;;  %v2040_v27 = vsub.f32 0.0, %v2038_v20  ;;  %v4473_v20 = vld [vmem:[%s5422_s3 + $0x20] sm:$0xff] }
0x10af   :  { %v2015_v18 = vadd.f32 1.0, %v2013_v16  ;;  %v2044_v31 = vmul.f32 1.442695, %v2041_v24 }
0x10b0   :  { %v2014_v19 = vadd.f32 1.0, %v2012_v17  ;;  %v2042_v33 = vmul.f32 1.442695, %v2040_v27 }
0x10b1   :  { %5242 = vrcp.f32 %v2015_v18 }
0x10b2   :  { %5244 = vrcp.f32 %v2014_v19 }
0x10b3   :  { %5246 = vpow2.f32 %v2044_v31 }
0x10b4   :  { %5248 = vpow2.f32 %v2042_v33 }
0x10bb   :  { %v5243_v21 = vpop.eup %5242 }
0x10bc   :  { %v2021_v25 = vmul.f32 1.0614054, %v5243_v21  ;;  %v5245_v26 = vpop.eup %5244 }
0x10bd   :  { %v2020_v29 = vmul.f32 1.0614054, %v5245_v26  ;;  %v5247_v11 = vpop.eup %5246 }
0x10be   :  { %v4465_v28 = vadd.f32 -1.4531521, %v2021_v25  ;;  %v5249_v49 = vpop.eup %5248  ;;  %v4475_v25 = vld [vmem:[%s5422_s3 + $0x30] sm:$0xff] }
0x10bf   :  { %v4464_v4 = vadd.f32 -1.4531521, %v2020_v29 }
0x10c0   :  { %v2025_v6 = vmul.f32 %v5243_v21, %v4465_v28 }
0x10c1   :  { %v2024_v36 = vmul.f32 %v5245_v26, %v4464_v4 }
0x10c2   :  { %v2027_v35 = vadd.f32 1.4214138, %v2025_v6 }
0x10c3   :  { %v2026_v37 = vadd.f32 1.4214138, %v2024_v36  ;;  %v4471_v36 = vld [vmem:[%s6098_s28] ss:$0 sm:$0xff] }
0x10c4   :  { %v2029_v23 = vmul.f32 %v5243_v21, %v2027_v35 }
0x10c5   :  { %v2028_v39 = vmul.f32 %v5245_v26, %v2026_v37 }
0x10c6   :  { %v4467_v38 = vadd.f32 -0.28449672, %v2029_v23 }
0x10c7   :  { %v4466_v41 = vadd.f32 -0.28449672, %v2028_v39  ;;  %v4472_v39 = vld [vmem:[%s6099_s1] ss:$0 sm:$0xff] }
0x10c8   :  { %v2033_v40 = vmul.f32 %v5243_v21, %v4467_v38 }
0x10c9   :  { %v2032_v44 = vmul.f32 %v5245_v26, %v4466_v41 }
0x10ca   :  { %v2035_v42 = vadd.f32 0.2548296, %v2033_v40 }
0x10cb   :  { %v2034_v46 = vadd.f32 0.2548296, %v2032_v44 }
0x10cc   :  { %v2037_v45 = vmul.f32 %v5243_v21, %v2035_v42  ;;  %v4474_v21 = vld [vmem:[%s5422_s3 + $0x28] sm:$0xff] }
0x10cd   :  { %v2036_v48 = vmul.f32 %v5245_v26, %v2034_v46  ;;  %v5094_v24 = vpack.c.bf16 %v4474_v21, %v4473_v20  ;;  %v4476_v26 = vld [vmem:[%s5422_s3 + $0x38] sm:$0xff]  ;;  %s6100_s3 = sld [smem:[#allocation10_spill]] }
0x10ce   :  { %v2047_v47 = vmul.f32 %v5247_v11, %v2037_v45  ;;  %v5098_v27 = vpack.c.bf16 %v4476_v26, %v4475_v25  ;;  %v4478_v45 = vld [vmem:[%s5427_s8 + $0x1] ss:$0 sm:$0xff]  ;;  %s6101_s8 = sld [smem:[#allocation16_spill]] }
0x10cf   :  { %v2046_v10 = vmul.f32 %v5249_v49, %v2036_v48  ;;  %5095 = vmatprep.subr.bf16.mxu0 %v5094_v24 }
0x10d0   :  { %v2049_v50 = vsub.f32 1.0, %v2047_v47  ;;  %5097 = vmatpush3.bf16.msra.mxu0 %v5094_v24 }
0x10d1   :  { %v2048_v51 = vsub.f32 1.0, %v2046_v10  ;;  %5099 = vmatprep.subr.bf16.mxu0 %v5098_v27 }
0x10d2   :  { %v2053_v43 = vsub.f32 0.0, %v2049_v50 }
0x10d3   :  { %v2052_v55 = vsub.f32 0.0, %v2048_v51 }
0x10d4   :  { %v2055_v54 = vsel %vm2051_vm9, %v2049_v50, %v2053_v43  ;;  %5101 = vmatpush3.bf16.msra.mxu0 %v5098_v27 }
0x10d5   :  { %v2057_v56 = vadd.f32 1.0, %v2055_v54  ;;  %v2054_v57 = vsel %vm2050_vm10, %v2048_v51, %v2052_v55  ;;  %4876 = vmatprep.subr.mxu0 %v5360_v22 }
0x10d6   :  { %v2056_v59 = vadd.f32 1.0, %v2054_v57 }
0x10d7   :  { %v2059_v62 = vmul.f32 %v2057_v56, %v2007_v60 }
0x10d8   :  { %v2058_v61 = vmul.f32 %v2056_v59, %v2006_v58 }
0x10da   :  { %4862 = vmatprep.mubr.msk.f32.mxu1 %vm2075_vm11, %v2058_v61 }
0x10db   :  { %4863 = vmatmul.mubr.msk.f32.vlgmr.msra.gmra.mrb[22].mxu1 %vm2075_vm11, %v2059_v62 }
0x10dc   :  { %4888 = vmatprep.mubr.msk.f32.mxu1 %vm5361_vm5, %v5360_v22 }
0x11ae   :  { %v4864_v0 = vpop.f32.mrb[22].mxu1 }
0x11af   :  { %v2154_v2 = vadd.f32 %v4864_v0, %v4468_v63  ;;  %v2148_v3 = vpop.f32.mrb[23].mxu1 }
0x11b0   :  { %v2149_v5 = vadd.f32 %v4468_v63, %v2148_v3 }
0x11b1   :  { %v2158_v9 = vadd.f32 %v2154_v2, %v5780_v53 }
0x11b2   :  { %v2157_v12 = vadd.f32 %v2149_v5, %v5778_v52 }
0x11b3   :  { %v2164_v8 = vsel %vm248_vm4, %v2158_v9, 0.0 }
0x11b4   :  { %2165 = vadd.xlane.f32.xlu1 %v2164_v8  ;;  %v2161_v14 = vsel %vm248_vm4, %v2157_v12, 0.0 }
0x11b5   :  { %2162 = vadd.xlane.f32.xlu0 %v2161_v14 }
0x1241   :  { %v2166_v13 = vpop.xlane.xlu1 %2165 }
0x1242   :  { %v2168_v15 = vmul.f32 0.03125, %v2166_v13  ;;  %v2163_v1 = vpop.xlane.xlu0 %2162 }
0x1243   :  { %v2167_v16 = vmul.f32 0.03125, %v2163_v1 }
0x1244   :  { %v2170_v17 = vsub.f32 %v2158_v9, %v2168_v15 }
0x1245   :  { %v2169_v18 = vsub.f32 %v2157_v12, %v2167_v16 }
0x1246   :  { %v2172_v19 = vmul.f32 %v2170_v17, %v2170_v17 }
0x1247   :  { %v2171_v53 = vmul.f32 %v2169_v18, %v2169_v18 }
0x1248   :  { %v2176_v52 = vsel %vm248_vm4, %v2172_v19, 0.0 }
0x1249   :  { %2177 = vadd.xlane.f32.xlu1 %v2176_v52  ;;  %v2173_v7 = vsel %vm248_vm4, %v2171_v53, 0.0 }
0x124a   :  { %2174 = vadd.xlane.f32.xlu0 %v2173_v7 }
0x12d6   :  { %v2178_v28 = vpop.xlane.xlu1 %2177 }
0x12d7   :  { %v2180_v29 = vmul.f32 0.03125, %v2178_v28  ;;  %v2175_v31 = vpop.xlane.xlu0 %2174 }
0x12d8   :  { %v2179_v6 = vmul.f32 0.03125, %v2175_v31 }
0x12d9   :  { %v2182_v4 = vadd.f32 1e-12, %v2180_v29 }
0x12da   :  { %v2181_v33 = vadd.f32 1e-12, %v2179_v6 }
0x12db   :  { %5250 = vrsqrt.f32 %v2182_v4 }
0x12dc   :  { %5252 = vrsqrt.f32 %v2181_v33 }
0x12e5   :  { %v5251_v35 = vpop.eup %5250 }
0x12e6   :  { %v5253_v23 = vpop.eup %5252  ;;  %v2186_v37 = vmul.f32 %v5251_v35, %v2170_v17 }
0x12e7   :  { %v2185_v38 = vmul.f32 %v5253_v23, %v2169_v18 }
0x12e8   :  { %v2194_v40 = vmul.f32 %v4471_v36, %v2186_v37 }
0x12e9   :  { %v2193_v41 = vmul.f32 %v4471_v36, %v2185_v38 }
0x12ea   :  { %v5816_v44 = vadd.f32 %v4472_v39, %v2194_v40 }
0x12eb   :  { %v5814_v42 = vadd.f32 %v4472_v39, %v2193_v41 }
0x12ed   :  { %4873 = vmatprep.mubr.msk.f32.mxu0 %vm248_vm4, %v5814_v42 }
0x12ee   :  { %4874 = vmatmul.mubr.msk.f32.vlgmr.msra.gmra.mrb[18].mxu0 %vm248_vm4, %v5816_v44 }
0x12ef   :  { %4878 = vmatprep.mubr.msk.f32.mxu0 %vm5361_vm5, %v5360_v22 }
0x13c1   :  { %v4875_v46 = vpop.f32.mrb[18].mxu0 }
0x13c2   :  { %v5825_v11 = vadd.f32 %v4875_v46, %v4478_v45  ;;  %v2288_v47 = vpop.f32.mrb[19].mxu0 }
0x13c3   :  { %v5827_v48 = vadd.f32 %v4478_v45, %v2288_v47 }
0x13c4   :  { %2378 = vrot.lane.b32.xlu1 %v5825_v11, %s5362_s0  ;;  %v5844_v43 = vmul.f32 0.35355338, %v5825_v11 }
0x13c5   :  { %2300 = vrot.lane.b32.xlu0 %v5827_v48, %s5362_s0  ;;  %v5835_v50 = vmul.f32 0.35355338, %v5827_v48  ;;  %s4386_s0 = sshll.u32 %s5378_s2, 4  ;;  %s4387_s0 = int_to_ptr.vmem [resolvable:$true] %s4386_s0 }
0x13c6   :  { %p5311_p1 = scmp.lt.s32.totalorder %s4387_s0, %s4387_s0 }
0x1436   :  { %v2379_v10 = vpop.permute.xlu1 %2378 }
0x1437   :  { %v2301_v49 = vpop.permute.xlu0 %2300 }
0x1438   :  { %4877 = vmatpush3.xpose.msk.msra.mxu0 %vm426_vm6, %v2301_v49 }
0x1439   :  { %4881 = vmatprep.subr.mxu0 %v5360_v22 }
0x143b   :  { %4879 = vmatmul.mubr.msk.f32.vlgmr.msra.gmra.mrb[20].mxu0 %vm426_vm6, %v5835_v50 }
0x143c   :  { %4882 = vmatpush3.xpose.msk.msra.mxu0 %vm426_vm6, %v2379_v10  ;;  %4883 = vmatprep.mubr.msk.f32.mxu0 %vm5361_vm5, %v5360_v22 }
0x143d   :  { %4891 = vmatprep.subr.mxu0 %v5360_v22 }
0x143f   :  { %4884 = vmatmul.mubr.msk.f32.vlgmr.msra.gmra.mrb[22].mxu0 %vm426_vm6, %v5844_v43 }
0x1440   :  { %4893 = vmatprep.mubr.msk.f32.mxu0 %vm5361_vm5, %v5360_v22 }
0x150e   :  { %v2373_v51 = vpop.f32.mrb[20].mxu0 }
0x150f   :  { %v2374_v54 = vadd.f32 %v2373_v51, %v5610_v32  ;;  %v4880_v55 = vpop.f32.mrb[21].mxu0 }
0x1511   :  { %v2455_v56 = vsel %vm426_vm6, %v2374_v54, -inf }
0x1512   :  { %2456 = vmax.xlane.f32.xlu1 %v2455_v56  ;;  %v2451_v57 = vpop.f32.mrb[22].mxu0 }
0x1513   :  { %v2452_v58 = vadd.f32 %v2451_v57, %v5613_v34  ;;  %v4885_v59 = vpop.f32.mrb[23].mxu0 }
0x1515   :  { %v2458_v60 = vsel %vm426_vm6, %v2452_v58, -inf }
0x1516   :  { %2459 = vmax.xlane.f32.xlu0 %v2458_v60 }
0x1523   :  { %2553 = vrot.lane.b32.xlu1 %v5825_v11, %s5364_s5 }
0x1527   :  { %2631 = vrot.lane.b32.xlu1 %v5827_v48, %s5365_s9 }
0x152c   :  { %2477 = vrot.lane.b32.xlu0 %v5827_v48, %s5364_s5  ;;  %s5306_s5 = scalar_lea.vmem %s4387_s0, 32 }
0x152d   :  { %p5307_p0 = scmp.ne.s32.totalorder %s4387_s0, %s5306_s5  ;;  %p5312_p2 = scmp.lt.s32.totalorder %s5306_s5, %s5306_s5 }
0x152f   :  { %p5313_p3 = por %p5312_p2, %p5311_p1 }
0x1531   :  { %p5314_p4 = pnand %p5313_p3, %p5307_p0 }
0x159f   :  { %v2457_v61 = vpop.xlane.xlu1 %2456 }
0x15a0   :  { %v2461_v62 = vsub.f32 %v2374_v54, %v2457_v61 }
0x15a2   :  { %v2463_v63 = vmul.f32 1.442695, %v2461_v62 }
0x15a3   :  { %v2554_v0 = vpop.permute.xlu1 %2553  ;;  %v2460_v2 = vpop.xlane.xlu0 %2459 }
0x15a4   :  { %5254 = vpow2.f32 %v2463_v63  ;;  %v2462_v3 = vsub.f32 %v2452_v58, %v2460_v2  ;;  %4892 = vmatpush3.msra.mxu0 %v2554_v0 }
0x15a5   :  { %4901 = vmatprep.subr.mxu0 %v5360_v22 }
0x15a6   :  { %v2465_v5 = vmul.f32 1.442695, %v2462_v3 }
0x15a7   :  { %v2478_v9 = vpop.permute.xlu0 %2477  ;;  %v2632_v15 = vpop.permute.xlu1 %2631 }
0x15a8   :  { %5256 = vpow2.f32 %v2465_v5  ;;  %4887 = vmatpush3.msra.mxu1 %v2478_v9 }
0x15a9   :  { %4896 = vmatprep.subr.mxu1 %v5360_v22 }
0x15ae   :  { %v5255_v12 = vpop.eup %5254 }
0x15af   :  { %v2467_v8 = vsel %vm426_vm6, %v5255_v12, 0.0 }
0x15b0   :  { %2468 = vadd.xlane.f32.xlu0 %v2467_v8 }
0x15b2   :  { %v5257_v14 = vpop.eup %5256 }
0x15b3   :  { %v2470_v13 = vsel %vm426_vm6, %v5257_v14, 0.0 }
0x15b4   :  { %2471 = vadd.xlane.f32.xlu1 %v2470_v13 }
0x15c5   :  { %2629 = vrot.lane.b32.xlu1 %v5835_v50, %s5366_s13 }
0x15c6   :  { %2709 = vrot.lane.b32.xlu0 %v5825_v11, %s5365_s9 }
0x15ca   :  { %2707 = vrot.lane.b32.xlu0 %v5844_v43, %s5366_s13 }
0x163d   :  { %v2469_v1 = vpop.xlane.xlu0 %2468 }
0x163e   :  { %5258 = vrcp.f32 %v2469_v1 }
0x1641   :  { %v2472_v16 = vpop.xlane.xlu1 %2471  ;;  %v2710_v53 = vpop.permute.xlu0 %2709 }
0x1642   :  { %5260 = vrcp.f32 %v2472_v16 }
0x1645   :  { %v2630_v7 = vpop.permute.xlu1 %2629  ;;  %v2708_v20 = vpop.permute.xlu0 %2707 }
0x1648   :  { %v5259_v17 = vpop.eup %5258 }
0x1649   :  { %v2475_v18 = vmul.f32 %v5259_v17, %v5255_v12 }
0x164b   :  { %4889 = vmatmul.mubr.msk.f32.vlgmr.msra.gmra.mrb[24].mxu1 %vm426_vm6, %v2475_v18 }
0x164c   :  { %v5261_v19 = vpop.eup %5260  ;;  %4897 = vmatpush3.xpose.msk.msra.mxu1 %vm426_vm6, %v2632_v15  ;;  %4898 = vmatprep.mubr.msk.f32.mxu1 %vm5361_vm5, %v5360_v22 }
0x164d   :  { %v2476_v52 = vmul.f32 %v5261_v19, %v5257_v14  ;;  %4906 = vmatprep.subr.mxu1 %v5360_v22 }
0x164f   :  { %4894 = vmatmul.mubr.msk.f32.vlgmr.msra.gmra.mrb[24].mxu0 %vm426_vm6, %v2476_v52  ;;  %4899 = vmatmul.mubr.msk.f32.vlgmr.msra.gmra.mrb[26].mxu1 %vm426_vm6, %v2630_v7 }
0x1650   :  { %4902 = vmatpush3.xpose.msk.msra.mxu0 %vm426_vm6, %v2710_v53  ;;  %4903 = vmatprep.mubr.msk.f32.mxu0 %vm5361_vm5, %v5360_v22 }
0x1651   :  { %4911 = vmatprep.subr.mxu0 %v5360_v22  ;;  %4908 = vmatprep.mubr.msk.f32.mxu1 %vm5361_vm5, %v5360_v22 }
0x1653   :  { %4904 = vmatmul.mubr.msk.f32.vlgmr.msra.gmra.mrb[26].mxu0 %vm426_vm6, %v2708_v20 }
0x1654   :  { %4913 = vmatprep.mubr.msk.f32.mxu0 %vm5361_vm5, %v5360_v22 }
0x171e   :  { %v5887_v21 = vpop.f32.mrb[24].mxu1 }
0x171f   :  { %v4890_v24 = vpop.f32.mrb[25].mxu1 }
0x1722   :  { %v5889_v25 = vpop.f32.mrb[24].mxu0  ;;  %v2703_v26 = vpop.f32.mrb[26].mxu1 }
0x1723   :  { %v2704_v27 = vadd.f32 %v2703_v26, %v5610_v32  ;;  %v4895_v28 = vpop.f32.mrb[25].mxu0  ;;  %v4900_v29 = vpop.f32.mrb[27].mxu1 }
0x1725   :  { %v2785_v31 = vsel %vm426_vm6, %v2704_v27, -inf }
0x1726   :  { %2786 = vmax.xlane.f32.xlu1 %v2785_v31  ;;  %v2781_v6 = vpop.f32.mrb[26].mxu0 }
0x1727   :  { %v2782_v4 = vadd.f32 %v2781_v6, %v5613_v34  ;;  %v4905_v33 = vpop.f32.mrb[27].mxu0 }
0x1729   :  { %v2788_v35 = vsel %vm426_vm6, %v2782_v4, -inf }
0x172a   :  { %2789 = vmax.xlane.f32.xlu0 %v2788_v35 }
0x1737   :  { %2883 = vrot.lane.b32.xlu1 %v5825_v11, %s5367_s17 }
0x173b   :  { %2961 = vrot.lane.b32.xlu1 %v5827_v48, %s5368_s21 }
0x1740   :  { %2807 = vrot.lane.b32.xlu0 %v5827_v48, %s5367_s17 }
0x17b3   :  { %v2787_v36 = vpop.xlane.xlu1 %2786 }
0x17b4   :  { %v2791_v23 = vsub.f32 %v2704_v27, %v2787_v36 }
0x17b6   :  { %v2793_v37 = vmul.f32 1.442695, %v2791_v23 }
0x17b7   :  { %v2884_v38 = vpop.permute.xlu1 %2883  ;;  %v2790_v39 = vpop.xlane.xlu0 %2789 }
0x17b8   :  { %5262 = vpow2.f32 %v2793_v37  ;;  %v2792_v40 = vsub.f32 %v2782_v4, %v2790_v39  ;;  %4912 = vmatpush3.msra.mxu0 %v2884_v38 }
0x17b9   :  { %4921 = vmatprep.subr.mxu0 %v5360_v22 }
0x17ba   :  { %v2795_v41 = vmul.f32 1.442695, %v2792_v40 }
0x17bb   :  { %v2808_v45 = vpop.permute.xlu0 %2807  ;;  %v2962_v51 = vpop.permute.xlu1 %2961 }
0x17bc   :  { %5264 = vpow2.f32 %v2795_v41  ;;  %4907 = vmatpush3.msra.mxu1 %v2808_v45 }
0x17bd   :  { %4916 = vmatprep.subr.mxu1 %v5360_v22 }
0x17c2   :  { %v5263_v46 = vpop.eup %5262 }
0x17c3   :  { %v2797_v47 = vsel %vm426_vm6, %v5263_v46, 0.0 }
0x17c4   :  { %2798 = vadd.xlane.f32.xlu0 %v2797_v47 }
0x17c6   :  { %v5265_v49 = vpop.eup %5264 }
0x17c7   :  { %v2800_v10 = vsel %vm426_vm6, %v5265_v49, 0.0 }
0x17c8   :  { %2801 = vadd.xlane.f32.xlu1 %v2800_v10 }
0x17d9   :  { %2959 = vrot.lane.b32.xlu1 %v5835_v50, %s5369_s25 }
0x17da   :  { %3039 = vrot.lane.b32.xlu0 %v5825_v11, %s5368_s21 }
0x17de   :  { %3037 = vrot.lane.b32.xlu0 %v5844_v43, %s5369_s25 }
0x1851   :  { %v2799_v54 = vpop.xlane.xlu0 %2798 }
0x1852   :  { %5266 = vrcp.f32 %v2799_v54 }
0x1855   :  { %v2802_v55 = vpop.xlane.xlu1 %2801  ;;  %v3040_v59 = vpop.permute.xlu0 %3039 }
0x1856   :  { %5268 = vrcp.f32 %v2802_v55 }
0x1859   :  { %v2960_v61 = vpop.permute.xlu1 %2959  ;;  %v3038_v62 = vpop.permute.xlu0 %3037 }
0x185c   :  { %v5267_v56 = vpop.eup %5266 }
0x185d   :  { %v2805_v57 = vmul.f32 %v5267_v56, %v5263_v46 }
0x185f   :  { %4909 = vmatmul.mubr.msk.f32.vlgmr.msra.gmra.mrb[28].mxu1 %vm426_vm6, %v2805_v57 }
0x1860   :  { %v5269_v58 = vpop.eup %5268  ;;  %4917 = vmatpush3.xpose.msk.msra.mxu1 %vm426_vm6, %v2962_v51  ;;  %4918 = vmatprep.mubr.msk.f32.mxu1 %vm5361_vm5, %v5360_v22 }
0x1861   :  { %v2806_v60 = vmul.f32 %v5269_v58, %v5265_v49  ;;  %4926 = vmatprep.subr.mxu1 %v5360_v22 }
0x1863   :  { %4914 = vmatmul.mubr.msk.f32.vlgmr.msra.gmra.mrb[28].mxu0 %vm426_vm6, %v2806_v60  ;;  %4919 = vmatmul.mubr.msk.f32.vlgmr.msra.gmra.mrb[30].mxu1 %vm426_vm6, %v2960_v61 }
0x1864   :  { %4922 = vmatpush3.xpose.msk.msra.mxu0 %vm426_vm6, %v3040_v59  ;;  %4923 = vmatprep.mubr.msk.f32.mxu0 %vm5361_vm5, %v5360_v22 }
0x1865   :  { %4931 = vmatprep.subr.mxu0 %v5360_v22  ;;  %4928 = vmatprep.mubr.msk.f32.mxu1 %vm5361_vm5, %v5360_v22 }
0x1867   :  { %4924 = vmatmul.mubr.msk.f32.vlgmr.msra.gmra.mrb[30].mxu0 %vm426_vm6, %v3038_v62 }
0x1868   :  { %4933 = vmatprep.mubr.msk.f32.mxu0 %vm5361_vm5, %v5360_v22 }
0x1932   :  { %v5927_v63 = vpop.f32.mrb[28].mxu1 }
0x1933   :  { %v4910_v0 = vpop.f32.mrb[29].mxu1 }
0x1936   :  { %v5929_v2 = vpop.f32.mrb[28].mxu0  ;;  %v3033_v3 = vpop.f32.mrb[30].mxu1 }
0x1937   :  { %v3034_v5 = vadd.f32 %v3033_v3, %v5610_v32  ;;  %v4915_v9 = vpop.f32.mrb[29].mxu0  ;;  %v4920_v12 = vpop.f32.mrb[31].mxu1 }
0x1938   :  { %v4505_v12 = vld [vmem:[%s5432_s14 + $0x20] sm:$0xff] }
0x1939   :  { %v3115_v8 = vsel %vm426_vm6, %v3034_v5, -inf }
0x193a   :  { %3116 = vmax.xlane.f32.xlu1 %v3115_v8  ;;  %v3111_v14 = vpop.f32.mrb[30].mxu0  ;;  %v4506_v8 = vld [vmem:[%s5432_s14 + $0x28] sm:$0xff] }
0x193b   :  { %v3112_v13 = vadd.f32 %v3111_v14, %v5613_v34  ;;  %v4925_v15 = vpop.f32.mrb[31].mxu0  ;;  %v5102_v14 = vpack.c.bf16 %v4506_v8, %v4505_v12  ;;  %v4529_v8 = vld [vmem:[%s6095_s22 + $0x40] sm:$0xff] }
0x193c   :  { %v4508_v15 = vld [vmem:[%s5432_s14 + $0x38] sm:$0xff] }
0x193d   :  { %v3118_v1 = vsel %vm426_vm6, %v3112_v13, -inf }
0x193e   :  { %3119 = vmax.xlane.f32.xlu0 %v3118_v1 }
0x194b   :  { %3213 = vrot.lane.b32.xlu1 %v5825_v11, %s5370_s29 }
0x194f   :  { %3291 = vrot.lane.b32.xlu1 %v5827_v48, %s5371_s7 }
0x1954   :  { %3137 = vrot.lane.b32.xlu0 %v5827_v48, %s5370_s29 }
0x19c7   :  { %v3117_v16 = vpop.xlane.xlu1 %3116 }
0x19c8   :  { %v3121_v17 = vsub.f32 %v3034_v5, %v3117_v16 }
0x19ca   :  { %v3123_v18 = vmul.f32 1.442695, %v3121_v17 }
0x19cb   :  { %v3214_v19 = vpop.permute.xlu1 %3213  ;;  %v3120_v53 = vpop.xlane.xlu0 %3119 }
0x19cc   :  { %5270 = vpow2.f32 %v3123_v18  ;;  %v3122_v52 = vsub.f32 %v3112_v13, %v3120_v53  ;;  %4932 = vmatpush3.msra.mxu0 %v3214_v19  ;;  %v4507_v13 = vld [vmem:[%s5432_s14 + $0x30] sm:$0xff]  ;;  %s6102_s14 = sld [smem:[#allocation15_spill]] }
0x19cd   :  { %4941 = vmatprep.subr.mxu0 %v5360_v22  ;;  %v5106_v1 = vpack.c.bf16 %v4508_v15, %v4507_v13  ;;  %v4531_v15 = vld [vmem:[%s6095_s22 + $0x50] sm:$0xff] }
0x19ce   :  { %v3125_v7 = vmul.f32 1.442695, %v3122_v52 }
0x19cf   :  { %v3138_v20 = vpop.permute.xlu0 %3137  ;;  %v3292_v29 = vpop.permute.xlu1 %3291 }
0x19d0   :  { %5272 = vpow2.f32 %v3125_v7  ;;  %4927 = vmatpush3.msra.mxu1 %v3138_v20 }
0x19d1   :  { %4936 = vmatprep.subr.mxu1 %v5360_v22 }
0x19d6   :  { %v5271_v24 = vpop.eup %5270 }
0x19d7   :  { %v3127_v26 = vsel %vm426_vm6, %v5271_v24, 0.0 }
0x19d8   :  { %3128 = vadd.xlane.f32.xlu0 %v3127_v26 }
0x19da   :  { %v5273_v27 = vpop.eup %5272 }
0x19db   :  { %v3130_v28 = vsel %vm426_vm6, %v5273_v27, 0.0 }
0x19dc   :  { %3131 = vadd.xlane.f32.xlu1 %v3130_v28 }
0x19ed   :  { %3289 = vrot.lane.b32.xlu1 %v5835_v50, %s5372_s10 }
0x19ee   :  { %3369 = vrot.lane.b32.xlu0 %v5825_v11, %s5371_s7 }
0x19f2   :  { %3367 = vrot.lane.b32.xlu0 %v5844_v43, %s5372_s10 }
0x1a65   :  { %v3129_v31 = vpop.xlane.xlu0 %3128 }
0x1a66   :  { %5274 = vrcp.f32 %v3129_v31 }
0x1a69   :  { %v3132_v6 = vpop.xlane.xlu1 %3131  ;;  %v3370_v36 = vpop.permute.xlu0 %3369 }
0x1a6a   :  { %5276 = vrcp.f32 %v3132_v6 }
0x1a6d   :  { %v3290_v43 = vpop.permute.xlu1 %3289  ;;  %v3368_v23 = vpop.permute.xlu0 %3367 }
0x1a70   :  { %v5275_v4 = vpop.eup %5274 }
0x1a71   :  { %v3135_v33 = vmul.f32 %v5275_v4, %v5271_v24 }
0x1a73   :  { %4929 = vmatmul.mubr.msk.f32.vlgmr.msra.gmra.mrb[32].mxu1 %vm426_vm6, %v3135_v33  ;;  %v4510_v33 = vld [vmem:[%s5437_s19 + $0x1] ss:$0 sm:$0xff]  ;;  %s6103_s19 = sld [smem:[#allocation11_spill]] }
0x1a74   :  { %v5277_v35 = vpop.eup %5276  ;;  %4937 = vmatpush3.xpose.msk.msra.mxu1 %vm426_vm6, %v3292_v29  ;;  %4938 = vmatprep.mubr.msk.f32.mxu1 %vm5361_vm5, %v5360_v22 }
0x1a75   :  { %v3136_v50 = vmul.f32 %v5277_v35, %v5273_v27  ;;  %4946 = vmatprep.subr.mxu1 %v5360_v22 }
0x1a77   :  { %4934 = vmatmul.mubr.msk.f32.vlgmr.msra.gmra.mrb[32].mxu0 %vm426_vm6, %v3136_v50  ;;  %4939 = vmatmul.mubr.msk.f32.vlgmr.msra.gmra.mrb[34].mxu1 %vm426_vm6, %v3290_v43 }
0x1a78   :  { %4942 = vmatpush3.xpose.msk.msra.mxu0 %vm426_vm6, %v3370_v36  ;;  %4943 = vmatprep.mubr.msk.f32.mxu0 %vm5361_vm5, %v5360_v22 }
0x1a79   :  { %4951 = vmatprep.subr.mxu0 %v5360_v22  ;;  %4948 = vmatprep.mubr.msk.f32.mxu1 %vm5361_vm5, %v5360_v22 }
0x1a7b   :  { %4944 = vmatmul.mubr.msk.f32.vlgmr.msra.gmra.mrb[34].mxu0 %vm426_vm6, %v3368_v23 }
0x1a7c   :  { %4953 = vmatprep.mubr.msk.f32.mxu0 %vm5361_vm5, %v5360_v22 }
0x1b46   :  { %v3209_v37 = vpop.f32.mrb[32].mxu1 }
0x1b47   :  { %v4930_v38 = vpop.f32.mrb[33].mxu1 }
0x1b4a   :  { %v3285_v39 = vpop.f32.mrb[32].mxu0  ;;  %v3363_v40 = vpop.f32.mrb[34].mxu1 }
0x1b4b   :  { %v3364_v41 = vadd.f32 %v3363_v40, %v5610_v32  ;;  %v4935_v45 = vpop.f32.mrb[33].mxu0  ;;  %v4940_v46 = vpop.f32.mrb[35].mxu1 }
0x1b4d   :  { %v3445_v47 = vsel %vm426_vm6, %v3364_v41, -inf }
0x1b4e   :  { %3446 = vmax.xlane.f32.xlu1 %v3445_v47  ;;  %v3441_v49 = vpop.f32.mrb[34].mxu0 }
0x1b4f   :  { %v3442_v10 = vadd.f32 %v3441_v49, %v5613_v34  ;;  %v4945_v51 = vpop.f32.mrb[35].mxu0 }
0x1b50   :  { %v4518_v51 = vld [vmem:[%s5452_s6 + $0x28] sm:$0xff] }
0x1b51   :  { %v3448_v54 = vsel %vm426_vm6, %v3442_v10, -inf }
0x1b52   :  { %3449 = vmax.xlane.f32.xlu0 %v3448_v54 }
0x1bdb   :  { %v3447_v55 = vpop.xlane.xlu1 %3446 }
0x1bdc   :  { %v3451_v56 = vsub.f32 %v3364_v41, %v3447_v55  ;;  %v4519_v55 = vld [vmem:[%s5452_s6 + $0x30] sm:$0xff] }
0x1bde   :  { %v3453_v57 = vmul.f32 1.442695, %v3451_v56  ;;  %v4520_v56 = vld [vmem:[%s5452_s6 + $0x38] sm:$0xff] }
0x1bdf   :  { %v3450_v58 = vpop.xlane.xlu0 %3449 }
0x1be0   :  { %5278 = vpow2.f32 %v3453_v57  ;;  %v3452_v59 = vsub.f32 %v3442_v10, %v3450_v58  ;;  %v4517_v10 = vld [vmem:[%s5452_s6 + $0x20] sm:$0xff]  ;;  %v5114_v57 = vpack.c.bf16 %v4520_v56, %v4519_v55  ;;  %s6106_s6 = sld [smem:[#allocation13_spill]] }
0x1be1   :  { %v5110_v54 = vpack.c.bf16 %v4518_v51, %v4517_v10 }
0x1be2   :  { %v3455_v60 = vmul.f32 1.442695, %v3452_v59 }
0x1be4   :  { %5280 = vpow2.f32 %v3455_v60 }
0x1bea   :  { %v5279_v32 = vpop.eup %5278 }
0x1beb   :  { %v3457_v61 = vsel %vm426_vm6, %v5279_v32, 0.0 }
0x1bec   :  { %3458 = vadd.xlane.f32.xlu0 %v3457_v61 }
0x1bee   :  { %v5281_v62 = vpop.eup %5280 }
0x1bef   :  { %v3460_v0 = vsel %vm426_vm6, %v5281_v62, 0.0 }
0x1bf0   :  { %3461 = vadd.xlane.f32.xlu1 %v3460_v0 }
0x1c01   :  { %3543 = vrot.lane.b32.xlu1 %v5825_v11, %s5373_s11 }
0x1c02   :  { %3467 = vrot.lane.b32.xlu0 %v5827_v48, %s5373_s11 }
0x1c05   :  { %3621 = vrot.lane.b32.xlu1 %v5927_v63, %s5374_s15 }
0x1c06   :  { %3623 = vrot.lane.b32.xlu0 %v5929_v2, %s5374_s15 }
0x1c09   :  { %3629 = vrot.lane.b32.xlu1 %v3209_v37, %s5375_s16 }
0x1c0a   :  { %3631 = vrot.lane.b32.xlu0 %v3285_v39, %s5375_s16 }
0x1c79   :  { %v3459_v34 = vpop.xlane.xlu0 %3458 }
0x1c7a   :  { %5282 = vrcp.f32 %v3459_v34  ;;  %v4515_v34 = vld [vmem:[%s5442_s24 + $0x1] ss:$0 sm:$0xff]  ;;  %s6104_s24 = sld [smem:[#allocation14_spill]] }
0x1c7d   :  { %v3462_v3 = vpop.xlane.xlu1 %3461  ;;  %v3468_v5 = vpop.permute.xlu0 %3467 }
0x1c7e   :  { %5284 = vrcp.f32 %v3462_v3  ;;  %4947 = vmatpush3.msra.mxu1 %v3468_v5 }
0x1c7f   :  { %5103 = vmatprep.subr.bf16.mxu1 %v5102_v14 }
0x1c81   :  { %v3544_v11 = vpop.permute.xlu1 %3543  ;;  %v3624_v52 = vpop.permute.xlu0 %3623 }
0x1c82   :  { %4952 = vmatpush3.msra.mxu0 %v3544_v11  ;;  %v3644_v29 = vsel %vm426_vm6, %v5889_v25, %v3624_v52  ;;  %v4536_v52 = vld [vmem:[%s6095_s22 + $0x78] sm:$0xff] }
0x1c83   :  { %5111 = vmatprep.subr.bf16.mxu0 %v5110_v54 }
0x1c84   :  { %v5283_v48 = vpop.eup %5282 }
0x1c85   :  { %v3465_v63 = vmul.f32 %v5283_v48, %v5279_v32  ;;  %v3622_v53 = vpop.permute.xlu1 %3621  ;;  %v3632_v24 = vpop.permute.xlu0 %3631  ;;  %v4516_v48 = vld [vmem:[%s5447_s30 + $0x1] ss:$0 sm:$0xff]  ;;  %s6105_s30 = sld [smem:[#allocation12_spill]] }
0x1c86   :  { %v3643_v20 = vsel %vm426_vm6, %v5887_v21, %v3622_v53  ;;  %v3646_v31 = vsel %vm1770_vm7, %v3644_v29, %v3632_v24  ;;  %v4535_v53 = vld [vmem:[%s6095_s22 + $0x70] sm:$0xff] }
0x1c87   :  { %4949 = vmatmul.mubr.msk.f32.vlgmr.msra.gmra.mrb[36].mxu1 %vm426_vm6, %v3465_v63 }
0x1c88   :  { %v5285_v2 = vpop.eup %5284  ;;  %5105 = vmatpush3.bf16.msra.mxu1 %v5102_v14  ;;  %v4530_v14 = vld [vmem:[%s6095_s22 + $0x48] sm:$0xff] }
0x1c89   :  { %v3466_v9 = vmul.f32 %v5285_v2, %v5281_v62  ;;  %5107 = vmatprep.subr.bf16.mxu1 %v5106_v1  ;;  %v3630_v7 = vpop.permute.xlu1 %3629  ;;  %v5118_v13 = vpack.c.bf16 %v4530_v14, %v4529_v8 }
0x1c8a   :  { %v3645_v26 = vsel %vm1770_vm7, %v3643_v20, %v3630_v7  ;;  %v5130_v7 = vpack.c.bf16 %v4536_v52, %v4535_v53  ;;  %v4522_v20 = vld [vmem:[%s6096_s23 + $0x1] ss:$0 sm:$0xff] }
0x1c8b   :  { %4954 = vmatmul.mubr.msk.f32.vlgmr.msra.gmra.mrb[36].mxu0 %vm426_vm6, %v3466_v9 }
0x1c8c   :  { %5109 = vmatpush3.bf16.msra.mxu1 %v5106_v1  ;;  %5113 = vmatpush3.bf16.msra.mxu0 %v5110_v54  ;;  %v4532_v1 = vld [vmem:[%s6095_s22 + $0x58] sm:$0xff] }
0x1c8d   :  { %5115 = vmatprep.subr.bf16.mxu0 %v5114_v57  ;;  %5119 = vmatprep.subr.bf16.mxu1 %v5118_v13 }
0x1c90   :  { %5117 = vmatpush3.bf16.msra.mxu0 %v5114_v57 }
0x1d5a   :  { %v3539_v16 = vpop.f32.mrb[36].mxu1 }
0x1d5b   :  { %3637 = vrot.lane.b32.xlu1 %v3539_v16, %s5376_s18  ;;  %v4950_v17 = vpop.f32.mrb[37].mxu1  ;;  %v5122_v16 = vpack.c.bf16 %v4532_v1, %v4531_v15 }
0x1d5c   :  { %v4533_v17 = vld [vmem:[%s6095_s22 + $0x60] sm:$0xff] }
0x1d5e   :  { %v3615_v18 = vpop.f32.mrb[36].mxu0 }
0x1d5f   :  { %3639 = vrot.lane.b32.xlu0 %v3615_v18, %s5376_s18  ;;  %v4955_v19 = vpop.f32.mrb[37].mxu0  ;;  %v4534_v18 = vld [vmem:[%s6095_s22 + $0x68] sm:$0xff] }
0x1d60   :  { %v5126_v19 = vpack.c.bf16 %v4534_v18, %v4533_v17  ;;  %v4538_v18 = vld [vmem:[%s6097_s26 + $0x1] ss:$0 sm:$0xff] }
0x1dcd   :  { %v3638_v27 = vpop.permute.xlu1 %3637 }
0x1dce   :  { %v3647_v28 = vsel %vm1773_vm8, %v3645_v26, %v3638_v27 }
0x1dcf   :  { %4964 = vmatprep.mubr.msk.f32.mxu1 %vm248_vm4, %v3647_v28 }
0x1dd1   :  { %v3640_v6 = vpop.permute.xlu0 %3639 }
0x1dd2   :  { %v3648_v4 = vsel %vm1773_vm8, %v3646_v31, %v3640_v6 }
0x1dd3   :  { %4965 = vmatmul.mubr.msk.f32.vlgmr.msra.gmra.mrb[38].mxu1 %vm248_vm4, %v3648_v4 }
0x1dd4   :  { %5121 = vmatpush3.bf16.msra.mxu1 %v5118_v13 }
0x1dd5   :  { %5123 = vmatprep.subr.bf16.mxu1 %v5122_v16 }
0x1dd8   :  { %5125 = vmatpush3.bf16.msra.mxu1 %v5122_v16 }
0x1dd9   :  { %5127 = vmatprep.subr.bf16.mxu1 %v5126_v19 }
0x1ddc   :  { %5129 = vmatpush3.bf16.msra.mxu1 %v5126_v19 }
0x1ddd   :  { %5131 = vmatprep.subr.bf16.mxu1 %v5130_v7 }
0x1de0   :  { %5133 = vmatpush3.bf16.msra.mxu1 %v5130_v7 }
0x1ea6   :  { %v4966_v21 = vpop.f32.mrb[38].mxu1 }
0x1ea7   :  { %v3740_v35 = vadd.f32 %v4966_v21, %v4510_v33  ;;  %v3734_v36 = vpop.f32.mrb[39].mxu1 }
0x1ea8   :  { %v3735_v50 = vadd.f32 %v4510_v33, %v3734_v36 }
0x1ea9   :  { %v3744_v43 = vadd.f32 %v3740_v35, %v5816_v44 }
0x1eaa   :  { %v3743_v23 = vadd.f32 %v3735_v50, %v5814_v42 }
0x1eab   :  { %v3752_v37 = vsel %vm248_vm4, %v3744_v43, 0.0 }
0x1eac   :  { %3753 = vadd.xlane.f32.xlu0 %v3752_v37  ;;  %v3749_v25 = vsel %vm248_vm4, %v3743_v23, 0.0 }
0x1ead   :  { %3750 = vadd.xlane.f32.xlu1 %v3749_v25 }
0x1f39   :  { %v3754_v38 = vpop.xlane.xlu0 %3753 }
0x1f3a   :  { %v3756_v39 = vmul.f32 0.03125, %v3754_v38  ;;  %v3751_v40 = vpop.xlane.xlu1 %3750 }
0x1f3b   :  { %v3755_v41 = vmul.f32 0.03125, %v3751_v40 }
0x1f3c   :  { %v3758_v45 = vsub.f32 %v3744_v43, %v3756_v39 }
0x1f3d   :  { %v3757_v46 = vsub.f32 %v3743_v23, %v3755_v41 }
0x1f3e   :  { %v3760_v47 = vmul.f32 %v3758_v45, %v3758_v45 }
0x1f3f   :  { %v3759_v44 = vmul.f32 %v3757_v46, %v3757_v46 }
0x1f40   :  { %v3764_v42 = vsel %vm248_vm4, %v3760_v47, 0.0 }
0x1f41   :  { %3765 = vadd.xlane.f32.xlu1 %v3764_v42  ;;  %v3761_v49 = vsel %vm248_vm4, %v3759_v44, 0.0 }
0x1f42   :  { %3762 = vadd.xlane.f32.xlu0 %v3761_v49 }
0x1fce   :  { %v3766_v58 = vpop.xlane.xlu1 %3765 }
0x1fcf   :  { %v3768_v59 = vmul.f32 0.03125, %v3766_v58  ;;  %v3763_v60 = vpop.xlane.xlu0 %3762 }
0x1fd0   :  { %v3767_v32 = vmul.f32 0.03125, %v3763_v60 }
0x1fd1   :  { %v3770_v61 = vadd.f32 1e-12, %v3768_v59 }
0x1fd2   :  { %v3769_v62 = vadd.f32 1e-12, %v3767_v32 }
0x1fd3   :  { %5286 = vrsqrt.f32 %v3770_v61 }
0x1fd4   :  { %5288 = vrsqrt.f32 %v3769_v62 }
0x1fdd   :  { %v5287_v0 = vpop.eup %5286 }
0x1fde   :  { %v5289_v3 = vpop.eup %5288  ;;  %v3774_v5 = vmul.f32 %v5287_v0, %v3758_v45 }
0x1fdf   :  { %v3773_v11 = vmul.f32 %v5289_v3, %v3757_v46 }
0x1fe0   :  { %v3782_v63 = vmul.f32 %v4515_v34, %v3774_v5 }
0x1fe1   :  { %v3781_v2 = vmul.f32 %v4515_v34, %v3773_v11 }
0x1fe2   :  { %v6016_v12 = vadd.f32 %v4516_v48, %v3782_v63 }
0x1fe3   :  { %v6014_v9 = vadd.f32 %v4516_v48, %v3781_v2 }
0x1fe5   :  { %4975 = vmatprep.mubr.msk.f32.mxu0 %vm248_vm4, %v6014_v9 }
0x1fe6   :  { %4976 = vmatmul.mubr.msk.f32.vlgmr.msra.gmra.mrb[38].mxu0 %vm248_vm4, %v6016_v12 }
0x1fe7   :  { %5005 = vmatprep.mubr.msk.f32.mxu0 %vm5361_vm5, %v5360_v22 }
0x20b9   :  { %v4977_v24 = vpop.f32.mrb[38].mxu0 }
0x20ba   :  { %v3882_v26 = vadd.f32 %v4977_v24, %v4522_v20  ;;  %v3876_v27 = vpop.f32.mrb[39].mxu0 }
0x20bb   :  { %v3877_v28 = vadd.f32 %v4522_v20, %v3876_v27 }
0x20bc   :  { %v3888_v29 = vmul.f32 0.70710677, %v3882_v26  ;;  %v3886_v1 = vmul.f32 0.5, %v3882_v26 }
0x20bd   :  { %v3887_v31 = vmul.f32 0.70710677, %v3877_v28  ;;  %v3885_v13 = vmul.f32 0.5, %v3877_v28 }
0x20be   :  { %v3890_v6 = vand.u32 2147483647, %v3888_v29  ;;  %v3918_v50 = vmul.f32 %v3888_v29, %v3888_v29  ;;  %vm3930_vm12 = vcmp.ge.f32.partialorder %v3888_v29, 0.0 }
0x20bf   :  { %v3889_v4 = vand.u32 2147483647, %v3887_v31  ;;  %v3917_v43 = vmul.f32 %v3887_v31, %v3887_v31  ;;  %vm3929_vm13 = vcmp.ge.f32.partialorder %v3887_v31, 0.0 }
0x20c0   :  { %v3892_v33 = vmul.f32 0.3275911, %v3890_v6  ;;  %v3920_v37 = vsub.f32 0.0, %v3918_v50  ;;  %v4091_v50 = vld [vmem:[%s6100_s3 + $0x8] sm:$0xff] }
0x20c1   :  { %v3891_v21 = vmul.f32 0.3275911, %v3889_v4  ;;  %v3919_v39 = vsub.f32 0.0, %v3917_v43 }
0x20c2   :  { %v3894_v35 = vadd.f32 1.0, %v3892_v33  ;;  %v3923_v45 = vmul.f32 1.442695, %v3920_v37  ;;  %v4093_v37 = vld [vmem:[%s6100_s3 + $0x18] sm:$0xff] }
0x20c3   :  { %v3893_v36 = vadd.f32 1.0, %v3891_v21  ;;  %v3921_v44 = vmul.f32 1.442695, %v3919_v39 }
0x20c4   :  { %5290 = vrcp.f32 %v3894_v35 }
0x20c5   :  { %5292 = vrcp.f32 %v3893_v36  ;;  %v4090_v36 = vld [vmem:[%s6100_s3] sm:$0xff] }
0x20c6   :  { %5294 = vpow2.f32 %v3923_v45  ;;  %v5135_v43 = vpack.c.bf16 %v4091_v50, %v4090_v36 }
0x20c7   :  { %5296 = vpow2.f32 %v3921_v44 }
0x20ce   :  { %v5291_v23 = vpop.eup %5290 }
0x20cf   :  { %v3900_v25 = vmul.f32 1.0614054, %v5291_v23  ;;  %v5293_v38 = vpop.eup %5292 }
0x20d0   :  { %v3899_v41 = vmul.f32 1.0614054, %v5293_v38  ;;  %v5295_v61 = vpop.eup %5294 }
0x20d1   :  { %v4526_v40 = vadd.f32 -1.4531521, %v3900_v25  ;;  %v5297_v34 = vpop.eup %5296  ;;  %v5377_v25 = vmov 0.0|0.0  }
0x20d2   :  { %v4525_v47 = vadd.f32 -1.4531521, %v3899_v41  ;;  %5134 = vmatprep.subr.bf16.mxu0 %v5377_v25  ;;  %5146 = vmatprep.subr.bf16.mxu1 %v5377_v25 }
0x20d3   :  { %v3904_v46 = vmul.f32 %v5291_v23, %v4526_v40  ;;  %5136 = vmatpush3.bf16.msra.mxu0 %v5135_v43 }
0x20d4   :  { %v3903_v49 = vmul.f32 %v5293_v38, %v4525_v47  ;;  %5137 = vmatprep.subr.bf16.mxu0 %v5377_v25 }
0x20d5   :  { %v3906_v42 = vadd.f32 1.4214138, %v3904_v46 }
0x20d6   :  { %v3905_v51 = vadd.f32 1.4214138, %v3903_v49 }
0x20d7   :  { %v3908_v10 = vmul.f32 %v5291_v23, %v3906_v42  ;;  %v4543_v42 = vld [vmem:[%s6098_s28 + $0x1] ss:$0 sm:$0xff] }
0x20d8   :  { %v3907_v55 = vmul.f32 %v5293_v38, %v3905_v51 }
0x20d9   :  { %v4528_v54 = vadd.f32 -0.28449672, %v3908_v10 }
0x20da   :  { %v4527_v57 = vadd.f32 -0.28449672, %v3907_v55 }
0x20db   :  { %v3912_v56 = vmul.f32 %v5291_v23, %v4528_v54  ;;  %v4544_v54 = vld [vmem:[%s6099_s1 + $0x1] ss:$0 sm:$0xff] }
0x20dc   :  { %v3911_v59 = vmul.f32 %v5293_v38, %v4527_v57 }
0x20dd   :  { %v3914_v58 = vadd.f32 0.2548296, %v3912_v56 }
0x20de   :  { %v3913_v32 = vadd.f32 0.2548296, %v3911_v59 }
0x20df   :  { %v3916_v60 = vmul.f32 %v5291_v23, %v3914_v58  ;;  %v4092_v23 = vld [vmem:[%s6100_s3 + $0x10] sm:$0xff] }
0x20e0   :  { %v3915_v0 = vmul.f32 %v5293_v38, %v3913_v32  ;;  %v5138_v38 = vpack.c.bf16 %v4093_v37, %v4092_v23  ;;  %v4209_v32 = vld [vmem:[%s6101_s8] sm:$0xff] }
0x20e1   :  { %v3926_v62 = vmul.f32 %v5295_v61, %v3916_v60  ;;  %v4210_v61 = vld [vmem:[%s6101_s8 + $0x8] sm:$0xff] }
0x20e2   :  { %v3925_v5 = vmul.f32 %v5297_v34, %v3915_v0  ;;  %5139 = vmatpush3.bf16.msra.mxu0 %v5138_v38  ;;  %v4211_v0 = vld [vmem:[%s6101_s8 + $0x10] sm:$0xff]  ;;  %v4212_v34 = vld [vmem:[%s6101_s8 + $0x18] sm:$0xff] }
0x20e3   :  { %v3928_v3 = vsub.f32 1.0, %v3926_v62  ;;  %5140 = vmatprep.subr.bf16.mxu0 %v5377_v25  ;;  %v5141_v62 = vpack.c.bf16 %v4210_v61, %v4209_v32 }
0x20e4   :  { %v3927_v48 = vsub.f32 1.0, %v3925_v5  ;;  %v4294_v5 = vld [vmem:[%s5522_s20] sm:$0xff] }
0x20e5   :  { %v3932_v11 = vsub.f32 0.0, %v3928_v3 }
0x20e6   :  { %v3931_v2 = vsub.f32 0.0, %v3927_v48 }
0x20e7   :  { %v3934_v63 = vsel %vm3930_vm12, %v3928_v3, %v3932_v11  ;;  %v5144_v3 = vpack.c.bf16 %v4212_v34, %v4211_v0  ;;  %v4295_v11 = vld [vmem:[%s5522_s20 + $0x8] sm:$0xff] }
0x20e8   :  { %v3936_v8 = vadd.f32 1.0, %v3934_v63  ;;  %v3933_v14 = vsel %vm3929_vm13, %v3927_v48, %v3931_v2  ;;  %v5147_v48 = vpack.c.bf16 %v4295_v11, %v4294_v5  ;;  %v4183_v63 = vld [vmem:[%s6102_s14] sm:$0x1] }
0x20e9   :  { %v3935_v15 = vadd.f32 1.0, %v3933_v14  ;;  %v4545_v2 = vld [vmem:[%s6103_s19] ss:$0 sm:$0xff] }
0x20ea   :  { %v3938_v17 = vmul.f32 %v3936_v8, %v3886_v1  ;;  %v4547_v1 = vld [vmem:[%s6104_s24] ss:$0 sm:$0xff] }
0x20eb   :  { %v3937_v16 = vmul.f32 %v3935_v15, %v3885_v13 }
0x20ed   :  { %4994 = vmatprep.mubr.msk.f32.mxu1 %vm2075_vm11, %v3937_v16 }
0x20ee   :  { %4995 = vmatmul.mubr.msk.f32.vlgmr.msra.gmra.mrb[40].mxu1 %vm2075_vm11, %v3938_v17 }
0x20ef   :  { %5027 = vmatprep.mubr.msk.f32.mxu1 %vm5361_vm5, %v5360_v22  ;;  %5148 = vmatpush3.bf16.msra.mxu1 %v5147_v48 }
0x20f0   :  { %5149 = vmatprep.subr.bf16.mxu1 %v5377_v25 }
0x21c1   :  { %v4996_v19 = vpop.f32.mrb[40].mxu1 }
0x21c2   :  { %v4034_v53 = vadd.f32 %v4996_v19, %v4538_v18  ;;  %v4028_v52 = vpop.f32.mrb[41].mxu1  ;;  %v4548_v19 = vld [vmem:[%s6105_s30] ss:$0 sm:$0xff] }
0x21c3   :  { %v4029_v7 = vadd.f32 %v4538_v18, %v4028_v52  ;;  %v4549_v52 = vld [vmem:[%s6106_s6] ss:$0 sm:$0xff] }
0x21c4   :  { %v4038_v20 = vadd.f32 %v4034_v53, %v6016_v12 }
0x21c5   :  { %v4037_v24 = vadd.f32 %v4029_v7, %v6014_v9 }
0x21c6   :  { %v4046_v26 = vsel %vm248_vm4, %v4038_v20, 0.0 }
0x21c7   :  { %4047 = vadd.xlane.f32.xlu0 %v4046_v26  ;;  %v4043_v27 = vsel %vm248_vm4, %v4037_v24, 0.0  ;;  %v4297_v26 = vld [vmem:[%s5522_s20 + $0x18] sm:$0xff] }
0x21c8   :  { %4044 = vadd.xlane.f32.xlu1 %v4043_v27 }
0x2254   :  { %v4048_v28 = vpop.xlane.xlu0 %4047 }
0x2255   :  { %v4050_v29 = vmul.f32 0.03125, %v4048_v28  ;;  %v4045_v31 = vpop.xlane.xlu1 %4044  ;;  %v4550_v28 = vld [vmem:[%s5517_s12] ss:$0 sm:$0xff] }
0x2256   :  { %v4049_v6 = vmul.f32 0.03125, %v4045_v31 }
0x2257   :  { %v4052_v4 = vsub.f32 %v4038_v20, %v4050_v29 }
0x2258   :  { %v4051_v33 = vsub.f32 %v4037_v24, %v4049_v6  ;;  %v4296_v24 = vld [vmem:[%s5522_s20 + $0x10] sm:$0xff] }
0x2259   :  { %v4054_v21 = vmul.f32 %v4052_v4, %v4052_v4  ;;  %v5150_v27 = vpack.c.bf16 %v4297_v26, %v4296_v24 }
0x225a   :  { %v4053_v12 = vmul.f32 %v4051_v33, %v4051_v33 }
0x225b   :  { %v4058_v9 = vsel %vm248_vm4, %v4054_v21, 0.0  ;;  %5151 = vmatpush3.bf16.msra.mxu1 %v5150_v27 }
0x225c   :  { %4059 = vadd.xlane.f32.xlu0 %v4058_v9  ;;  %v4055_v35 = vsel %vm248_vm4, %v4053_v12, 0.0 }
0x225d   :  { %4056 = vadd.xlane.f32.xlu1 %v4055_v35 }
0x22e9   :  { %v4060_v39 = vpop.xlane.xlu0 %4059 }
0x22ea   :  { %v4062_v40 = vmul.f32 0.03125, %v4060_v39  ;;  %v4057_v41 = vpop.xlane.xlu1 %4056 }
0x22eb   :  { %v4061_v45 = vmul.f32 0.03125, %v4057_v41 }
0x22ec   :  { %v4064_v46 = vadd.f32 1e-12, %v4062_v40 }
0x22ed   :  { %v4063_v47 = vadd.f32 1e-12, %v4061_v45 }
0x22ee   :  { %5298 = vrsqrt.f32 %v4064_v46 }
0x22ef   :  { %5300 = vrsqrt.f32 %v4063_v47 }
0x22f8   :  { %v5299_v44 = vpop.eup %5298 }
0x22f9   :  { %v5301_v49 = vpop.eup %5300  ;;  %v4068_v10 = vmul.f32 %v5299_v44, %v4052_v4 }
0x22fa   :  { %v4067_v51 = vmul.f32 %v5301_v49, %v4051_v33 }
0x22fb   :  { %v4076_v55 = vmul.f32 %v4543_v42, %v4068_v10 }
0x22fc   :  { %v4075_v56 = vmul.f32 %v4543_v42, %v4067_v51 }
0x22fd   :  { %v4084_v57 = vadd.f32 %v4544_v54, %v4076_v55 }
0x22fe   :  { %v4083_v58 = vadd.f32 %v4544_v54, %v4075_v56 }
0x22ff   :  { %v4086_v59 = vrot.slane %v4084_v57, 7 }
0x2301   :  { %v4089_v60 = vsel %vm4088_vm14, %v4083_v58, %v4086_v59 }
0x2302   :  { %5006 = vmatmul.mubr.msk.f32.vlgmr.msra.gmra.mrb[40].mxu0 %vm248_vm4, %v4089_v60 }
0x2303   :  { %5016 = vmatprep.mubr.msk.f32.mxu0 %vm5361_vm5, %v5360_v22  ;;  %5142 = vmatpush3.bf16.msra.mxu0 %v5141_v62  ;;  %v4184_v22 = vadd.f32 1e-05, %v4183_v63 }
0x2304   :  { %5143 = vmatprep.subr.bf16.mxu0 %v5377_v25 }
0x2305   :  { %5302 = vrsqrt.f32 %v4184_v22 }
0x2307   :  { %5145 = vmatpush3.bf16.msra.mxu0 %v5144_v3 }
0x230f   :  { %v5303_v15 = vpop.eup %5302 }
0x2310   :  { %v4190_v16 = vrot.slane %v5303_v15, %v5607_v30  ;;  %v4552_v30 = vld [vmem:[%s5527_s27] ss:$0 sm:$0xff] }
0x23d5   :  { %v4170_v8 = vpop.f32.mrb[40].mxu0 }
0x23d6   :  { %v4171_v14 = vadd.f32 %v4545_v2, %v4170_v8  ;;  %v5007_v13 = vpop.f32.mrb[41].mxu0 }
0x23d8   :  { %5304 = vtanh.f32 %v4171_v14 }
0x23e2   :  { %v5305_v17 = vpop.eup %5304 }
0x23e3   :  { %v4182_v18 = vsub.f32 %v5305_v17, %v4547_v1 }
0x23e5   :  { %v4192_v53 = vmul.f32 %v4190_v16, %v4182_v18 }
0x23e7   :  { %v4200_v7 = vmul.f32 %v4548_v19, %v4192_v53 }
0x23e9   :  { %v4208_v20 = vadd.f32 %v4549_v52, %v4200_v7 }
0x23eb   :  { %5017 = vmatmul.mubr.msk.f32.vlgmr.msra.gmra.mrb[42].mxu0 %vm248_vm4, %v4208_v20 }
0x24be   :  { %v4289_v29 = vpop.f32.mrb[42].mxu0 }
0x24bf   :  { %v4290_v31 = vadd.f32 %v4550_v28, %v4289_v29  ;;  %v5018_v6 = vpop.f32.mrb[43].mxu0 }
0x24c1   :  { %v4293_v4 = vmax.f32 %v4290_v31, 0.0 }
0x24c3   :  { %5028 = vmatmul.mubr.msk.f32.vlgmr.msra.gmra.mrb[42].mxu1 %vm248_vm4, %v4293_v4 }
0x2596   :  { %v4374_v33 = vpop.f32.mrb[42].mxu1 }
0x2597   :  { %v4375_v21 = vadd.f32 %v4552_v30, %v4374_v33  ;;  %v5029_v12 = vpop.f32.mrb[43].mxu1 }
0x2599   :  { %4379 = vst.msk [vmem:[#allocation2] sm:$0x3] %vm4378_vm15, %v4375_v21 }
0x259a   :  { %5317 = shalt.err (!%p5314_p4)
}
0x259b   :  { %s5318_s12 = scalar_lea.hbm %s5532_s4, 32 }
0x259c   :  { %p5319_p5 = scmp.ne.s32.totalorder %s5532_s4, %s5318_s12  ;;  %p5322_p6 = scmp.lt.u32.totalorder %s5318_s12, %s5532_s4 }
0x259e   :  { %p5324_p7 = pnand %p5322_p6, %p5319_p5 }
0x25a0   :  { %5327 = shalt.err (!%p5324_p7)
}
0x25a1   :  { %4389 = dma.vmem_to_hbm [thread:$0]  %s4387_s0, 32, %s5532_s4, [#allocation3]  }
0x25a2   :  { %5328 = dma.done.wait [#allocation3], 32  }
0x25a3   :  { %5329 = vsyncadd [#allocation3], 4294967264 }
0x25a4   :  { %4393 = vsyncpa [#allocation3], 1 }

</bundles_post_ra>
